<compile_context>
chip_gen: v7x
topology: tpu7x:2x2x1
jax: 0.10.0
libtpu: 0.0.40
codegen_flags: <defaults>
</compile_context>

<pallas_src>
import jax
import jax.numpy as jnp
from jax.experimental import pallas as pl
from jax.experimental.pallas import tpu as pltpu

D_IN = 17114
D3, D4, D5, D6 = 256, 128, 32, 1
TK = 4096                       # K-tile for the fc3 reduction (was 512)
KP = pl.cdiv(D_IN, TK) * TK     # padded K extent; padding lives only in params


def _fused_kernel(x_ref, mult_ref,
                  w3_ref, b3_ref,
                  w4_ref, b4_ref,
                  w5_ref, b5_ref,
                  w6_ref, b6_ref,
                  out_ref, acc_ref):
    k = pl.program_id(0)

    @pl.when(k == 0)
    def _():
        acc_ref[...] = jnp.zeros_like(acc_ref)

    # relu(sbp1(x)) for this K-chunk.  x is unpadded in HBM, so the OOB tail
    # of the last tile holds undefined data -> mask against the true feature
    # count before feeding the MXU (garbage * 0 could still be NaN).
    h0 = jnp.maximum(x_ref[...] * mult_ref[...], 0.0)
    col = k * TK + jax.lax.broadcasted_iota(jnp.int32, h0.shape, 1)
    h0 = jnp.where(col < D_IN, h0, 0.0)
    acc_ref[...] += jnp.dot(h0, w3_ref[...], preferred_element_type=jnp.float32)

    @pl.when(k == pl.num_programs(0) - 1)
    def _():
        h3 = jnp.maximum(acc_ref[...] + b3_ref[...], 0.0)                 # relu(fc3)
        h4 = jnp.maximum(
            jnp.dot(h3, w4_ref[...], preferred_element_type=jnp.float32)
            + b4_ref[...], 0.0)                                           # relu(fc4)
        h5 = jnp.maximum(
            jnp.dot(h4, w5_ref[...], preferred_element_type=jnp.float32)
            + b5_ref[...], 0.0)                                           # relu(fc5)
        out = (jnp.dot(h5, w6_ref[...], preferred_element_type=jnp.float32)
               + b6_ref[...])                                             # fc6
        out_ref[...] = out.astype(out_ref.dtype)


def prepare_params(params):
    """One-time conversion of PyTorch-layout params into kernel layout.

    Runs OUTSIDE the jitted per-call forward, so the W3 transpose + K-pad
    (the dominant 17.5 MB tensor) is paid once at load time, not per call.
    """
    mu, log_sigma2 = params["sbp_mu"], params["sbp_log_sigma2"]
    log_alpha = jnp.clip(log_sigma2 - 2.0 * jnp.log(jnp.abs(mu) + 1e-8),
                         -10.0, 10.0)
    mask = (log_alpha < 0.0).astype(jnp.float32)
    mult = (mu * mask)[None, :]                                    # [1, D_IN]
    pad = KP - D_IN
    kparams = {
        "mult_p": jnp.pad(mult, ((0, 0), (0, pad))),               # [1, KP]
        "w3t_p": jnp.pad(params["w3"].T, ((0, pad), (0, 0))),      # [KP, D3]
        "b3": params["b3"],
        "w4t": params["w4"].T, "b4": params["b4"],                 # [D3, D4]
        "w5t": params["w5"].T, "b5": params["b5"],                 # [D4, D5]
        "w6t": params["w6"].T, "b6": params["b6"],                 # [D5, D6]
    }
    return jax.tree_util.tree_map(lambda a: jnp.asarray(a, jnp.float32), kparams)


@jax.jit
def test_model_forward(x, kparams):
    """x: [B, 17114] float32 (unpadded). Returns [B, 1] float32."""
    B = x.shape[0]
    grid = (KP // TK,)

    flops = 2 * B * (D_IN * D3 + D3 * D4 + D4 * D5 + D5 * D6)
    bytes_accessed = 4 * (KP * D3 + B * D_IN + KP
                          + D3 * D4 + D4 * D5 + D5 * D6
                          + D3 + D4 + D5 + D6 + B * D6)

    out = pl.pallas_call(
        _fused_kernel,
        out_shape=jax.ShapeDtypeStruct((B, D6), jnp.float32),
        grid_spec=pltpu.PrefetchScalarGridSpec(
            num_scalar_prefetch=0,
            grid=grid,
            in_specs=[
                pl.BlockSpec((B, TK), lambda k: (0, k)),       # x chunk (last partial)
                pl.BlockSpec((1, TK), lambda k: (0, k)),       # sbp multiplicator chunk
                pl.BlockSpec((TK, D3), lambda k: (k, 0)),      # W3^T chunk (dominant)
                pl.BlockSpec((1, D3), lambda k: (0, 0)),       # b3
                pl.BlockSpec((D3, D4), lambda k: (0, 0)),      # W4^T
                pl.BlockSpec((1, D4), lambda k: (0, 0)),       # b4
                pl.BlockSpec((D4, D5), lambda k: (0, 0)),      # W5^T
                pl.BlockSpec((1, D5), lambda k: (0, 0)),       # b5
                pl.BlockSpec((D5, D6), lambda k: (0, 0)),      # W6^T
                pl.BlockSpec((1, D6), lambda k: (0, 0)),       # b6
            ],
            out_specs=pl.BlockSpec((B, D6), lambda k: (0, 0)),
            scratch_shapes=[pltpu.VMEM((B, D3), jnp.float32)],
        ),
        compiler_params=pltpu.CompilerParams(
            dimension_semantics=("arbitrary",),
            vmem_limit_bytes=32 * 1024 * 1024),
        cost_estimate=pl.CostEstimate(
            flops=flops, transcendentals=0, bytes_accessed=bytes_accessed),
    )(x, kparams["mult_p"],
      kparams["w3t_p"], kparams["b3"],
      kparams["w4t"], kparams["b4"],
      kparams["w5t"], kparams["b5"],
      kparams["w6t"], kparams["b6"])
    return out


def init_params(key):
    """Deterministic init mirroring the PyTorch module's reset_parameters()."""
    ks = jax.random.split(key, 8)
    params = {
        # SBP_layer(17114): mu ~ N(1.0, 0.01), log_sigma2 = -9.0
        "sbp_mu": 1.0 + 0.01 * jax.random.normal(ks[0], (D_IN,), jnp.float32),
        "sbp_log_sigma2": jnp.full((D_IN,), -9.0, jnp.float32),
        # Linearvbd1: W ~ N(0, 0.001), bias = 0   (log_sigma unused in eval fwd)
        "w3": 0.001 * jax.random.normal(ks[1], (D3, D_IN), jnp.float32),
        "b3": jnp.zeros((1, D3), jnp.float32),
        "w4": 0.001 * jax.random.normal(ks[2], (D4, D3), jnp.float32),
        "b4": jnp.zeros((1, D4), jnp.float32),
        "w5": 0.001 * jax.random.normal(ks[3], (D5, D4), jnp.float32),
        "b5": jnp.zeros((1, D5), jnp.float32),
        "w6": 0.001 * jax.random.normal(ks[4], (D6, D5), jnp.float32),
        "b6": jnp.zeros((1, D6), jnp.float32),
    }
    return params


def reference_forward(x, params):
    """Pure-JAX reference of the eval-mode PyTorch forward."""
    mu, log_sigma2 = params["sbp_mu"], params["sbp_log_sigma2"]
    log_alpha = jnp.clip(log_sigma2 - 2.0 * jnp.log(jnp.abs(mu) + 1e-8),
                         -10.0, 10.0)
    mult = mu * (log_alpha < 0.0).astype(jnp.float32)
    h = jnp.maximum(mult[None, :] * x, 0.0)
    h = jnp.maximum(h @ params["w3"].T + params["b3"], 0.0)
    h = jnp.maximum(h @ params["w4"].T + params["b4"], 0.0)
    h = jnp.maximum(h @ params["w5"].T + params["b5"], 0.0)
    return h @ params["w6"].T + params["b6"]


if __name__ == "__main__":
    key = jax.random.PRNGKey(0)
    pkey, xkey = jax.random.split(key)
    params = init_params(pkey)

    # One-time parameter preparation (eval-mode SBP mask, W transposes, K-pad).
    kparams = prepare_params(params)
    kparams = jax.tree_util.tree_map(jax.block_until_ready, kparams)

    B = 8  # small batch; feature dims (17114 -> 256 -> 128 -> 32 -> 1) fixed by module
    x = jax.random.normal(xkey, (B, D_IN), jnp.float32)

    out = test_model_forward(x, kparams)
    out = jax.block_until_ready(out)

    ref = reference_forward(x, params)
    assert out.shape == (B, D6)
    assert jnp.allclose(out, ref, atol=1e-4, rtol=1e-4), "mismatch vs JAX reference"

    print("KERNEL_OK")
</pallas_src>

<mosaic_0001>
module attributes {stable_mosaic.version = 11 : i64} {
  func.func @_fused_kernel(%arg0: i32, %arg1: memref<8x4096xf32, #tpu.memory_space<vmem>>, %arg2: memref<1x4096xf32, #tpu.memory_space<vmem>>, %arg3: memref<4096x256xf32, #tpu.memory_space<vmem>>, %arg4: memref<1x256xf32, #tpu.memory_space<vmem>>, %arg5: memref<256x128xf32, #tpu.memory_space<vmem>>, %arg6: memref<1x128xf32, #tpu.memory_space<vmem>>, %arg7: memref<128x32xf32, #tpu.memory_space<vmem>>, %arg8: memref<1x32xf32, #tpu.memory_space<vmem>>, %arg9: memref<32x1xf32, #tpu.memory_space<vmem>>, %arg10: memref<1x1xf32, #tpu.memory_space<vmem>>, %arg11: memref<8x1xf32, #tpu.memory_space<vmem>>, %arg12: memref<8x256xf32, #tpu.memory_space<vmem>>) attributes {dimension_semantics = [#tpu.dimension_semantics<arbitrary>], iteration_bounds = array<i64: 5>, scalar_prefetch = 0 : i64, scratch_operands = 1 : i64, tpu.core_type = #tpu.core_type<tc>, window_params = [{transform_indices = @transform_0, window_bounds = array<i64: 8, 4096>}, {transform_indices = @transform_1, window_bounds = array<i64: 1, 4096>}, {transform_indices = @transform_2, window_bounds = array<i64: 4096, 256>}, {pipeline_mode = #tpu.pipeline_mode<synchronous>, transform_indices = @transform_3, window_bounds = array<i64: 1, 256>}, {pipeline_mode = #tpu.pipeline_mode<synchronous>, transform_indices = @transform_4, window_bounds = array<i64: 256, 128>}, {pipeline_mode = #tpu.pipeline_mode<synchronous>, transform_indices = @transform_5, window_bounds = array<i64: 1, 128>}, {pipeline_mode = #tpu.pipeline_mode<synchronous>, transform_indices = @transform_6, window_bounds = array<i64: 128, 32>}, {pipeline_mode = #tpu.pipeline_mode<synchronous>, transform_indices = @transform_7, window_bounds = array<i64: 1, 32>}, {pipeline_mode = #tpu.pipeline_mode<synchronous>, transform_indices = @transform_8, window_bounds = array<i64: 32, 1>}, {pipeline_mode = #tpu.pipeline_mode<synchronous>, transform_indices = @transform_9, window_bounds = array<i64: 1, 1>}, {pipeline_mode = #tpu.pipeline_mode<synchronous>, transform_indices = @transform_10, window_bounds = array<i64: 8, 1>}]} {
    %c0_i32 = arith.constant 0 : i32
    %0 = arith.cmpi eq, %arg0, %c0_i32 : i32
    %1 = arith.extui %0 : i1 to i32
    %c0_i32_0 = arith.constant 0 : i32
    %2 = arith.cmpi ne, %1, %c0_i32_0 : i32
    scf.if %2 {
      %cst_13 = arith.constant 0.000000e+00 : f32
      %25 = vector.broadcast %cst_13 : f32 to vector<8x256xf32>
      %c0_14 = arith.constant 0 : index
      %c0_15 = arith.constant 0 : index
      %26 = vector.load %arg12[%c0_14, %c0_15] : memref<8x256xf32, #tpu.memory_space<vmem>>, vector<8x256xf32>
      tpu.vector_store %arg12[%c0_14, %c0_15], %25 {strides = array<i32>} : memref<8x256xf32, #tpu.memory_space<vmem>>, vector<8x256xf32>,
    } else {
    }
    %c0 = arith.constant 0 : index
    %c0_1 = arith.constant 0 : index
    %3 = vector.load %arg1[%c0, %c0_1] : memref<8x4096xf32, #tpu.memory_space<vmem>>, vector<8x4096xf32>
    %c0_2 = arith.constant 0 : index
    %c0_3 = arith.constant 0 : index
    %4 = vector.load %arg2[%c0_2, %c0_3] : memref<1x4096xf32, #tpu.memory_space<vmem>>, vector<1x4096xf32>
    %5 = vector.broadcast %4 : vector<1x4096xf32> to vector<8x4096xf32>
    %6 = arith.mulf %3, %5 : vector<8x4096xf32>
    %cst = arith.constant 0.000000e+00 : f32
    %7 = vector.broadcast %cst : f32 to vector<8x4096xf32>
    %8 = arith.maximumf %6, %7 : vector<8x4096xf32>
    %c4096_i32 = arith.constant 4096 : i32
    %9 = arith.muli %arg0, %c4096_i32 : i32
    %10 = tpu.iota {dimensions = array<i32: 1>} : vector<8x4096xi32>
    %11 = vector.broadcast %9 : i32 to vector<8x4096xi32>
    %12 = arith.addi %11, %10 : vector<8x4096xi32>
    %c17114_i32 = arith.constant 17114 : i32
    %13 = vector.broadcast %c17114_i32 : i32 to vector<8x4096xi32>
    %14 = arith.cmpi slt, %12, %13 : vector<8x4096xi32>
    %cst_4 = arith.constant 0.000000e+00 : f32
    %15 = vector.broadcast %cst_4 : f32 to vector<8x4096xf32>
    %16 = arith.select %14, %8, %15 : vector<8x4096xi1>, vector<8x4096xf32>
    %c0_5 = arith.constant 0 : index
    %c0_6 = arith.constant 0 : index
    %17 = vector.load %arg12[%c0_5, %c0_6] : memref<8x256xf32, #tpu.memory_space<vmem>>, vector<8x256xf32>
    %c0_7 = arith.constant 0 : index
    %c0_8 = arith.constant 0 : index
    %18 = vector.load %arg3[%c0_7, %c0_8] : memref<4096x256xf32, #tpu.memory_space<vmem>>, vector<4096x256xf32>
    %cst_9 = arith.constant dense<0.000000e+00> : vector<8x256xf32>
    %19 = tpu.matmul %16, %18, %cst_9 {dimension_numbers = #tpu.dot_dimension_numbers<[1], [0], [0], [1], [0, 0, 1, 1], [], []>} : vector<8x4096xf32>, vector<4096x256xf32>, vector<8x256xf32> -> vector<8x256xf32>
    %20 = arith.addf %17, %19 : vector<8x256xf32>
    %c0_10 = arith.constant 0 : index
    %c0_11 = arith.constant 0 : index
    %21 = vector.load %arg12[%c0_10, %c0_11] : memref<8x256xf32, #tpu.memory_space<vmem>>, vector<8x256xf32>
    tpu.vector_store %arg12[%c0_10, %c0_11], %20 {strides = array<i32>} : memref<8x256xf32, #tpu.memory_space<vmem>>, vector<8x256xf32>,
    %c4_i32 = arith.constant 4 : i32
    %22 = arith.cmpi eq, %arg0, %c4_i32 : i32
    %23 = arith.extui %22 : i1 to i32
    %c0_i32_12 = arith.constant 0 : i32
    %24 = arith.cmpi ne, %23, %c0_i32_12 : i32
    scf.if %24 {
      %c0_13 = arith.constant 0 : index
      %c0_14 = arith.constant 0 : index
      %25 = vector.load %arg12[%c0_13, %c0_14] : memref<8x256xf32, #tpu.memory_space<vmem>>, vector<8x256xf32>
      %c0_15 = arith.constant 0 : index
      %c0_16 = arith.constant 0 : index
      %26 = vector.load %arg4[%c0_15, %c0_16] : memref<1x256xf32, #tpu.memory_space<vmem>>, vector<1x256xf32>
      %27 = vector.broadcast %26 : vector<1x256xf32> to vector<8x256xf32>
      %28 = arith.addf %25, %27 : vector<8x256xf32>
      %cst_17 = arith.constant 0.000000e+00 : f32
      %29 = vector.broadcast %cst_17 : f32 to vector<8x256xf32>
      %30 = arith.maximumf %28, %29 : vector<8x256xf32>
      %c0_18 = arith.constant 0 : index
      %c0_19 = arith.constant 0 : index
      %31 = vector.load %arg5[%c0_18, %c0_19] : memref<256x128xf32, #tpu.memory_space<vmem>>, vector<256x128xf32>
      %cst_20 = arith.constant dense<0.000000e+00> : vector<8x128xf32>
      %32 = tpu.matmul %30, %31, %cst_20 {dimension_numbers = #tpu.dot_dimension_numbers<[1], [0], [0], [1], [0, 0, 1, 1], [], []>} : vector<8x256xf32>, vector<256x128xf32>, vector<8x128xf32> -> vector<8x128xf32>
      %c0_21 = arith.constant 0 : index
      %c0_22 = arith.constant 0 : index
      %33 = vector.load %arg6[%c0_21, %c0_22] : memref<1x128xf32, #tpu.memory_space<vmem>>, vector<1x128xf32>
      %34 = vector.broadcast %33 : vector<1x128xf32> to vector<8x128xf32>
      %35 = arith.addf %32, %34 : vector<8x128xf32>
      %cst_23 = arith.constant 0.000000e+00 : f32
      %36 = vector.broadcast %cst_23 : f32 to vector<8x128xf32>
      %37 = arith.maximumf %35, %36 : vector<8x128xf32>
      %c0_24 = arith.constant 0 : index
      %c0_25 = arith.constant 0 : index
      %38 = vector.load %arg7[%c0_24, %c0_25] : memref<128x32xf32, #tpu.memory_space<vmem>>, vector<128x32xf32>
      %cst_26 = arith.constant dense<0.000000e+00> : vector<8x32xf32>
      %39 = tpu.matmul %37, %38, %cst_26 {dimension_numbers = #tpu.dot_dimension_numbers<[1], [0], [0], [1], [0, 0, 1, 1], [], []>} : vector<8x128xf32>, vector<128x32xf32>, vector<8x32xf32> -> vector<8x32xf32>
      %c0_27 = arith.constant 0 : index
      %c0_28 = arith.constant 0 : index
      %40 = vector.load %arg8[%c0_27, %c0_28] : memref<1x32xf32, #tpu.memory_space<vmem>>, vector<1x32xf32>
      %41 = vector.broadcast %40 : vector<1x32xf32> to vector<8x32xf32>
      %42 = arith.addf %39, %41 : vector<8x32xf32>
      %cst_29 = arith.constant 0.000000e+00 : f32
      %43 = vector.broadcast %cst_29 : f32 to vector<8x32xf32>
      %44 = arith.maximumf %42, %43 : vector<8x32xf32>
      %c0_30 = arith.constant 0 : index
      %c0_31 = arith.constant 0 : index
      %45 = vector.load %arg9[%c0_30, %c0_31] : memref<32x1xf32, #tpu.memory_space<vmem>>, vector<32x1xf32>
      %cst_32 = arith.constant dense<0.000000e+00> : vector<8x1xf32>
      %46 = tpu.matmul %44, %45, %cst_32 {dimension_numbers = #tpu.dot_dimension_numbers<[1], [0], [0], [1], [0, 0, 1, 1], [], []>} : vector<8x32xf32>, vector<32x1xf32>, vector<8x1xf32> -> vector<8x1xf32>
      %c0_33 = arith.constant 0 : index
      %c0_34 = arith.constant 0 : index
      %47 = vector.load %arg10[%c0_33, %c0_34] : memref<1x1xf32, #tpu.memory_space<vmem>>, vector<1x1xf32>
      %48 = vector.broadcast %47 : vector<1x1xf32> to vector<8x1xf32>
      %49 = arith.addf %46, %48 : vector<8x1xf32>
      %c0_35 = arith.constant 0 : index
      %c0_36 = arith.constant 0 : index
      %50 = vector.load %arg11[%c0_35, %c0_36] : memref<8x1xf32, #tpu.memory_space<vmem>>, vector<8x1xf32>
      tpu.vector_store %arg11[%c0_35, %c0_36], %49 {strides = array<i32>} : memref<8x1xf32, #tpu.memory_space<vmem>>, vector<8x1xf32>,
    } else {
    }
    return
  }
  func.func @transform_0(%arg0: i32) -> (i32, i32) {
    %c0_i32 = arith.constant 0 : i32
    %c0_i32_0 = arith.constant 0 : i32
    return %c0_i32, %arg0 : i32, i32
  }
  func.func @transform_1(%arg0: i32) -> (i32, i32) {
    %c0_i32 = arith.constant 0 : i32
    %c0_i32_0 = arith.constant 0 : i32
    return %c0_i32, %arg0 : i32, i32
  }
  func.func @transform_2(%arg0: i32) -> (i32, i32) {
    %c0_i32 = arith.constant 0 : i32
    %c0_i32_0 = arith.constant 0 : i32
    return %arg0, %c0_i32 : i32, i32
  }
  func.func @transform_3(%arg0: i32) -> (i32, i32) {
    %c0_i32 = arith.constant 0 : i32
    %c0_i32_0 = arith.constant 0 : i32
    %c0_i32_1 = arith.constant 0 : i32
    return %c0_i32, %c0_i32_0 : i32, i32
  }
  func.func @transform_4(%arg0: i32) -> (i32, i32) {
    %c0_i32 = arith.constant 0 : i32
    %c0_i32_0 = arith.constant 0 : i32
    %c0_i32_1 = arith.constant 0 : i32
    return %c0_i32, %c0_i32_0 : i32, i32
  }
  func.func @transform_5(%arg0: i32) -> (i32, i32) {
    %c0_i32 = arith.constant 0 : i32
    %c0_i32_0 = arith.constant 0 : i32
    %c0_i32_1 = arith.constant 0 : i32
    return %c0_i32, %c0_i32_0 : i32, i32
  }
  func.func @transform_6(%arg0: i32) -> (i32, i32) {
    %c0_i32 = arith.constant 0 : i32
    %c0_i32_0 = arith.constant 0 : i32
    %c0_i32_1 = arith.constant 0 : i32
    return %c0_i32, %c0_i32_0 : i32, i32
  }
  func.func @transform_7(%arg0: i32) -> (i32, i32) {
    %c0_i32 = arith.constant 0 : i32
    %c0_i32_0 = arith.constant 0 : i32
    %c0_i32_1 = arith.constant 0 : i32
    return %c0_i32, %c0_i32_0 : i32, i32
  }
  func.func @transform_8(%arg0: i32) -> (i32, i32) {
    %c0_i32 = arith.constant 0 : i32
    %c0_i32_0 = arith.constant 0 : i32
    %c0_i32_1 = arith.constant 0 : i32
    return %c0_i32, %c0_i32_0 : i32, i32
  }
  func.func @transform_9(%arg0: i32) -> (i32, i32) {
    %c0_i32 = arith.constant 0 : i32
    %c0_i32_0 = arith.constant 0 : i32
    %c0_i32_1 = arith.constant 0 : i32
    return %c0_i32, %c0_i32_0 : i32, i32
  }
  func.func @transform_10(%arg0: i32) -> (i32, i32) {
    %c0_i32 = arith.constant 0 : i32
    %c0_i32_0 = arith.constant 0 : i32
    %c0_i32_1 = arith.constant 0 : i32
    return %c0_i32, %c0_i32_0 : i32, i32
  }
}

</mosaic_0001>

<bundles_post_ra>
// kernel: test_model_forward.1
= control target key start
LH: loop header
LB: loop body
LE: loop exit
PB: predicated region body
PF: predicated region fallthrough
CT: control target
= control target key end

     0   :  { %s6850_s0 = inlined_call_operand.hbm [shape: f32[8,17114], index: 0, kind: input, shape index: {}]   ;;  %s6851_s1 = inlined_call_operand.hbm [shape: f32[1,20480], index: 1, kind: input, shape index: {}]   ;;  %s6852_s2 = inlined_call_operand.hbm [shape: f32[20480,256], index: 2, kind: input, shape index: {}]   ;;  %s6853_s3 = inlined_call_operand.hbm [shape: f32[1,256], index: 3, kind: input, shape index: {}]   ;;  %s6854_s4 = inlined_call_operand.hbm [shape: f32[256,128], index: 4, kind: input, shape index: {}]   ;;  %s6855_s5 = inlined_call_operand.hbm [shape: f32[1,128], index: 5, kind: input, shape index: {}]   ;;  %s6856_s6 = inlined_call_operand.vmem [shape: f32[128,32], index: 6, kind: input, shape index: {}]   ;;  %s6857_s7 = inlined_call_operand.hbm [shape: f32[1,32], index: 7, kind: input, shape index: {}]   ;;  %s6858_s8 = inlined_call_operand.vmem [shape: f32[32,1], index: 8, kind: input, shape index: {}]   ;;  %s6859_s9 = inlined_call_operand.<no memory space> [shape: f32[1,1], index: 9, kind: input, shape index: {}]   ;;  %s6860_s10 = inlined_call_operand.vmem [shape: f32[8,1], index: 10, kind: output, shape index: {}]  }
   0x1   :  { %6867 = sst [smem:[#allocation21_spill]] %s6853_s3  ;;  %v15_v0 = vstv %s6859_s9 }
   0x2   :  { %6868 = sst [smem:[#allocation22_spill]] %s6855_s5  ;;  %16 = vst [vmem:[#allocation3] sm:$0x1] %v15_v0 }
   0x3   :  { %17 = vsyncpa [#allocation5], 0 }
   0x4   :  { %19 = vsyncpa [#allocation5 + $0x1], 0 }
   0x5   :  { %20 = vsyncpa [#allocation7], 0 }
   0x6   :  { %22 = vsyncpa [#allocation7 + $0x1], 0 }
   0x7   :  { %23 = vsyncpa [#allocation10], 0 }
   0x8   :  { %24 = vsyncpa [#allocation13], 0  ;;  %s5208_s15 = smov 0   ;;  %s5210_s16 = smov 0  }
   0x9   :  { %s5212_s17 = smov 0   ;;  %s5214_s18 = smov 0  }
   0xa LB: > { %s5227_s9 = sadd.s32 4294967295, %s5133_s18   ;;  %s5230_s19 = sadd.s32 1, %s5133_s18   ;;  %s5133_s18 = sphi %s5214_s18, %s6887_s18   ;;  %s5129_s17 = sphi %s5212_s17, %s6891_s17   ;;  %s5125_s16 = sphi %s5210_s16, %s6890_s16   ;;  %s5121_s15 = sphi %s5208_s15, %s6889_s15  }
   0xb   : > { %6869 = sst [smem:[#allocation19_spill]] %s5230_s19  ;;  %s34_s20 = ssub.s32 %s5133_s18, %s5230_s19 }
   0xc   : > { %s37_s21 = sadd.s32 1, %s5129_s17  ;;  %p35_p0 = scmp.eq.s32.totalorder %s34_s20, 0 }
   0xd   : > { %p44_p1 = scmp.ne.s32.totalorder %s5129_s17, %s5125_s16  ;;  %p45_p2 = scmp.eq.s32.totalorder %s5133_s18, 0 }
   0xe   : > { %p50_p3 = scmp.ne.s32.totalorder %s5125_s16, %s5121_s15  ;;  %p6861_p5 = scmp.eq.s32.totalorder %s5227_s9, 0 }
   0xf   : > { %s5240_s22 = scalar_select %p35_p0, %s5129_s17, %s37_s21  }
  0x10   : > { %p5242_p4 = por %p45_p2, %p44_p1  ;;  %p3507_p6 = scmp.ge.s32.totalorder %s5133_s18, 1 }
  0x11   : > { %6870 = sst [smem:[#allocation20_spill]] %s5240_s22  ;;  %p281_p7 = scmp.lt.s32.totalorder %s5133_s18, 6 }
  0x12   : > { %s6871_s23 = scalar_select %p5242_p4, 1, 0 }
  0x13   : > { %p5251_p8 = por %p6861_p5, %p50_p3  ;;  %p5256_p10 = pnand %p3507_p6, %p281_p7 }
  0x14   : > { %s5135_s26 = smov [#allocation9]   ;;  %s5136_s28 = smov [#allocation12]  }
  0x15   : > { %s6872_s24 = scalar_select %p5251_p8, 1, 0 }
  0x16   : > { %s6873_s25 = scalar_select %p5256_p10, 1, 0 }
  0x17   : > { %s294_s27 = sshll.u32 %s5135_s26, 4  ;;  %p4820_p11 = pneg %p5256_p10  ;;  %s295_s27 = int_to_ptr.vmem [resolvable:$true] %s294_s27 }
  0x18   : > { %s318_s29 = sshll.u32 %s5136_s28, 4  ;;  %s5137_s11 = smov [#allocation11]   ;;  %s5268_s29 = int_to_ptr.vmem [resolvable:$true] %s318_s29 }
  0x19   : > { %p5264_p12 = pnand %p4820_p11, %p6861_p5  ;;  %s304_s12 = sshll.u32 %s5137_s11, 4  ;;  %s5270_s12 = int_to_ptr.vmem [resolvable:$true] %s304_s12 }
  0x1a   : > { %s6875_s3 = sld [smem:[#allocation21_spill]] }
  0x1b   : > { %p5280_p0 = pneg %p5264_p12 }
  0x20   : > { %s4891_s15 = scalar_lea.hbm %s6875_s3, 32 }
  0x21   : > { %p4892_p13 = scmp.ne.s32.totalorder %s6875_s3, %s4891_s15  ;;  %p4898_p3 = scmp.lt.u32.totalorder %s4891_s15, %s6875_s3 }
  0x23   : > { %p4894_p1 = pnand %p5280_p0, %p4892_p13 }
  0x25   : > { %p4895_p2 = pneg %p4894_p1 }
  0x27   : > { %p4900_p6 = pnand %p4898_p3, %p4895_p2 }
  0x29   : > { %4903 = shalt.err (!%p4900_p6)
}
  0x2a   : > { %s4904_s13 = scalar_lea.vmem %s295_s27, 32  ;;  %p4912_p5 = scmp.lt.s32.totalorder %s295_s27, %s295_s27 }
  0x2b   : > { %p4905_p7 = scmp.ne.s32.totalorder %s295_s27, %s4904_s13  ;;  %p4913_p8 = scmp.lt.s32.totalorder %s4904_s13, %s4904_s13 }
  0x2d   : > { %p4907_p11 = pnand %p4905_p7, %p5280_p0  ;;  %p4914_p10 = por %p4913_p8, %p4912_p5 }
  0x2f   : > { %p4908_p9 = pneg %p4907_p11 }
  0x31   : > { %p4915_p4 = pnand %p4914_p10, %p4908_p9 }
  0x33   : > { %4918 = shalt.err (!%p4915_p4)
}
  0x34   : > { %4823 = dma.hbm_to_vmem [thread:$0]  (!%p5264_p12), %s6875_s3, 32, %s295_s27, [#allocation10]  }
  0x35   : > { %s6877_s5 = sld [smem:[#allocation22_spill]] }
  0x3b   : > { %s4919_s28 = scalar_lea.hbm %s6877_s5, 16 }
  0x3c   : > { %p4920_p13 = scmp.ne.s32.totalorder %s6877_s5, %s4919_s28  ;;  %p4926_p4 = scmp.lt.u32.totalorder %s4919_s28, %s6877_s5 }
  0x3e   : > { %p4922_p1 = pnand %p4920_p13, %p5280_p0 }
  0x40   : > { %p4923_p5 = pneg %p4922_p1 }
  0x42   : > { %p4928_p8 = pnand %p4926_p4, %p4923_p5 }
  0x44   : > { %4931 = shalt.err (!%p4928_p8)
}
  0x45   : > { %s4932_s27 = scalar_lea.vmem %s5268_s29, 16  ;;  %s4939_s22 = scalar_lea.vmem %s5268_s29, 32 }
  0x46   : > { %p4933_p9 = scmp.ne.s32.totalorder %s5268_s29, %s4932_s27  ;;  %p4940_p3 = scmp.lt.s32.totalorder %s5268_s29, %s5268_s29 }
  0x47   : > { %p4941_p6 = scmp.lt.s32.totalorder %s4939_s22, %s4932_s27 }
  0x48   : > { %p4935_p10 = pnand %p4933_p9, %p5280_p0 }
  0x49   : > { %p4942_p7 = por %p4941_p6, %p4940_p3 }
  0x4a   : > { %p4936_p2 = pneg %p4935_p10 }
  0x4c   : > { %p4943_p11 = pnand %p4942_p7, %p4936_p2 }
  0x4e   : > { %4946 = shalt.err (!%p4943_p11)
}
  0x4f   : > { %4829 = dma.hbm_to_vmem [thread:$0]  (!%p5264_p12), %s6877_s5, 16, %s5268_s29, [#allocation13]  }
  0x50   : > { %s4947_s21 = scalar_lea.hbm %s6854_s4, 4096 }
  0x51   : > { %p4948_p13 = scmp.ne.s32.totalorder %s6854_s4, %s4947_s21  ;;  %p4954_p4 = scmp.lt.u32.totalorder %s4947_s21, %s6854_s4 }
  0x53   : > { %p4950_p1 = pnand %p4948_p13, %p5280_p0 }
  0x55   : > { %p4951_p5 = pneg %p4950_p1 }
  0x57   : > { %p4956_p8 = pnand %p4954_p4, %p4951_p5 }
  0x59   : > { %4959 = shalt.err (!%p4956_p8)
}
  0x5a   : > { %s4960_s29 = scalar_lea.vmem %s5270_s12, 4096  ;;  %p4968_p3 = scmp.lt.s32.totalorder %s5270_s12, %s5270_s12 }
  0x5b   : > { %p4961_p9 = scmp.ne.s32.totalorder %s5270_s12, %s4960_s29  ;;  %p4969_p6 = scmp.lt.s32.totalorder %s4960_s29, %s4960_s29 }
  0x5d   : > { %p4963_p10 = pnand %p4961_p9, %p5280_p0  ;;  %p4970_p7 = por %p4969_p6, %p4968_p3 }
  0x5f   : > { %p4964_p2 = pneg %p4963_p10 }
  0x61   : > { %p4971_p11 = pnand %p4970_p7, %p4964_p2 }
  0x63   : > { %4974 = shalt.err (!%p4971_p11)
}
  0x64   : > { %s5138_s22 = smov 128   ;;  %s5139_s19 = smov 8  }
  0x65   : > { %4826 = dma.hbm_to_vmem [thread:$0]  (!%p5264_p12), %s6854_s4, 4096, %s5270_s12, [#allocation10], %s5138_s22, %s5138_s22, %s5139_s19  }
  0x66   : > { %s5140_s15 = smov [#allocation14]   ;;  %s4975_s13 = scalar_lea.hbm %s6857_s7, 16 }
  0x67   : > { %s332_s21 = sshll.u32 %s5140_s15, 4  ;;  %p4976_p13 = scmp.ne.s32.totalorder %s6857_s7, %s4975_s13  ;;  %s333_s21 = int_to_ptr.vmem [resolvable:$true] %s332_s21 }
  0x68   : > { %p4982_p4 = scmp.lt.u32.totalorder %s4975_s13, %s6857_s7 }
  0x69   : > { %p4978_p1 = pnand %p4976_p13, %p5280_p0 }
  0x6b   : > { %p4979_p5 = pneg %p4978_p1 }
  0x6d   : > { %p4984_p8 = pnand %p4982_p4, %p4979_p5 }
  0x6f   : > { %4987 = shalt.err (!%p4984_p8)
}
  0x70   : > { %s4988_s12 = scalar_lea.vmem %s333_s21, 16  ;;  %s4995_s22 = scalar_lea.vmem %s333_s21, 32 }
  0x71   : > { %p4989_p9 = scmp.ne.s32.totalorder %s333_s21, %s4988_s12  ;;  %p4996_p3 = scmp.lt.s32.totalorder %s333_s21, %s333_s21 }
  0x72   : > { %p4997_p6 = scmp.lt.s32.totalorder %s4995_s22, %s4988_s12 }
  0x73   : > { %p4991_p10 = pnand %p4989_p9, %p5280_p0 }
  0x74   : > { %p4998_p7 = por %p4997_p6, %p4996_p3 }
  0x75   : > { %p4992_p2 = pneg %p4991_p10 }
  0x77   : > { %p4999_p11 = pnand %p4998_p7, %p4992_p2 }
  0x79   : > { %5002 = shalt.err (!%p4999_p11)
}
  0x7a   : > { %4832 = dma.hbm_to_vmem [thread:$0]  (!%p5264_p12), %s6857_s7, 16, %s333_s21, [#allocation13]  }
  0x7b   : > { %p3512_p13 = scmp.ge.s32.totalorder %s5133_s18, 5 }
  0x7c   : > { %p6878_p1 = scmp.ne.s32.totalorder (!%p3512_p13), %s6871_s23, 0 }
  0x7d   : > { %345 = sbr.rel (%p3512_p13) target bundleno = 218 (0xda), region = 44 }
  0x84   : > { %348 = sbr.rel (!%p6878_p1) target bundleno = 166 (0xa6), region = 48  ;;  %s349_s3 = sand.u32 (%p6878_p1), 1, %s5129_s17  }
  0x85   : > { %s3514_s5 = sshll.u32 (%p6878_p1), %s5133_s18, 5  ;;  %s3513_s26 = sshll.u32 (%p6878_p1), %s349_s3, 8 }
  0x86   : > { %s355_s20 = ssub.s32 (%p6878_p1), 134, %s3514_s5  ;;  %s5369_s28 = scalar_lea.sflag (%p6878_p1), [#allocation5], %s349_s3 }
  0x87   : > { %p356_p0 = scmp.lt.s32.totalorder (%p6878_p1), %s355_s20, 32  ;;  %s353_s21 = scalar_lea.vmem (%p6878_p1), [#allocation4], %s3513_s26 }
  0x8b   : > { %s6893_s20 = smov (!%p356_p0, %s355_s20), 32 }
  0x8c   : > { %s5366_s15 = sshll.u32 %s6893_s20, 7 }
  0x8d   : > { %s360_s30 = ssub.s32 4096, %s5366_s15 }
  0x8e   : > { %361 = vsyncadd %s5369_s28, %s360_s30  ;;  %p3516_p12 = scmp.ne.s32.totalorder %s5366_s15, 0  ;;  %s3576_s11 = sshll.u32 %s5133_s18, 12 }
  0x8f   : > { %s5377_s29 = scalar_lea.hbm %s6850_s0, %s3576_s11  ;;  %s367_s12 = sshll.u32 %s353_s21, 4  ;;  %s368_s12 = int_to_ptr.vmem [resolvable:$true] %s367_s12 }
  0x90   : > { %s5003_s22 = scalar_lea.hbm %s5377_s29, %s5366_s15  ;;  %s5007_s3 = scalar_lea.hbm %s6850_s0, 17152 }
  0x91   : > { %p5004_p5 = scmp.ne.s32.totalorder %s5377_s29, %s5003_s22  ;;  %p5008_p9 = scmp.lt.u32.totalorder %s5377_s29, %s6850_s0 }
  0x92   : > { %p5009_p10 = scmp.lt.u32.totalorder %s5007_s3, %s5003_s22  ;;  %p5011_p3 = scmp.lt.u32.totalorder %s5003_s22, %s5377_s29 }
  0x93   : > { %p5005_p4 = pnand %p5004_p5, %p3516_p12 }
  0x94   : > { %p5010_p2 = por %p5009_p10, %p5008_p9 }
  0x95   : > { %p5006_p8 = pneg %p5005_p4 }
  0x96   : > { %p5012_p6 = por %p5011_p3, %p5010_p2 }
  0x98   : > { %p5013_p7 = pnand %p5012_p6, %p5006_p8 }
  0x9a   : > { %5016 = shalt.err (!%p5013_p7)
}
  0x9b   : > { %s5017_s20 = scalar_lea.vmem %s368_s12, %s5366_s15  ;;  %s5141_s30 = smov [#allocation4]  }
  0x9c   : > { %p5018_p11 = scmp.ne.s32.totalorder %s368_s12, %s5017_s20  ;;  %s5021_s21 = sshll.u32 %s5141_s30, 4  ;;  %s5022_s21 = int_to_ptr.vmem [resolvable:$false] %s5021_s21 }
  0x9d   : > { %s5023_s11 = scalar_lea.vmem %s5022_s21, 8192  ;;  %p5024_p0 = scmp.lt.s32.totalorder %s368_s12, %s5022_s21 }
  0x9e   : > { %p5019_p13 = pnand %p5018_p11, %p3516_p12  ;;  %p5025_p5 = scmp.lt.s32.totalorder %s5023_s11, %s5017_s20 }
  0xa0   : > { %p5020_p1 = pneg %p5019_p13  ;;  %p5026_p4 = por %p5025_p5, %p5024_p0 }
  0xa2   : > { %p5027_p9 = pnand %p5026_p4, %p5020_p1 }
  0xa4   : > { %5030 = shalt.err (!%p5027_p9)
}
  0xa5   : > { %370 = dma.hbm_to_vmem [thread:$0]  (%p3516_p12), %s5377_s29, %s5366_s15, %s368_s12, %s5369_s28  }
  0xa6 PF: > { %s374_s13 = sand.u32 1, %s5133_s18   ;;  %s376_s27 = sand.u32 1, %s5129_s17  }
  0xa7   : > { %s3520_s22 = sshll.u32 %s376_s27, 5  ;;  %s3577_s19 = sshll.u32 %s5133_s18, 9 }
  0xa8   : > { %s5406_s5 = scalar_lea.hbm %s6851_s1, %s3577_s19  ;;  %s378_s26 = scalar_lea.vmem [#allocation6], %s3520_s22 }
  0xa9   : > { %s386_s15 = sshll.u32 %s378_s26, 4  ;;  %s5410_s28 = sshll.u32 %s376_s27, 13  ;;  %s5408_s15 = int_to_ptr.vmem [resolvable:$true] %s386_s15 }
  0xaa   : > { %s5412_s29 = scalar_lea.sflag [#allocation7], %s374_s13  ;;  %s5031_s12 = scalar_lea.hbm %s5406_s5, 512 }
  0xab   : > { %p5032_p12 = scmp.ne.s32.totalorder %s5406_s5, %s5031_s12  ;;  %p6879_p8 = scmp.ne.s32.totalorder %s6871_s23, 0 }
  0xac   : > { %s5035_s21 = scalar_lea.hbm %s6851_s1, 2560  ;;  %p5036_p3 = scmp.lt.u32.totalorder %s5406_s5, %s6851_s1 }
  0xad   : > { %p5033_p10 = pnand %p5032_p12, %p6879_p8  ;;  %p5037_p6 = scmp.lt.u32.totalorder %s5035_s21, %s5031_s12 }
  0xae   : > { %p5039_p11 = scmp.lt.u32.totalorder %s5031_s12, %s5406_s5 }
  0xaf   : > { %p5034_p2 = pneg %p5033_p10  ;;  %p5038_p7 = por %p5037_p6, %p5036_p3 }
  0xb1   : > { %p5040_p13 = por %p5039_p11, %p5038_p7 }
  0xb3   : > { %p5041_p1 = pnand %p5040_p13, %p5034_p2 }
  0xb5   : > { %5044 = shalt.err (!%p5041_p1)
}
  0xb6   : > { %s5045_s13 = scalar_lea.vmem %s5408_s15, 512  ;;  %s5142_s27 = smov [#allocation6]  }
  0xb7   : > { %p5046_p0 = scmp.ne.s32.totalorder %s5408_s15, %s5045_s13  ;;  %s5049_s22 = sshll.u32 %s5142_s27, 4  ;;  %s5050_s22 = int_to_ptr.vmem [resolvable:$false] %s5049_s22 }
  0xb8   : > { %s5051_s14 = scalar_lea.vmem %s5050_s22, 1024  ;;  %p5052_p9 = scmp.lt.s32.totalorder %s5408_s15, %s5050_s22 }
  0xb9   : > { %p5047_p5 = pnand %p5046_p0, %p6879_p8  ;;  %p5053_p12 = scmp.lt.s32.totalorder %s5051_s14, %s5045_s13 }
  0xbb   : > { %p5048_p4 = pneg %p5047_p5  ;;  %p5054_p10 = por %p5053_p12, %p5052_p9 }
  0xbd   : > { %p5055_p3 = pnand %p5054_p10, %p5048_p4 }
  0xbf   : > { %5058 = shalt.err (!%p5055_p3)
}
  0xc0   : > { %4807 = dma.hbm_to_vmem [thread:$0]  (%p6879_p8), %s5406_s5, 512, %s5408_s15, %s5412_s29  }
  0xc1   : > { %s3579_s3 = sshll.u32 %s5133_s18, 17  ;;  %s397_s26 = scalar_lea.vmem [#allocation8], %s5410_s28 }
  0xc2   : > { %s405_s12 = sshll.u32 %s397_s26, 4  ;;  %s5441_s21 = scalar_lea.hbm %s6852_s2, %s3579_s3  ;;  %s5443_s12 = int_to_ptr.vmem [resolvable:$true] %s405_s12 }
  0xc3   : > { %s5059_s11 = scalar_lea.hbm %s5441_s21, 131072  ;;  %s5063_s15 = scalar_lea.hbm %s6852_s2, 655360 }
  0xc4   : > { %p5060_p2 = scmp.ne.s32.totalorder %s5441_s21, %s5059_s11  ;;  %p5064_p11 = scmp.lt.u32.totalorder %s5441_s21, %s6852_s2 }
  0xc5   : > { %p5065_p13 = scmp.lt.u32.totalorder %s5063_s15, %s5059_s11  ;;  %p5067_p0 = scmp.lt.u32.totalorder %s5059_s11, %s5441_s21 }
  0xc6   : > { %p5061_p6 = pnand %p5060_p2, %p6879_p8 }
  0xc7   : > { %p5066_p1 = por %p5065_p13, %p5064_p11 }
  0xc8   : > { %p5062_p7 = pneg %p5061_p6 }
  0xc9   : > { %p5068_p5 = por %p5067_p0, %p5066_p1 }
  0xcb   : > { %p5069_p4 = pnand %p5068_p5, %p5062_p7 }
  0xcd   : > { %5072 = shalt.err (!%p5069_p4)
}
  0xce   : > { %s5073_s13 = scalar_lea.vmem %s5443_s12, 131072  ;;  %s5143_s27 = smov [#allocation8]  }
  0xcf   : > { %p5074_p9 = scmp.ne.s32.totalorder %s5443_s12, %s5073_s13  ;;  %s5077_s22 = sshll.u32 %s5143_s27, 4  ;;  %s5078_s22 = int_to_ptr.vmem [resolvable:$false] %s5077_s22 }
  0xd0   : > { %s5079_s14 = scalar_lea.vmem %s5078_s22, 262144  ;;  %p5080_p3 = scmp.lt.s32.totalorder %s5443_s12, %s5078_s22 }
  0xd1   : > { %p5075_p12 = pnand %p5074_p9, %p6879_p8  ;;  %p5081_p2 = scmp.lt.s32.totalorder %s5079_s14, %s5073_s13 }
  0xd3   : > { %p5076_p10 = pneg %p5075_p12  ;;  %p5082_p6 = por %p5081_p2, %p5080_p3 }
  0xd5   : > { %p5083_p11 = pnand %p5082_p6, %p5076_p10 }
  0xd7   : > { %5086 = shalt.err (!%p5083_p11)
}
  0xd8   : > { %s5144_s3 = smov 256   ;;  %s5145_s26 = smov 16  }
  0xd9   : > { %4808 = dma.hbm_to_vmem [thread:$0]  (%p6879_p8), %s5441_s21, 131072, %s5443_s12, %s5412_s29, %s5144_s3, %s5144_s3, %s5145_s26  }
  0xda PF: > { %p6880_p7 = scmp.ne.s32.totalorder %s6873_s25, 0 }
  0xdb   : > { %s419_s20 = sand.u32 (!%p6880_p7), 1, %s5125_s16   ;;  %p6881_p13 = scmp.ne.s32.totalorder (!%p6880_p7), %s6872_s24, 0 }
  0xdc   : > { %417 = sbr.rel (%p6880_p7) target bundleno = 1643 (0x66b), region = 60  ;;  %s3528_s30 = sshll.u32 (!%p6880_p7), %s419_s20, 8 }
  0xdd   : > { %s420_s11 = scalar_lea.sflag (!%p6880_p7), [#allocation5], %s419_s20  ;;  %s5470_s5 = scalar_lea.vmem (!%p6880_p7), [#allocation4], %s3528_s30 }
  0xe3   : > { %5104 = dma.done.wait (%p6881_p13), %s420_s11, 4096  }
  0xe4   : > { %5106 = vsyncadd (%p6881_p13), %s420_s11, 4294963200  ;;  %s428_s23 = sand.u32 1, %s5227_s9   ;;  %s3529_s29 = sshll.u32 %s419_s20, 5 }
  0xe5   : > { %s429_s12 = scalar_lea.sflag [#allocation7], %s428_s23  ;;  %s5477_s21 = scalar_lea.vmem [#allocation6], %s3529_s29 }
  0xe6   : > { %5108 = dma.done.wait (%p6881_p13), %s429_s12, 131584  }
  0xe7   : > { %5110 = vsyncadd (%p6881_p13), %s429_s12, 4294835712  ;;  %s3530_s25 = sshll.u32 %s419_s20, 13  ;;  %p6882_p8 = scmp.eq.s32.totalorder %s5227_s9, 0 }
  0xe8   : > { %s5483_s18 = scalar_lea.vmem [#allocation8], %s3530_s25 }
  0xe9   : > { %5112 = dma.done.wait (%p6882_p8), [#allocation10], 4128   ;;  %p6883_p1 = pmov %p6882_p8 }
  0xeb   : > { %5114 = vsyncadd (%p6883_p1), [#allocation10], 4294963168  ;;  %p6884_p0 = pmov %p6883_p1 }
  0xed   : > { %5116 = dma.done.wait (%p6884_p0), [#allocation13], 32   ;;  %p6885_p5 = pmov %p6884_p0 }
  0xee   : > { %p6886_p4 = scmp.ne.s32.totalorder %s5227_s9, 0 }
  0xef   : > { %5118 = vsyncadd (%p6885_p5), [#allocation13], 4294967264  ;;  %v5146_v1 = vmov (!%p6886_p4), 0.0  }
  0xf0   : > { %509 = sbr.rel (%p6886_p4) target bundleno = 247 (0xf7), region = 92  ;;  %510 = vst [vmem:[#allocation2] sm:$0xff] (!%p6886_p4), %v5146_v1  ;;  %511 = vst [vmem:[#allocation2 + $0x8] sm:$0xff] (!%p6886_p4), %v5146_v1 }
  0xf7 PF: > { %v910_v2 = vld [vmem:[%s5483_s18 + $0x8] sm:$0xff]  ;;  %v912_v3 = vld [vmem:[%s5483_s18 + $0x18] sm:$0xff]  ;;  %v909_v7 = vld [vmem:[%s5483_s18] sm:$0xff]  ;;  %s3536_s24 = sshll.u32 %s5227_s9, 12  ;;  %p3569_p9 = scmp.ne.s32.totalorder %s5227_s9, 4 }
  0xf8   : > { %v1422_v4 = vld [vmem:[%s5483_s18 + $0x1008] sm:$0xff]  ;;  %v3683_v5 = vpack.c.bf16 %v912_v3, %v910_v2  ;;  %v1424_v6 = vld [vmem:[%s5483_s18 + $0x1018] sm:$0xff]  ;;  %v911_v8 = vld [vmem:[%s5483_s18 + $0x10] sm:$0xff] }
  0xf9   : > { %v4195_v9 = vpack.c.bf16 %v1424_v6, %v1422_v4  ;;  %v3685_v10 = vpack.c.bf16 %v911_v8, %v909_v7  ;;  %v1421_v11 = vld [vmem:[%s5483_s18 + $0x1000] sm:$0xff]  ;;  %v1423_v12 = vld [vmem:[%s5483_s18 + $0x1010] sm:$0xff]  ;;  %v914_v13 = vld [vmem:[%s5483_s18 + $0x28] sm:$0xff] }
  0xfa   : > { %3684 = vmatprep.subr.bf16.mxu1 %v3683_v5  ;;  %v4197_v14 = vpack.c.bf16 %v1423_v12, %v1421_v11  ;;  %v916_v15 = vld [vmem:[%s5483_s18 + $0x38] sm:$0xff]  ;;  %v1426_v16 = vld [vmem:[%s5483_s18 + $0x1028] sm:$0xff]  ;;  %v913_v20 = vld [vmem:[%s5483_s18 + $0x20] sm:$0xff] }
  0xfb   : > { %v1428_v17 = vld [vmem:[%s5483_s18 + $0x1038] sm:$0xff]  ;;  %4196 = vmatprep.subr.bf16.mxu0 %v4195_v9  ;;  %3686 = vmatpush1.bf16.msra.mxu1 %v3685_v10  ;;  %v3687_v18 = vpack.c.bf16 %v916_v15, %v914_v13  ;;  %v915_v21 = vld [vmem:[%s5483_s18 + $0x30] sm:$0xff]  ;;  %v1425_v22 = vld [vmem:[%s5483_s18 + $0x1020] sm:$0xff] }
  0xfc   : > { %v4199_v19 = vpack.c.bf16 %v1428_v17, %v1426_v16  ;;  %4198 = vmatpush1.bf16.msra.mxu0 %v4197_v14  ;;  %v3689_v23 = vpack.c.bf16 %v915_v21, %v913_v20  ;;  %v1427_v24 = vld [vmem:[%s5483_s18 + $0x1030] sm:$0xff]  ;;  %v918_v25 = vld [vmem:[%s5483_s18 + $0x48] sm:$0xff]  ;;  %v920_v26 = vld [vmem:[%s5483_s18 + $0x58] sm:$0xff] }
  0xfd   : > { %3688 = vmatprep.subr.bf16.mxu1 %v3687_v18  ;;  %v4201_v27 = vpack.c.bf16 %v1427_v24, %v1425_v22  ;;  %v3691_v28 = vpack.c.bf16 %v920_v26, %v918_v25  ;;  %v1430_v29 = vld [vmem:[%s5483_s18 + $0x1048] sm:$0xff]  ;;  %v1432_v30 = vld [vmem:[%s5483_s18 + $0x1058] sm:$0xff]  ;;  %v917_v31 = vld [vmem:[%s5483_s18 + $0x40] sm:$0xff] }
  0xfe   : > { %4200 = vmatprep.subr.bf16.mxu0 %v4199_v19  ;;  %v4203_v32 = vpack.c.bf16 %v1432_v30, %v1430_v29  ;;  %v919_v33 = vld [vmem:[%s5483_s18 + $0x50] sm:$0xff]  ;;  %v1429_v34 = vld [vmem:[%s5483_s18 + $0x1040] sm:$0xff]  ;;  %v922_v37 = vld [vmem:[%s5483_s18 + $0x68] sm:$0xff] }
  0xff   : > { %v1431_v35 = vld [vmem:[%s5483_s18 + $0x1050] sm:$0xff]  ;;  %3690 = vmatpush1.bf16.msra.mxu1 %v3689_v23  ;;  %v3693_v36 = vpack.c.bf16 %v919_v33, %v917_v31  ;;  %v924_v38 = vld [vmem:[%s5483_s18 + $0x78] sm:$0xff]  ;;  %v1434_v39 = vld [vmem:[%s5483_s18 + $0x1068] sm:$0xff] }
 0x100   : > { %4202 = vmatpush1.bf16.msra.mxu0 %v4201_v27  ;;  %3692 = vmatprep.subr.bf16.mxu1 %v3691_v28  ;;  %v4205_v40 = vpack.c.bf16 %v1431_v35, %v1429_v34  ;;  %v3695_v41 = vpack.c.bf16 %v924_v38, %v922_v37  ;;  %v1436_v42 = vld [vmem:[%s5483_s18 + $0x1078] sm:$0xff]  ;;  %v921_v43 = vld [vmem:[%s5483_s18 + $0x60] sm:$0xff]  ;;  %v923_v44 = vld [vmem:[%s5483_s18 + $0x70] sm:$0xff] }
 0x101   : > { %4204 = vmatprep.subr.bf16.mxu0 %v4203_v32  ;;  %v4207_v45 = vpack.c.bf16 %v1436_v42, %v1434_v39  ;;  %v1433_v46 = vld [vmem:[%s5483_s18 + $0x1060] sm:$0xff]  ;;  %v1435_v47 = vld [vmem:[%s5483_s18 + $0x1070] sm:$0xff]  ;;  %v926_v48 = vld [vmem:[%s5483_s18 + $0x88] sm:$0xff]  ;;  %v3697_v52 = vpack.c.bf16 %v923_v44, %v921_v43 }
 0x102   : > { %v928_v49 = vld [vmem:[%s5483_s18 + $0x98] sm:$0xff]  ;;  %v1438_v50 = vld [vmem:[%s5483_s18 + $0x1088] sm:$0xff]  ;;  %v4209_v53 = vpack.c.bf16 %v1435_v47, %v1433_v46  ;;  %v925_v55 = vld [vmem:[%s5483_s18 + $0x80] sm:$0xff] }
 0x103   : > { %v1440_v51 = vld [vmem:[%s5483_s18 + $0x1098] sm:$0xff]  ;;  %3694 = vmatpush1.bf16.msra.mxu1 %v3693_v36  ;;  %v3699_v54 = vpack.c.bf16 %v928_v49, %v926_v48  ;;  %v927_v56 = vld [vmem:[%s5483_s18 + $0x90] sm:$0xff]  ;;  %v1437_v57 = vld [vmem:[%s5483_s18 + $0x1080] sm:$0xff]  ;;  %v552_v49 = vlaneseq }
 0x104   : > { %4206 = vmatpush1.bf16.msra.mxu0 %v4205_v40  ;;  %3696 = vmatprep.subr.bf16.mxu1 %v3695_v41  ;;  %v4211_v58 = vpack.c.bf16 %v1440_v51, %v1438_v50  ;;  %v1439_v59 = vld [vmem:[%s5483_s18 + $0x1090] sm:$0xff]  ;;  %v930_v60 = vld [vmem:[%s5483_s18 + $0xa8] sm:$0xff]  ;;  %v932_v61 = vld [vmem:[%s5483_s18 + $0xb8] sm:$0xff]  ;;  %v3701_v0 = vpack.c.bf16 %v927_v56, %v925_v55 }
 0x105   : > { %4208 = vmatprep.subr.bf16.mxu0 %v4207_v45  ;;  %v1442_v62 = vld [vmem:[%s5483_s18 + $0x10a8] sm:$0xff]  ;;  %v1444_v63 = vld [vmem:[%s5483_s18 + $0x10b8] sm:$0xff]  ;;  %v4213_v1 = vpack.c.bf16 %v1439_v59, %v1437_v57  ;;  %v3703_v2 = vpack.c.bf16 %v932_v61, %v930_v60  ;;  %v929_v3 = vld [vmem:[%s5483_s18 + $0xa0] sm:$0xff]  ;;  %v5579_v61 = vand.u32 127, %v552_v49 }
 0x106   : > { %v931_v4 = vld [vmem:[%s5483_s18 + $0xb0] sm:$0xff]  ;;  %v1441_v5 = vld [vmem:[%s5483_s18 + $0x10a0] sm:$0xff]  ;;  %v4215_v6 = vpack.c.bf16 %v1444_v63, %v1442_v62  ;;  %v934_v8 = vld [vmem:[%s5483_s18 + $0xc8] sm:$0xff]  ;;  %v5581_v63 = vshrl.u32 %v552_v49, 7 }
 0x107   : > { %3698 = vmatpush1.bf16.msra.mxu1 %v3697_v52  ;;  %v1443_v7 = vld [vmem:[%s5483_s18 + $0x10b0] sm:$0xff]  ;;  %v936_v9 = vld [vmem:[%s5483_s18 + $0xd8] sm:$0xff]  ;;  %v1446_v10 = vld [vmem:[%s5483_s18 + $0x10c8] sm:$0xff]  ;;  %v3705_v12 = vpack.c.bf16 %v931_v4, %v929_v3 }
 0x108   : > { %4210 = vmatpush1.bf16.msra.mxu0 %v4209_v53  ;;  %3700 = vmatprep.subr.bf16.mxu1 %v3699_v54  ;;  %v1448_v11 = vld [vmem:[%s5483_s18 + $0x10d8] sm:$0xff]  ;;  %v4217_v13 = vpack.c.bf16 %v1443_v7, %v1441_v5  ;;  %v3707_v14 = vpack.c.bf16 %v936_v9, %v934_v8  ;;  %v933_v15 = vld [vmem:[%s5483_s18 + $0xc0] sm:$0xff]  ;;  %v935_v16 = vld [vmem:[%s5483_s18 + $0xd0] sm:$0xff] }
 0x109   : > { %4212 = vmatprep.subr.bf16.mxu0 %v4211_v58  ;;  %v1445_v17 = vld [vmem:[%s5483_s18 + $0x10c0] sm:$0xff]  ;;  %v4219_v18 = vpack.c.bf16 %v1448_v11, %v1446_v10  ;;  %v1447_v19 = vld [vmem:[%s5483_s18 + $0x10d0] sm:$0xff]  ;;  %v938_v20 = vld [vmem:[%s5483_s18 + $0xe8] sm:$0xff]  ;;  %v3709_v24 = vpack.c.bf16 %v935_v16, %v933_v15  ;;  %v779_v11 = vadd.s32 128, %v5579_v61  ;;  %v5597_v15 = vstv %s3536_s24 }
 0x10a   : > { %v940_v21 = vld [vmem:[%s5483_s18 + $0xf8] sm:$0xff]  ;;  %v1450_v22 = vld [vmem:[%s5483_s18 + $0x10e8] sm:$0xff]  ;;  %v4221_v25 = vpack.c.bf16 %v1447_v19, %v1445_v17  ;;  %v937_v27 = vld [vmem:[%s5483_s18 + $0xe0] sm:$0xff]  ;;  %v795_v16 = vadd.s32 2176, %v5579_v61 }
 0x10b   : > { %3702 = vmatpush1.bf16.msra.mxu1 %v3701_v0  ;;  %v1452_v23 = vld [vmem:[%s5483_s18 + $0x10f8] sm:$0xff]  ;;  %v3711_v26 = vpack.c.bf16 %v940_v21, %v938_v20  ;;  %v939_v28 = vld [vmem:[%s5483_s18 + $0xf0] sm:$0xff]  ;;  %v1449_v29 = vld [vmem:[%s5483_s18 + $0x10e0] sm:$0xff] }
 0x10c   : > { %4214 = vmatpush1.bf16.msra.mxu0 %v4213_v1  ;;  %3704 = vmatprep.subr.bf16.mxu1 %v3703_v2  ;;  %v4223_v30 = vpack.c.bf16 %v1452_v23, %v1450_v22  ;;  %v1451_v31 = vld [vmem:[%s5483_s18 + $0x10f0] sm:$0xff]  ;;  %v942_v32 = vld [vmem:[%s5483_s18 + $0x108] sm:$0xff]  ;;  %v944_v33 = vld [vmem:[%s5483_s18 + $0x118] sm:$0xff]  ;;  %v3713_v36 = vpack.c.bf16 %v939_v28, %v937_v27 }
 0x10d   : > { %4216 = vmatprep.subr.bf16.mxu0 %v4215_v6  ;;  %v1454_v34 = vld [vmem:[%s5483_s18 + $0x1108] sm:$0xff]  ;;  %v1456_v35 = vld [vmem:[%s5483_s18 + $0x1118] sm:$0xff]  ;;  %v4225_v37 = vpack.c.bf16 %v1451_v31, %v1449_v29  ;;  %v3715_v38 = vpack.c.bf16 %v944_v33, %v942_v32  ;;  %v941_v39 = vld [vmem:[%s5483_s18 + $0x100] sm:$0xff]  ;;  %v812_v29 = vadd.s32 %v5597_v15, %v779_v11 }
 0x10e   : > { %v943_v40 = vld [vmem:[%s5483_s18 + $0x110] sm:$0xff]  ;;  %v1453_v41 = vld [vmem:[%s5483_s18 + $0x1100] sm:$0xff]  ;;  %v4227_v42 = vpack.c.bf16 %v1456_v35, %v1454_v34  ;;  %v946_v44 = vld [vmem:[%s5483_s18 + $0x128] sm:$0xff]  ;;  %v828_v34 = vadd.s32 %v5597_v15, %v795_v16 }
 0x10f   : > { %3706 = vmatpush1.bf16.msra.mxu1 %v3705_v12  ;;  %v1455_v43 = vld [vmem:[%s5483_s18 + $0x1110] sm:$0xff]  ;;  %v948_v45 = vld [vmem:[%s5483_s18 + $0x138] sm:$0xff]  ;;  %v1458_v46 = vld [vmem:[%s5483_s18 + $0x1128] sm:$0xff]  ;;  %v3717_v48 = vpack.c.bf16 %v943_v40, %v941_v39  ;;  %vm844_vm0 = vcmp.lt.s32.totalorder %v812_v29, 17114 }
 0x110   : > { %4218 = vmatpush1.bf16.msra.mxu0 %v4217_v13  ;;  %3708 = vmatprep.subr.bf16.mxu1 %v3707_v14  ;;  %v1460_v47 = vld [vmem:[%s5483_s18 + $0x1138] sm:$0xff]  ;;  %v4229_v50 = vpack.c.bf16 %v1455_v43, %v1453_v41  ;;  %v3719_v51 = vpack.c.bf16 %v948_v45, %v946_v44  ;;  %v945_v52 = vld [vmem:[%s5483_s18 + $0x120] sm:$0xff]  ;;  %v947_v53 = vld [vmem:[%s5483_s18 + $0x130] sm:$0xff]  ;;  %v5595_v14 = vsub.s32 1, %v5581_v63  ;;  %vm860_vm1 = vcmp.lt.s32.totalorder %v828_v34, 17114 }
 0x111   : > { %4220 = vmatprep.subr.bf16.mxu0 %v4219_v18  ;;  %v1457_v54 = vld [vmem:[%s5483_s18 + $0x1120] sm:$0xff]  ;;  %v4231_v55 = vpack.c.bf16 %v1460_v47, %v1458_v46  ;;  %v1459_v56 = vld [vmem:[%s5483_s18 + $0x1130] sm:$0xff]  ;;  %v950_v57 = vld [vmem:[%s5483_s18 + $0x148] sm:$0xff]  ;;  %v3721_v62 = vpack.c.bf16 %v947_v53, %v945_v52 }
 0x112   : > { %v952_v58 = vld [vmem:[%s5483_s18 + $0x158] sm:$0xff]  ;;  %v1462_v59 = vld [vmem:[%s5483_s18 + $0x1148] sm:$0xff]  ;;  %v4233_v0 = vpack.c.bf16 %v1459_v56, %v1457_v54  ;;  %v949_v2 = vld [vmem:[%s5483_s18 + $0x140] sm:$0xff] }
 0x113   : > { %3710 = vmatpush1.bf16.msra.mxu1 %v3709_v24  ;;  %v1464_v60 = vld [vmem:[%s5483_s18 + $0x1158] sm:$0xff]  ;;  %v3723_v1 = vpack.c.bf16 %v952_v58, %v950_v57  ;;  %v951_v3 = vld [vmem:[%s5483_s18 + $0x150] sm:$0xff]  ;;  %v1461_v4 = vld [vmem:[%s5483_s18 + $0x1140] sm:$0xff] }
 0x114   : > { %4222 = vmatpush1.bf16.msra.mxu0 %v4221_v25  ;;  %3712 = vmatprep.subr.bf16.mxu1 %v3711_v26  ;;  %v4235_v5 = vpack.c.bf16 %v1464_v60, %v1462_v59  ;;  %v1463_v6 = vld [vmem:[%s5483_s18 + $0x1150] sm:$0xff]  ;;  %v954_v7 = vld [vmem:[%s5483_s18 + $0x168] sm:$0xff]  ;;  %v956_v8 = vld [vmem:[%s5483_s18 + $0x178] sm:$0xff]  ;;  %v3725_v12 = vpack.c.bf16 %v951_v3, %v949_v2 }
 0x115   : > { %4224 = vmatprep.subr.bf16.mxu0 %v4223_v30  ;;  %v1466_v9 = vld [vmem:[%s5483_s18 + $0x1168] sm:$0xff]  ;;  %v1468_v10 = vld [vmem:[%s5483_s18 + $0x1178] sm:$0xff]  ;;  %v953_v13 = vld [vmem:[%s5483_s18 + $0x160] sm:$0xff]  ;;  %v4237_v17 = vpack.c.bf16 %v1463_v6, %v1461_v4  ;;  %v3727_v18 = vpack.c.bf16 %v956_v8, %v954_v7 }
 0x116   : > { %v955_v19 = vld [vmem:[%s5483_s18 + $0x170] sm:$0xff]  ;;  %v1465_v20 = vld [vmem:[%s5483_s18 + $0x1160] sm:$0xff]  ;;  %v4239_v22 = vpack.c.bf16 %v1468_v10, %v1466_v9  ;;  %v958_v23 = vld [vmem:[%s5483_s18 + $0x188] sm:$0xff] }
 0x117   : > { %3714 = vmatpush1.bf16.msra.mxu1 %v3713_v36  ;;  %v1467_v21 = vld [vmem:[%s5483_s18 + $0x1170] sm:$0xff]  ;;  %v960_v24 = vld [vmem:[%s5483_s18 + $0x198] sm:$0xff]  ;;  %v1470_v25 = vld [vmem:[%s5483_s18 + $0x1188] sm:$0xff]  ;;  %v3729_v30 = vpack.c.bf16 %v955_v19, %v953_v13 }
 0x118   : > { %4226 = vmatpush1.bf16.msra.mxu0 %v4225_v37  ;;  %3716 = vmatprep.subr.bf16.mxu1 %v3715_v38  ;;  %v1472_v26 = vld [vmem:[%s5483_s18 + $0x1198] sm:$0xff]  ;;  %v513_v27 = vld [vmem:[%s5470_s5 + $0x8] sm:$0xff]  ;;  %v5609_v28 = vld [vmem:[%s5477_s21] sm:$0xff]  ;;  %v4241_v35 = vpack.c.bf16 %v1467_v21, %v1465_v20  ;;  %v3731_v36 = vpack.c.bf16 %v960_v24, %v958_v23 }
 0x119   : > { %4228 = vmatprep.subr.bf16.mxu0 %v4227_v42  ;;  %v559_v31 = vrot.slane %v5609_v28, %v5595_v14  ;;  %v529_v32 = vld [vmem:[%s5470_s5 + $0x88] sm:$0xff]  ;;  %v5616_v33 = vld [vmem:[%s5477_s21 + $0x10] sm:$0xff]  ;;  %v957_v37 = vld [vmem:[%s5483_s18 + $0x180] sm:$0xff]  ;;  %v4243_v41 = vpack.c.bf16 %v1472_v26, %v1470_v25  ;;  %v794_v26 = vadd.s32 2048, %v5579_v61 }
 0x11a   : > { %v959_v38 = vld [vmem:[%s5483_s18 + $0x190] sm:$0xff]  ;;  %v1469_v39 = vld [vmem:[%s5483_s18 + $0x1180] sm:$0xff]  ;;  %v623_v40 = vrot.slane %v5616_v33, %v5595_v14  ;;  %v962_v43 = vld [vmem:[%s5483_s18 + $0x1a8] sm:$0xff] }
 0x11b   : > { %3718 = vmatpush1.bf16.msra.mxu1 %v3717_v48  ;;  %v1471_v42 = vld [vmem:[%s5483_s18 + $0x1190] sm:$0xff]  ;;  %v964_v44 = vld [vmem:[%s5483_s18 + $0x1b8] sm:$0xff]  ;;  %v713_v45 = vmul.f32 %v559_v31, %v513_v27  ;;  %v1474_v46 = vld [vmem:[%s5483_s18 + $0x11a8] sm:$0xff]  ;;  %v3733_v49 = vpack.c.bf16 %v959_v38, %v957_v37  ;;  %v811_v37 = vadd.s32 %v5597_v15, %v5579_v61 }
 0x11c   : > { %4230 = vmatpush1.bf16.msra.mxu0 %v4229_v50  ;;  %3720 = vmatprep.subr.bf16.mxu1 %v3719_v51  ;;  %v1476_v47 = vld [vmem:[%s5483_s18 + $0x11b8] sm:$0xff]  ;;  %v729_v48 = vmul.f32 %v623_v40, %v529_v32  ;;  %v4245_v51 = vpack.c.bf16 %v1471_v42, %v1469_v39  ;;  %v3735_v52 = vpack.c.bf16 %v964_v44, %v962_v43  ;;  %v961_v53 = vld [vmem:[%s5483_s18 + $0x1a0] sm:$0xff]  ;;  %v963_v54 = vld [vmem:[%s5483_s18 + $0x1b0] sm:$0xff] }
 0x11d   : > { %4232 = vmatprep.subr.bf16.mxu0 %v4231_v55  ;;  %v745_v50 = vmax.f32 %v713_v45, 0.0  ;;  %v1473_v55 = vld [vmem:[%s5483_s18 + $0x11a0] sm:$0xff]  ;;  %v4247_v57 = vpack.c.bf16 %v1476_v47, %v1474_v46  ;;  %v1475_v58 = vld [vmem:[%s5483_s18 + $0x11b0] sm:$0xff]  ;;  %v966_v59 = vld [vmem:[%s5483_s18 + $0x1c8] sm:$0xff]  ;;  %v3737_v2 = vpack.c.bf16 %v963_v54, %v961_v53  ;;  %v827_v43 = vadd.s32 %v5597_v15, %v794_v26 }
 0x11e   : > { %v761_v56 = vmax.f32 %v729_v48, 0.0  ;;  %v968_v60 = vld [vmem:[%s5483_s18 + $0x1d8] sm:$0xff]  ;;  %v4249_v3 = vpack.c.bf16 %v1475_v58, %v1473_v55  ;;  %v967_v6 = vld [vmem:[%s5483_s18 + $0x1d0] sm:$0xff]  ;;  %v1477_v7 = vld [vmem:[%s5483_s18 + $0x11c0] sm:$0xff]  ;;  %vm843_vm2 = vcmp.lt.s32.totalorder %v811_v37, 17114 }
 0x11f   : > { %3722 = vmatpush1.bf16.msra.mxu1 %v3721_v62  ;;  %3537 = vmatprep.mubr.msk.f32.mxu1 %vm844_vm0, %v745_v50  ;;  %v1478_v62 = vld [vmem:[%s5483_s18 + $0x11c8] sm:$0xff]  ;;  %v3739_v4 = vpack.c.bf16 %v968_v60, %v966_v59  ;;  %v1479_v9 = vld [vmem:[%s5483_s18 + $0x11d0] sm:$0xff]  ;;  %v972_v11 = vld [vmem:[%s5483_s18 + $0x1f8] sm:$0xff]  ;;  %vm859_vm3 = vcmp.lt.s32.totalorder %v827_v43, 17114 }
 0x120   : > { %4234 = vmatpush1.bf16.msra.mxu0 %v4233_v0  ;;  %3724 = vmatprep.subr.bf16.mxu1 %v3723_v1  ;;  %v1480_v0 = vld [vmem:[%s5483_s18 + $0x11d8] sm:$0xff]  ;;  %v5640_v1 = vsub.s32 0, %v5581_v63  ;;  %v970_v10 = vld [vmem:[%s5483_s18 + $0x1e8] sm:$0xff]  ;;  %v512_v19 = vld [vmem:[%s5470_s5] sm:$0xff]  ;;  %v4253_v21 = vpack.c.bf16 %v1479_v9, %v1477_v7 }
 0x121   : > { %4236 = vmatprep.subr.bf16.mxu0 %v4235_v5  ;;  %3553 = vmatprep.mubr.msk.f32.mxu0 %vm860_vm1, %v761_v56  ;;  %v965_v5 = vld [vmem:[%s5483_s18 + $0x1c0] sm:$0xff]  ;;  %v4251_v8 = vpack.c.bf16 %v1480_v0, %v1478_v62  ;;  %v1484_v13 = vld [vmem:[%s5483_s18 + $0x11f8] sm:$0xff]  ;;  %v971_v23 = vld [vmem:[%s5483_s18 + $0x1f0] sm:$0xff] }
 0x122   : > { %v555_v16 = vrot.slane %v5609_v28, %v5640_v1  ;;  %v619_v20 = vrot.slane %v5616_v33, %v5640_v1  ;;  %v1481_v24 = vld [vmem:[%s5483_s18 + $0x11e0] sm:$0xff]  ;;  %v1483_v29 = vld [vmem:[%s5483_s18 + $0x11f0] sm:$0xff]  ;;  %v976_v31 = vld [vmem:[%s5483_s18 + $0x218] sm:$0xff] }
 0x123   : > { %3726 = vmatpush1.bf16.msra.mxu1 %v3725_v12  ;;  %v1482_v12 = vld [vmem:[%s5483_s18 + $0x11e8] sm:$0xff]  ;;  %v528_v25 = vld [vmem:[%s5470_s5 + $0x80] sm:$0xff]  ;;  %v1488_v34 = vld [vmem:[%s5483_s18 + $0x1218] sm:$0xff]  ;;  %v4257_v39 = vpack.c.bf16 %v1483_v29, %v1481_v24 }
 0x124   : > { %4238 = vmatpush1.bf16.msra.mxu0 %v4237_v17  ;;  %3728 = vmatprep.subr.bf16.mxu1 %v3727_v18  ;;  %v3741_v17 = vpack.c.bf16 %v967_v6, %v965_v5  ;;  %v969_v18 = vld [vmem:[%s5483_s18 + $0x1e0] sm:$0xff]  ;;  %v4255_v27 = vpack.c.bf16 %v1484_v13, %v1482_v12  ;;  %v1486_v32 = vld [vmem:[%s5483_s18 + $0x1208] sm:$0xff]  ;;  %v728_v38 = vmul.f32 %v619_v20, %v528_v25  ;;  %v975_v42 = vld [vmem:[%s5483_s18 + $0x210] sm:$0xff] }
 0x125   : > { %4240 = vmatprep.subr.bf16.mxu0 %v4239_v22  ;;  %v3743_v22 = vpack.c.bf16 %v972_v11, %v970_v10  ;;  %v1485_v44 = vld [vmem:[%s5483_s18 + $0x1200] sm:$0xff]  ;;  %v4259_v45 = vpack.c.bf16 %v1488_v34, %v1486_v32  ;;  %v1487_v46 = vld [vmem:[%s5483_s18 + $0x1210] sm:$0xff]  ;;  %v978_v47 = vld [vmem:[%s5483_s18 + $0x228] sm:$0xff] }
 0x126   : > { %v980_v48 = vld [vmem:[%s5483_s18 + $0x238] sm:$0xff]  ;;  %v1490_v50 = vld [vmem:[%s5483_s18 + $0x1228] sm:$0xff]  ;;  %v760_v53 = vmax.f32 %v728_v38, 0.0  ;;  %v4261_v54 = vpack.c.bf16 %v1487_v46, %v1485_v44  ;;  %v977_v56 = vld [vmem:[%s5483_s18 + $0x220] sm:$0xff]  ;;  %v781_v46 = vadd.s32 384, %v5579_v61 }
 0x127   : > { %3730 = vmatpush1.bf16.msra.mxu1 %v3729_v30  ;;  %v974_v30 = vld [vmem:[%s5483_s18 + $0x208] sm:$0xff]  ;;  %v3751_v55 = vpack.c.bf16 %v980_v48, %v978_v47  ;;  %v1489_v58 = vld [vmem:[%s5483_s18 + $0x1220] sm:$0xff]  ;;  %v1491_v60 = vld [vmem:[%s5483_s18 + $0x1230] sm:$0xff] }
 0x128   : > { %4242 = vmatpush1.bf16.msra.mxu0 %v4241_v35  ;;  %3732 = vmatprep.subr.bf16.mxu1 %v3731_v36  ;;  %v712_v35 = vmul.f32 %v555_v16, %v512_v19  ;;  %v3745_v36 = vpack.c.bf16 %v971_v23, %v969_v18  ;;  %v3747_v40 = vpack.c.bf16 %v976_v31, %v974_v30  ;;  %v982_v62 = vld [vmem:[%s5483_s18 + $0x248] sm:$0xff]  ;;  %v984_v0 = vld [vmem:[%s5483_s18 + $0x258] sm:$0xff]  ;;  %v981_v7 = vld [vmem:[%s5483_s18 + $0x240] sm:$0xff] }
 0x129   : > { %4244 = vmatprep.subr.bf16.mxu0 %v4243_v41  ;;  %v973_v41 = vld [vmem:[%s5483_s18 + $0x200] sm:$0xff]  ;;  %v4265_v5 = vpack.c.bf16 %v1491_v60, %v1489_v58  ;;  %v3755_v6 = vpack.c.bf16 %v984_v0, %v982_v62  ;;  %v1495_v11 = vld [vmem:[%s5483_s18 + $0x1250] sm:$0xff]  ;;  %v986_v12 = vld [vmem:[%s5483_s18 + $0x268] sm:$0xff]  ;;  %v797_v58 = vadd.s32 2432, %v5579_v61  ;;  %v814_v62 = vadd.s32 %v5597_v15, %v781_v46 }
 0x12a   : > { %v1493_v9 = vld [vmem:[%s5483_s18 + $0x1240] sm:$0xff]  ;;  %v988_v13 = vld [vmem:[%s5483_s18 + $0x278] sm:$0xff]  ;;  %v1498_v16 = vld [vmem:[%s5483_s18 + $0x1268] sm:$0xff] }
 0x12b   : > { %3734 = vmatpush1.bf16.msra.mxu1 %v3733_v49  ;;  %v744_v49 = vmax.f32 %v712_v35, 0.0  ;;  %v4269_v19 = vpack.c.bf16 %v1495_v11, %v1493_v9  ;;  %v3759_v20 = vpack.c.bf16 %v988_v13, %v986_v12  ;;  %v1497_v23 = vld [vmem:[%s5483_s18 + $0x1260] sm:$0xff]  ;;  %v1499_v25 = vld [vmem:[%s5483_s18 + $0x1270] sm:$0xff]  ;;  %v990_v26 = vld [vmem:[%s5483_s18 + $0x288] sm:$0xff]  ;;  %vm846_vm4 = vcmp.lt.s32.totalorder %v814_v62, 17114 }
 0x12c   : > { %4246 = vmatpush1.bf16.msra.mxu0 %v4245_v51  ;;  %3736 = vmatprep.subr.bf16.mxu1 %v3735_v52  ;;  %v1492_v51 = vld [vmem:[%s5483_s18 + $0x1238] sm:$0xff]  ;;  %v3749_v52 = vpack.c.bf16 %v975_v42, %v973_v41  ;;  %v1502_v29 = vld [vmem:[%s5483_s18 + $0x1288] sm:$0xff]  ;;  %v4273_v32 = vpack.c.bf16 %v1499_v25, %v1497_v23  ;;  %v989_v35 = vld [vmem:[%s5483_s18 + $0x280] sm:$0xff] }
 0x12d   : > { %4248 = vmatprep.subr.bf16.mxu0 %v4247_v57  ;;  %v979_v57 = vld [vmem:[%s5483_s18 + $0x230] sm:$0xff]  ;;  %v4263_v59 = vpack.c.bf16 %v1492_v51, %v1490_v50  ;;  %v1504_v30 = vld [vmem:[%s5483_s18 + $0x1298] sm:$0xff]  ;;  %v1501_v37 = vld [vmem:[%s5483_s18 + $0x1280] sm:$0xff] }
 0x12e   : > { %v4275_v38 = vpack.c.bf16 %v1504_v30, %v1502_v29  ;;  %v996_v41 = vld [vmem:[%s5483_s18 + $0x2b8] sm:$0xff]  ;;  %v1506_v42 = vld [vmem:[%s5483_s18 + $0x12a8] sm:$0xff]  ;;  %v995_v50 = vld [vmem:[%s5483_s18 + $0x2b0] sm:$0xff] }
 0x12f   : > { %3738 = vmatpush1.bf16.msra.mxu1 %v3737_v2  ;;  %v1494_v2 = vld [vmem:[%s5483_s18 + $0x1248] sm:$0xff]  ;;  %v1508_v43 = vld [vmem:[%s5483_s18 + $0x12b8] sm:$0xff]  ;;  %v1505_v51 = vld [vmem:[%s5483_s18 + $0x12a0] sm:$0xff] }
 0x130   : > { %4250 = vmatpush1.bf16.msra.mxu0 %v4249_v3  ;;  %3740 = vmatprep.subr.bf16.mxu1 %v3739_v4  ;;  %v1496_v3 = vld [vmem:[%s5483_s18 + $0x1258] sm:$0xff]  ;;  %v3753_v4 = vpack.c.bf16 %v979_v57, %v977_v56  ;;  %v1510_v56 = vld [vmem:[%s5483_s18 + $0x12c8] sm:$0xff]  ;;  %v1003_v23 = vld [vmem:[%s5483_s18 + $0x2f0] sm:$0xff] }
 0x131   : > { %4252 = vmatprep.subr.bf16.mxu0 %v4251_v8  ;;  %v983_v8 = vld [vmem:[%s5483_s18 + $0x250] sm:$0xff]  ;;  %v4267_v10 = vpack.c.bf16 %v1496_v3, %v1494_v2  ;;  %v1512_v57 = vld [vmem:[%s5483_s18 + $0x12d8] sm:$0xff]  ;;  %v997_v3 = vld [vmem:[%s5483_s18 + $0x2c0] sm:$0xff] }
 0x132   : > { %v3757_v18 = vpack.c.bf16 %v983_v8, %v981_v7  ;;  %v4283_v7 = vpack.c.bf16 %v1512_v57, %v1510_v56  ;;  %v1511_v8 = vld [vmem:[%s5483_s18 + $0x12d0] sm:$0xff]  ;;  %v1002_v9 = vld [vmem:[%s5483_s18 + $0x2e8] sm:$0xff]  ;;  %v1516_v12 = vld [vmem:[%s5483_s18 + $0x12f8] sm:$0xff] }
 0x133   : > { %3742 = vmatpush1.bf16.msra.mxu1 %v3741_v17  ;;  %v1500_v17 = vld [vmem:[%s5483_s18 + $0x1278] sm:$0xff]  ;;  %v1514_v11 = vld [vmem:[%s5483_s18 + $0x12e8] sm:$0xff]  ;;  %v1523_v56 = vld [vmem:[%s5483_s18 + $0x1330] sm:$0xff] }
 0x134   : > { %4254 = vmatpush1.bf16.msra.mxu0 %v4253_v21  ;;  %3744 = vmatprep.subr.bf16.mxu1 %v3743_v22  ;;  %v985_v21 = vld [vmem:[%s5483_s18 + $0x260] sm:$0xff]  ;;  %v987_v22 = vld [vmem:[%s5483_s18 + $0x270] sm:$0xff]  ;;  %v4271_v24 = vpack.c.bf16 %v1500_v17, %v1498_v16  ;;  %v515_v13 = vld [vmem:[%s5470_s5 + $0x18] sm:$0xff]  ;;  %v830_v16 = vadd.s32 %v5597_v15, %v797_v58 }
 0x135   : > { %4256 = vmatprep.subr.bf16.mxu0 %v4255_v27  ;;  %v992_v27 = vld [vmem:[%s5483_s18 + $0x298] sm:$0xff]  ;;  %v3761_v31 = vpack.c.bf16 %v987_v22, %v985_v21  ;;  %v1001_v22 = vld [vmem:[%s5483_s18 + $0x2e0] sm:$0xff]  ;;  %v1006_v29 = vld [vmem:[%s5483_s18 + $0x308] sm:$0xff] }
 0x136   : > { %v3763_v34 = vpack.c.bf16 %v992_v27, %v990_v26  ;;  %v4287_v26 = vpack.c.bf16 %v1516_v12, %v1514_v11  ;;  %v1515_v27 = vld [vmem:[%s5483_s18 + $0x12f0] sm:$0xff]  ;;  %v1008_v30 = vld [vmem:[%s5483_s18 + $0x318] sm:$0xff]  ;;  %vm862_vm5 = vcmp.lt.s32.totalorder %v830_v16, 17114  ;;  %v1014_v57 = vld [vmem:[%s5483_s18 + $0x348] sm:$0xff] }
 0x137   : > { %3746 = vmatpush1.bf16.msra.mxu1 %v3745_v36  ;;  %v991_v36 = vld [vmem:[%s5483_s18 + $0x290] sm:$0xff]  ;;  %v1012_v46 = vld [vmem:[%s5483_s18 + $0x338] sm:$0xff] }
 0x138   : > { %4258 = vmatpush1.bf16.msra.mxu0 %v4257_v39  ;;  %3748 = vmatprep.subr.bf16.mxu1 %v3747_v40  ;;  %v1503_v39 = vld [vmem:[%s5483_s18 + $0x1290] sm:$0xff]  ;;  %v994_v40 = vld [vmem:[%s5483_s18 + $0x2a8] sm:$0xff]  ;;  %v3765_v44 = vpack.c.bf16 %v991_v36, %v989_v35  ;;  %v3777_v36 = vpack.c.bf16 %v1003_v23, %v1001_v22  ;;  %v1016_v58 = vld [vmem:[%s5483_s18 + $0x358] sm:$0xff] }
 0x139   : > { %4260 = vmatprep.subr.bf16.mxu0 %v4259_v45  ;;  %v5710_v45 = vsub.s32 3, %v5581_v63  ;;  %v4277_v47 = vpack.c.bf16 %v1503_v39, %v1501_v37  ;;  %v3767_v48 = vpack.c.bf16 %v996_v41, %v994_v40  ;;  %v1005_v39 = vld [vmem:[%s5483_s18 + $0x300] sm:$0xff]  ;;  %v1007_v40 = vld [vmem:[%s5483_s18 + $0x310] sm:$0xff]  ;;  %v1532_v11 = vld [vmem:[%s5483_s18 + $0x1378] sm:$0xff] }
 0x13a   : > { %3538 = vmatmul.mubr.msk.f32.vlgmr.msra.gmra.mrb[0].mxu1 %vm843_vm2, %v744_v49  ;;  %v993_v49 = vld [vmem:[%s5483_s18 + $0x2a0] sm:$0xff]  ;;  %v1022_v22 = vld [vmem:[%s5483_s18 + $0x388] sm:$0xff]  ;;  %v1024_v23 = vld [vmem:[%s5483_s18 + $0x398] sm:$0xff] }
 0x13b   : > { %3750 = vmatpush1.bf16.msra.mxu1 %v3749_v52  ;;  %3554 = vmatmul.mubr.msk.f32.vlgmr.msra.gmra.mrb[0].mxu0 %vm859_vm3, %v760_v53  ;;  %v4279_v52 = vpack.c.bf16 %v1508_v43, %v1506_v42  ;;  %v1507_v53 = vld [vmem:[%s5483_s18 + $0x12b0] sm:$0xff]  ;;  %v567_v60 = vrot.slane %v5609_v28, %v5710_v45  ;;  %v1517_v41 = vld [vmem:[%s5483_s18 + $0x1300] sm:$0xff] }
 0x13c   : > { %4262 = vmatpush1.bf16.msra.mxu0 %v4261_v54  ;;  %3752 = vmatprep.subr.bf16.mxu1 %v3751_v55  ;;  %v998_v54 = vld [vmem:[%s5483_s18 + $0x2c8] sm:$0xff]  ;;  %v1000_v55 = vld [vmem:[%s5483_s18 + $0x2d8] sm:$0xff]  ;;  %v4281_v0 = vpack.c.bf16 %v1507_v53, %v1505_v51  ;;  %v1519_v43 = vld [vmem:[%s5483_s18 + $0x1310] sm:$0xff] }
 0x13d   : > { %4264 = vmatprep.subr.bf16.mxu0 %v4263_v59  ;;  %v3769_v59 = vpack.c.bf16 %v995_v50, %v993_v49  ;;  %v3771_v2 = vpack.c.bf16 %v1000_v55, %v998_v54  ;;  %v3781_v49 = vpack.c.bf16 %v1007_v40, %v1005_v39  ;;  %v4293_v50 = vpack.c.bf16 %v1519_v43, %v1517_v41  ;;  %v1011_v53 = vld [vmem:[%s5483_s18 + $0x330] sm:$0xff]  ;;  %v1521_v54 = vld [vmem:[%s5483_s18 + $0x1320] sm:$0xff]  ;;  %v1540_v39 = vld [vmem:[%s5483_s18 + $0x13b8] sm:$0xff] }
 0x13e   : > { %v1025_v43 = vld [vmem:[%s5483_s18 + $0x3a0] sm:$0xff] }
 0x13f   : > { %3754 = vmatpush1.bf16.msra.mxu1 %v3753_v4  ;;  %v999_v4 = vld [vmem:[%s5483_s18 + $0x2d0] sm:$0xff] }
 0x140   : > { %4266 = vmatpush1.bf16.msra.mxu0 %v4265_v5  ;;  %3756 = vmatprep.subr.bf16.mxu1 %v3755_v6  ;;  %v1509_v5 = vld [vmem:[%s5483_s18 + $0x12c0] sm:$0xff]  ;;  %v631_v6 = vrot.slane %v5616_v33, %v5710_v45  ;;  %v3773_v17 = vpack.c.bf16 %v999_v4, %v997_v3  ;;  %v1015_v4 = vld [vmem:[%s5483_s18 + $0x350] sm:$0xff] }
 0x141   : > { %4268 = vmatprep.subr.bf16.mxu0 %v4267_v10  ;;  %v1004_v10 = vld [vmem:[%s5483_s18 + $0x2f8] sm:$0xff]  ;;  %v1013_v3 = vld [vmem:[%s5483_s18 + $0x340] sm:$0xff] }
 0x142   : > { %v3775_v21 = vpack.c.bf16 %v1004_v10, %v1002_v9  ;;  %v1020_v9 = vld [vmem:[%s5483_s18 + $0x378] sm:$0xff]  ;;  %v1530_v10 = vld [vmem:[%s5483_s18 + $0x1368] sm:$0xff]  ;;  %v3789_v12 = vpack.c.bf16 %v1015_v4, %v1013_v3 }
 0x143   : > { %3758 = vmatpush1.bf16.msra.mxu1 %v3757_v18  ;;  %v715_v18 = vmul.f32 %v567_v60, %v515_v13  ;;  %v1528_v60 = vld [vmem:[%s5483_s18 + $0x1358] sm:$0xff]  ;;  %v1546_v3 = vld [vmem:[%s5483_s18 + $0x13e8] sm:$0xff] }
 0x144   : > { %4270 = vmatpush1.bf16.msra.mxu0 %v4269_v19  ;;  %3760 = vmatprep.subr.bf16.mxu1 %v3759_v20  ;;  %v531_v19 = vld [vmem:[%s5470_s5 + $0x98] sm:$0xff]  ;;  %v4285_v20 = vpack.c.bf16 %v1511_v8, %v1509_v5  ;;  %v1525_v5 = vld [vmem:[%s5483_s18 + $0x1340] sm:$0xff]  ;;  %v1018_v8 = vld [vmem:[%s5483_s18 + $0x368] sm:$0xff] }
 0x145   : > { %4272 = vmatprep.subr.bf16.mxu0 %v4271_v24  ;;  %v1513_v24 = vld [vmem:[%s5483_s18 + $0x12e0] sm:$0xff]  ;;  %v731_v25 = vmul.f32 %v631_v6, %v531_v19  ;;  %v3791_v16 = vpack.c.bf16 %v1020_v9, %v1018_v8  ;;  %v1548_v4 = vld [vmem:[%s5483_s18 + $0x13f8] sm:$0xff]  ;;  %v514_v9 = vld [vmem:[%s5470_s5 + $0x10] sm:$0xff] }
 0x146   : > { %v4289_v37 = vpack.c.bf16 %v1515_v27, %v1513_v24  ;;  %v1529_v19 = vld [vmem:[%s5483_s18 + $0x1360] sm:$0xff]  ;;  %v1534_v24 = vld [vmem:[%s5483_s18 + $0x1388] sm:$0xff] }
 0x147   : > { %3762 = vmatpush1.bf16.msra.mxu1 %v3761_v31  ;;  %v747_v31 = vmax.f32 %v715_v18, 0.0  ;;  %v763_v35 = vmax.f32 %v731_v25, 0.0  ;;  %v1019_v18 = vld [vmem:[%s5483_s18 + $0x370] sm:$0xff]  ;;  %v1536_v25 = vld [vmem:[%s5483_s18 + $0x1398] sm:$0xff]  ;;  %v1033_v8 = vld [vmem:[%s5483_s18 + $0x3e0] sm:$0xff] }
 0x148   : > { %4274 = vmatpush1.bf16.msra.mxu0 %v4273_v32  ;;  %3764 = vmatprep.subr.bf16.mxu1 %v3763_v34  ;;  %v1518_v32 = vld [vmem:[%s5483_s18 + $0x1308] sm:$0xff]  ;;  %v1520_v34 = vld [vmem:[%s5483_s18 + $0x1318] sm:$0xff] }
 0x149   : > { %4276 = vmatprep.subr.bf16.mxu0 %v4275_v38  ;;  %3539 = vmatprep.mubr.msk.f32.mxu1 %vm846_vm4, %v747_v31  ;;  %v3779_v38 = vpack.c.bf16 %v1008_v30, %v1006_v29  ;;  %v4291_v42 = vpack.c.bf16 %v1520_v34, %v1518_v32  ;;  %v3795_v29 = vpack.c.bf16 %v1024_v23, %v1022_v22  ;;  %v1021_v30 = vld [vmem:[%s5483_s18 + $0x380] sm:$0xff]  ;;  %v1023_v31 = vld [vmem:[%s5483_s18 + $0x390] sm:$0xff]  ;;  %v1040_v22 = vld [vmem:[%s5483_s18 + $0x418] sm:$0xff] }
 0x14a   : > { %3555 = vmatprep.mubr.msk.f32.mxu0 %vm862_vm5, %v763_v35  ;;  %v1533_v32 = vld [vmem:[%s5483_s18 + $0x1380] sm:$0xff]  ;;  %v4307_v34 = vpack.c.bf16 %v1536_v25, %v1534_v24  ;;  %v1535_v35 = vld [vmem:[%s5483_s18 + $0x1390] sm:$0xff]  ;;  %v3797_v40 = vpack.c.bf16 %v1023_v31, %v1021_v30  ;;  %v1550_v23 = vld [vmem:[%s5483_s18 + $0x1408] sm:$0xff]  ;;  %v5824_v30 = vsub.s32 5, %v5581_v63 }
 0x14b   : > { %3766 = vmatpush1.bf16.msra.mxu1 %v3765_v44  ;;  %v1010_v44 = vld [vmem:[%s5483_s18 + $0x328] sm:$0xff]  ;;  %v4309_v41 = vpack.c.bf16 %v1535_v35, %v1533_v32  ;;  %v1552_v24 = vld [vmem:[%s5483_s18 + $0x1418] sm:$0xff]  ;;  %v1039_v35 = vld [vmem:[%s5483_s18 + $0x410] sm:$0xff] }
 0x14c   : > { %4278 = vmatpush1.bf16.msra.mxu0 %v4277_v47  ;;  %3768 = vmatprep.subr.bf16.mxu1 %v3767_v48  ;;  %v1522_v47 = vld [vmem:[%s5483_s18 + $0x1328] sm:$0xff]  ;;  %v1524_v48 = vld [vmem:[%s5483_s18 + $0x1338] sm:$0xff]  ;;  %v3783_v51 = vpack.c.bf16 %v1012_v46, %v1010_v44  ;;  %v1027_v44 = vld [vmem:[%s5483_s18 + $0x3b0] sm:$0xff] }
 0x14d   : > { %4280 = vmatprep.subr.bf16.mxu0 %v4279_v52  ;;  %v1009_v52 = vld [vmem:[%s5483_s18 + $0x320] sm:$0xff]  ;;  %v4295_v55 = vpack.c.bf16 %v1524_v48, %v1522_v47  ;;  %v1539_v48 = vld [vmem:[%s5483_s18 + $0x13b0] sm:$0xff] }
 0x14e   : > { %v3785_v62 = vpack.c.bf16 %v1011_v53, %v1009_v52  ;;  %v1537_v46 = vld [vmem:[%s5483_s18 + $0x13a0] sm:$0xff]  ;;  %v1544_v52 = vld [vmem:[%s5483_s18 + $0x13d8] sm:$0xff]  ;;  %v5796_v53 = vsub.s32 2, %v5581_v63 }
 0x14f   : > { %3770 = vmatpush1.bf16.msra.mxu1 %v3769_v59  ;;  %v1526_v59 = vld [vmem:[%s5483_s18 + $0x1348] sm:$0xff] }
 0x150   : > { %4282 = vmatpush1.bf16.msra.mxu0 %v4281_v0  ;;  %3772 = vmatprep.subr.bf16.mxu1 %v3771_v2  ;;  %v4297_v0 = vpack.c.bf16 %v1523_v56, %v1521_v54  ;;  %v3787_v2 = vpack.c.bf16 %v1016_v58, %v1014_v57  ;;  %v4299_v6 = vpack.c.bf16 %v1528_v60, %v1526_v59  ;;  %v1029_v57 = vld [vmem:[%s5483_s18 + $0x3c0] sm:$0xff]  ;;  %v1031_v58 = vld [vmem:[%s5483_s18 + $0x3d0] sm:$0xff] }
 0x151   : > { %4284 = vmatprep.subr.bf16.mxu0 %v4283_v7  ;;  %v1527_v7 = vld [vmem:[%s5483_s18 + $0x1350] sm:$0xff]  ;;  %v3801_v54 = vpack.c.bf16 %v1027_v44, %v1025_v43  ;;  %v1541_v59 = vld [vmem:[%s5483_s18 + $0x13c0] sm:$0xff]  ;;  %v1554_v44 = vld [vmem:[%s5483_s18 + $0x1428] sm:$0xff] }
 0x152   : > { %v4301_v13 = vpack.c.bf16 %v1527_v7, %v1525_v5  ;;  %v563_v5 = vrot.slane %v5609_v28, %v5796_v53  ;;  %v3805_v7 = vpack.c.bf16 %v1031_v58, %v1029_v57  ;;  %v1553_v57 = vld [vmem:[%s5483_s18 + $0x1420] sm:$0xff] }
 0x153   : > { %3774 = vmatpush1.bf16.msra.mxu1 %v3773_v17  ;;  %v1017_v17 = vld [vmem:[%s5483_s18 + $0x360] sm:$0xff] }
 0x154   : > { %4286 = vmatpush1.bf16.msra.mxu0 %v4285_v20  ;;  %3776 = vmatprep.subr.bf16.mxu1 %v3775_v21  ;;  %v4303_v20 = vpack.c.bf16 %v1532_v11, %v1530_v10  ;;  %v1531_v21 = vld [vmem:[%s5483_s18 + $0x1370] sm:$0xff]  ;;  %v627_v10 = vrot.slane %v5616_v33, %v5796_v53  ;;  %v714_v25 = vmul.f32 %v563_v5, %v514_v9  ;;  %v1045_v9 = vld [vmem:[%s5483_s18 + $0x440] sm:$0xff] }
 0x155   : > { %4288 = vmatprep.subr.bf16.mxu0 %v4287_v26  ;;  %v3793_v26 = vpack.c.bf16 %v1019_v18, %v1017_v17  ;;  %v4305_v27 = vpack.c.bf16 %v1531_v21, %v1529_v19  ;;  %v530_v17 = vld [vmem:[%s5470_s5 + $0x90] sm:$0xff]  ;;  %v796_v18 = vadd.s32 2304, %v5579_v61  ;;  %v4319_v19 = vpack.c.bf16 %v1548_v4, %v1546_v3  ;;  %v1038_v21 = vld [vmem:[%s5483_s18 + $0x408] sm:$0xff] }
 0x156   : > { %v3811_v32 = vpack.c.bf16 %v1040_v22, %v1038_v21  ;;  %v746_v43 = vmax.f32 %v714_v25, 0.0  ;;  %v1564_v21 = vld [vmem:[%s5483_s18 + $0x1478] sm:$0xff] }
 0x157   : > { %3778 = vmatpush1.bf16.msra.mxu1 %v3777_v36  ;;  %v1026_v36 = vld [vmem:[%s5483_s18 + $0x3a8] sm:$0xff] }
 0x158   : > { %4290 = vmatpush1.bf16.msra.mxu0 %v4289_v37  ;;  %3780 = vmatprep.subr.bf16.mxu1 %v3779_v38  ;;  %v1028_v37 = vld [vmem:[%s5483_s18 + $0x3b8] sm:$0xff]  ;;  %v1538_v38 = vld [vmem:[%s5483_s18 + $0x13a8] sm:$0xff] }
 0x159   : > { %4292 = vmatprep.subr.bf16.mxu0 %v4291_v42  ;;  %v3799_v42 = vpack.c.bf16 %v1028_v37, %v1026_v36  ;;  %v4311_v47 = vpack.c.bf16 %v1540_v39, %v1538_v38  ;;  %v829_v36 = vadd.s32 %v5597_v15, %v796_v18  ;;  %v1549_v37 = vld [vmem:[%s5483_s18 + $0x1400] sm:$0xff]  ;;  %v783_v38 = vadd.s32 640, %v5579_v61  ;;  %v1052_v18 = vld [vmem:[%s5483_s18 + $0x478] sm:$0xff] }
 0x15a   : > { %v4323_v39 = vpack.c.bf16 %v1552_v24, %v1550_v23 }
 0x15b   : > { %3782 = vmatpush1.bf16.msra.mxu1 %v3781_v49  ;;  %v1030_v49 = vld [vmem:[%s5483_s18 + $0x3c8] sm:$0xff]  ;;  %vm861_vm7 = vcmp.lt.s32.totalorder %v829_v36, 17114  ;;  %v816_v58 = vadd.s32 %v5597_v15, %v783_v38 }
 0x15c   : > { %4294 = vmatpush1.bf16.msra.mxu0 %v4293_v50  ;;  %3784 = vmatprep.subr.bf16.mxu1 %v3783_v51  ;;  %v1032_v50 = vld [vmem:[%s5483_s18 + $0x3d8] sm:$0xff]  ;;  %v1542_v51 = vld [vmem:[%s5483_s18 + $0x13c8] sm:$0xff] }
 0x15d   : > { %4296 = vmatprep.subr.bf16.mxu0 %v4295_v55  ;;  %v4313_v55 = vpack.c.bf16 %v1539_v48, %v1537_v46  ;;  %v3803_v56 = vpack.c.bf16 %v1032_v50, %v1030_v49  ;;  %v4315_v60 = vpack.c.bf16 %v1544_v52, %v1542_v51  ;;  %v1556_v46 = vld [vmem:[%s5483_s18 + $0x1438] sm:$0xff]  ;;  %v575_v50 = vrot.slane %v5609_v28, %v5824_v30  ;;  %v1555_v28 = vld [vmem:[%s5483_s18 + $0x1430] sm:$0xff]  ;;  %v1566_v36 = vld [vmem:[%s5483_s18 + $0x1488] sm:$0xff] }
 0x15e   : > { %v639_v51 = vrot.slane %v5616_v33, %v5824_v30  ;;  %v1048_v33 = vld [vmem:[%s5483_s18 + $0x458] sm:$0xff]  ;;  %vm848_vm8 = vcmp.lt.s32.totalorder %v816_v58, 17114 }
 0x15f   : > { %3786 = vmatpush1.bf16.msra.mxu1 %v3785_v62  ;;  %v1543_v62 = vld [vmem:[%s5483_s18 + $0x13d0] sm:$0xff] }
 0x160   : > { %4298 = vmatpush1.bf16.msra.mxu0 %v4297_v0  ;;  %3788 = vmatprep.subr.bf16.mxu1 %v3787_v2  ;;  %v1034_v0 = vld [vmem:[%s5483_s18 + $0x3e8] sm:$0xff]  ;;  %v1036_v2 = vld [vmem:[%s5483_s18 + $0x3f8] sm:$0xff]  ;;  %v4317_v11 = vpack.c.bf16 %v1543_v62, %v1541_v59  ;;  %v4327_v59 = vpack.c.bf16 %v1556_v46, %v1554_v44  ;;  %v1567_v46 = vld [vmem:[%s5483_s18 + $0x1490] sm:$0xff] }
 0x161   : > { %4300 = vmatprep.subr.bf16.mxu0 %v4299_v6  ;;  %v780_v6 = vadd.s32 256, %v5579_v61  ;;  %v1558_v62 = vld [vmem:[%s5483_s18 + $0x1448] sm:$0xff] }
 0x163   : > { %3790 = vmatpush1.bf16.msra.mxu1 %v3789_v12  ;;  %v3807_v12 = vpack.c.bf16 %v1036_v2, %v1034_v0  ;;  %v1560_v0 = vld [vmem:[%s5483_s18 + $0x1458] sm:$0xff]  ;;  %v517_v2 = vld [vmem:[%s5470_s5 + $0x28] sm:$0xff] }
 0x164   : > { %4302 = vmatpush1.bf16.msra.mxu0 %v4301_v13  ;;  %3792 = vmatprep.subr.bf16.mxu1 %v3791_v16  ;;  %v1035_v13 = vld [vmem:[%s5483_s18 + $0x3f0] sm:$0xff]  ;;  %v1545_v16 = vld [vmem:[%s5483_s18 + $0x13e0] sm:$0xff]  ;;  %v717_v5 = vmul.f32 %v575_v50, %v517_v2  ;;  %v1572_v50 = vld [vmem:[%s5483_s18 + $0x14b8] sm:$0xff] }
 0x165   : > { %4304 = vmatprep.subr.bf16.mxu0 %v4303_v20  ;;  %v1547_v20 = vld [vmem:[%s5483_s18 + $0x13f0] sm:$0xff] }
 0x166   : > { %v4321_v31 = vpack.c.bf16 %v1547_v20, %v1545_v16  ;;  %v1559_v16 = vld [vmem:[%s5483_s18 + $0x1450] sm:$0xff]  ;;  %v1562_v20 = vld [vmem:[%s5483_s18 + $0x1468] sm:$0xff] }
 0x167   : > { %3794 = vmatpush1.bf16.msra.mxu1 %v3793_v26  ;;  %v813_v26 = vadd.s32 %v5597_v15, %v780_v6  ;;  %v533_v6 = vld [vmem:[%s5470_s5 + $0xa8] sm:$0xff] }
 0x168   : > { %4306 = vmatpush1.bf16.msra.mxu0 %v4305_v27  ;;  %3796 = vmatprep.subr.bf16.mxu1 %v3795_v29  ;;  %v3809_v27 = vpack.c.bf16 %v1035_v13, %v1033_v8  ;;  %v730_v29 = vmul.f32 %v627_v10, %v530_v17  ;;  %v1047_v10 = vld [vmem:[%s5483_s18 + $0x450] sm:$0xff]  ;;  %v4331_v13 = vpack.c.bf16 %v1560_v0, %v1558_v62  ;;  %v1050_v17 = vld [vmem:[%s5483_s18 + $0x468] sm:$0xff]  ;;  %v1576_v62 = vld [vmem:[%s5483_s18 + $0x14d8] sm:$0xff] }
 0x169   : > { %4308 = vmatprep.subr.bf16.mxu0 %v4307_v34  ;;  %v1037_v34 = vld [vmem:[%s5483_s18 + $0x400] sm:$0xff]  ;;  %vm845_vm6 = vcmp.lt.s32.totalorder %v813_v26, 17114  ;;  %v3821_v23 = vpack.c.bf16 %v1047_v10, %v1045_v9  ;;  %v3823_v25 = vpack.c.bf16 %v1052_v18, %v1050_v17  ;;  %v1066_v9 = vld [vmem:[%s5483_s18 + $0x4e8] sm:$0xff]  ;;  %v1068_v10 = vld [vmem:[%s5483_s18 + $0x4f8] sm:$0xff] }
 0x16a   : > { %v3813_v48 = vpack.c.bf16 %v1039_v35, %v1037_v34  ;;  %v762_v49 = vmax.f32 %v730_v29, 0.0  ;;  %v1049_v26 = vld [vmem:[%s5483_s18 + $0x460] sm:$0xff]  ;;  %v1054_v34 = vld [vmem:[%s5483_s18 + $0x488] sm:$0xff]  ;;  %v1056_v35 = vld [vmem:[%s5483_s18 + $0x498] sm:$0xff]  ;;  %v3839_v17 = vpack.c.bf16 %v1068_v10, %v1066_v9 }
 0x16b   : > { %3798 = vmatpush1.bf16.msra.mxu1 %v3797_v40  ;;  %v1551_v40 = vld [vmem:[%s5483_s18 + $0x1410] sm:$0xff]  ;;  %v1561_v29 = vld [vmem:[%s5483_s18 + $0x1460] sm:$0xff] }
 0x16c   : > { %4310 = vmatpush1.bf16.msra.mxu0 %v4309_v41  ;;  %3800 = vmatprep.subr.bf16.mxu1 %v3799_v42  ;;  %v1042_v41 = vld [vmem:[%s5483_s18 + $0x428] sm:$0xff]  ;;  %v1044_v42 = vld [vmem:[%s5483_s18 + $0x438] sm:$0xff]  ;;  %v4325_v52 = vpack.c.bf16 %v1551_v40, %v1549_v37  ;;  %v3827_v40 = vpack.c.bf16 %v1056_v35, %v1054_v34  ;;  %v1065_v18 = vld [vmem:[%s5483_s18 + $0x4e0] sm:$0xff] }
 0x16d   : > { %4312 = vmatprep.subr.bf16.mxu0 %v4311_v47  ;;  %v799_v47 = vadd.s32 2688, %v5579_v61  ;;  %v1568_v37 = vld [vmem:[%s5483_s18 + $0x1498] sm:$0xff]  ;;  %v1071_v34 = vld [vmem:[%s5483_s18 + $0x510] sm:$0xff]  ;;  %v1581_v35 = vld [vmem:[%s5483_s18 + $0x1500] sm:$0xff] }
 0x16e   : > { %v4339_v44 = vpack.c.bf16 %v1568_v37, %v1566_v36  ;;  %v1583_v37 = vld [vmem:[%s5483_s18 + $0x1510] sm:$0xff]  ;;  %v1593_v10 = vld [vmem:[%s5483_s18 + $0x1560] sm:$0xff] }
 0x16f   : > { %3802 = vmatpush1.bf16.msra.mxu1 %v3801_v54  ;;  %v3815_v54 = vpack.c.bf16 %v1044_v42, %v1042_v41  ;;  %v832_v3 = vadd.s32 %v5597_v15, %v799_v47  ;;  %v1053_v41 = vld [vmem:[%s5483_s18 + $0x480] sm:$0xff]  ;;  %v1055_v42 = vld [vmem:[%s5483_s18 + $0x490] sm:$0xff]  ;;  %v1058_v47 = vld [vmem:[%s5483_s18 + $0x4a8] sm:$0xff] }
 0x170   : > { %4314 = vmatpush1.bf16.msra.mxu0 %v4313_v55  ;;  %3804 = vmatprep.subr.bf16.mxu1 %v3803_v56  ;;  %v1041_v55 = vld [vmem:[%s5483_s18 + $0x420] sm:$0xff]  ;;  %v1043_v56 = vld [vmem:[%s5483_s18 + $0x430] sm:$0xff] }
 0x171   : > { %4316 = vmatprep.subr.bf16.mxu0 %v4315_v60  ;;  %v1046_v60 = vld [vmem:[%s5483_s18 + $0x448] sm:$0xff]  ;;  %v3817_v4 = vpack.c.bf16 %v1043_v56, %v1041_v55  ;;  %vm864_vm9 = vcmp.lt.s32.totalorder %v832_v3, 17114  ;;  %v1057_v55 = vld [vmem:[%s5483_s18 + $0x4a0] sm:$0xff]  ;;  %v1059_v56 = vld [vmem:[%s5483_s18 + $0x4b0] sm:$0xff] }
 0x172   : > { %v3819_v8 = vpack.c.bf16 %v1048_v33, %v1046_v60  ;;  %v1064_v60 = vld [vmem:[%s5483_s18 + $0x4d8] sm:$0xff]  ;;  %v1574_v33 = vld [vmem:[%s5483_s18 + $0x14c8] sm:$0xff]  ;;  %v3833_v0 = vpack.c.bf16 %v1059_v56, %v1057_v55  ;;  %v1083_v9 = vld [vmem:[%s5483_s18 + $0x570] sm:$0xff] }
 0x173   : > { %3806 = vmatpush1.bf16.msra.mxu1 %v3805_v7  ;;  %v4329_v7 = vpack.c.bf16 %v1555_v28, %v1553_v57  ;;  %v1569_v57 = vld [vmem:[%s5483_s18 + $0x14a0] sm:$0xff]  ;;  %v1062_v28 = vld [vmem:[%s5483_s18 + $0x4c8] sm:$0xff]  ;;  %v1592_v55 = vld [vmem:[%s5483_s18 + $0x1558] sm:$0xff] }
 0x174   : > { %4318 = vmatpush1.bf16.msra.mxu0 %v4317_v11  ;;  %3808 = vmatprep.subr.bf16.mxu1 %v3807_v12  ;;  %v1557_v11 = vld [vmem:[%s5483_s18 + $0x1440] sm:$0xff]  ;;  %v733_v12 = vmul.f32 %v639_v51, %v533_v6  ;;  %v3829_v51 = vpack.c.bf16 %v1055_v42, %v1053_v41  ;;  %v3835_v3 = vpack.c.bf16 %v1064_v60, %v1062_v28  ;;  %v1588_v41 = vld [vmem:[%s5483_s18 + $0x1538] sm:$0xff]  ;;  %v1079_v28 = vld [vmem:[%s5483_s18 + $0x550] sm:$0xff] }
 0x175   : > { %4320 = vmatprep.subr.bf16.mxu0 %v4319_v19  ;;  %v749_v19 = vmax.f32 %v717_v5, 0.0  ;;  %v4333_v24 = vpack.c.bf16 %v1559_v16, %v1557_v11  ;;  %v1063_v5 = vld [vmem:[%s5483_s18 + $0x4d0] sm:$0xff]  ;;  %v1573_v6 = vld [vmem:[%s5483_s18 + $0x14c0] sm:$0xff]  ;;  %v1578_v11 = vld [vmem:[%s5483_s18 + $0x14e8] sm:$0xff] }
 0x176   : > { %v765_v22 = vmax.f32 %v733_v12, 0.0  ;;  %v1580_v12 = vld [vmem:[%s5483_s18 + $0x14f8] sm:$0xff]  ;;  %v1589_v60 = vld [vmem:[%s5483_s18 + $0x1540] sm:$0xff] }
 0x177   : > { %3810 = vmatpush1.bf16.msra.mxu1 %v3809_v27  ;;  %v1051_v27 = vld [vmem:[%s5483_s18 + $0x470] sm:$0xff] }
 0x178   : > { %4322 = vmatpush1.bf16.msra.mxu0 %v4321_v31  ;;  %3812 = vmatprep.subr.bf16.mxu1 %v3811_v32  ;;  %v4335_v31 = vpack.c.bf16 %v1564_v21, %v1562_v20  ;;  %v1563_v32 = vld [vmem:[%s5483_s18 + $0x1470] sm:$0xff]  ;;  %v3825_v38 = vpack.c.bf16 %v1051_v27, %v1049_v26  ;;  %v1577_v20 = vld [vmem:[%s5483_s18 + $0x14e0] sm:$0xff]  ;;  %v4351_v21 = vpack.c.bf16 %v1580_v12, %v1578_v11  ;;  %v1584_v26 = vld [vmem:[%s5483_s18 + $0x1518] sm:$0xff] }
 0x179   : > { %4324 = vmatprep.subr.bf16.mxu0 %v4323_v39  ;;  %v4337_v39 = vpack.c.bf16 %v1563_v32, %v1561_v29  ;;  %v1069_v32 = vld [vmem:[%s5483_s18 + $0x500] sm:$0xff]  ;;  %v1595_v12 = vld [vmem:[%s5483_s18 + $0x1570] sm:$0xff] }
 0x17a   : > { %3540 = vmatmul.mubr.msk.f32.vlgmr.msra.gmra.mrb[0].mxu1 %vm845_vm6, %v746_v43  ;;  %v1565_v43 = vld [vmem:[%s5483_s18 + $0x1480] sm:$0xff]  ;;  %v3845_v42 = vpack.c.bf16 %v1071_v34, %v1069_v32  ;;  %v1604_v32 = vld [vmem:[%s5483_s18 + $0x15b8] sm:$0xff] }
 0x17b   : > { %3814 = vmatpush1.bf16.msra.mxu1 %v3813_v48  ;;  %3556 = vmatmul.mubr.msk.f32.vlgmr.msra.gmra.mrb[0].mxu0 %vm861_vm7, %v762_v49  ;;  %v1060_v48 = vld [vmem:[%s5483_s18 + $0x4b8] sm:$0xff]  ;;  %v1570_v49 = vld [vmem:[%s5483_s18 + $0x14a8] sm:$0xff] }
 0x17c   : > { %4326 = vmatpush1.bf16.msra.mxu0 %v4325_v52  ;;  %3816 = vmatprep.subr.bf16.mxu1 %v3815_v54  ;;  %v4341_v52 = vpack.c.bf16 %v1567_v46, %v1565_v43  ;;  %v3831_v54 = vpack.c.bf16 %v1060_v48, %v1058_v47  ;;  %v4343_v58 = vpack.c.bf16 %v1572_v50, %v1570_v49  ;;  %v1073_v46 = vld [vmem:[%s5483_s18 + $0x520] sm:$0xff]  ;;  %v1075_v47 = vld [vmem:[%s5483_s18 + $0x530] sm:$0xff] }
 0x17d   : > { %4328 = vmatprep.subr.bf16.mxu0 %v4327_v59  ;;  %3541 = vmatprep.mubr.msk.f32.mxu1 %vm848_vm8, %v749_v19  ;;  %v1571_v59 = vld [vmem:[%s5483_s18 + $0x14b0] sm:$0xff]  ;;  %v4357_v43 = vpack.c.bf16 %v1583_v37, %v1581_v35  ;;  %v1585_v48 = vld [vmem:[%s5483_s18 + $0x1520] sm:$0xff]  ;;  %v3849_v56 = vpack.c.bf16 %v1075_v47, %v1073_v46  ;;  %v1608_v46 = vld [vmem:[%s5483_s18 + $0x15d8] sm:$0xff]  ;;  %v5953_v47 = vsub.s32 4, %v5581_v63 }
 0x17e   : > { %3557 = vmatprep.mubr.msk.f32.mxu0 %vm864_vm9, %v765_v22  ;;  %v4345_v2 = vpack.c.bf16 %v1571_v59, %v1569_v57  ;;  %v1067_v19 = vld [vmem:[%s5483_s18 + $0x4f0] sm:$0xff]  ;;  %v1077_v59 = vld [vmem:[%s5483_s18 + $0x540] sm:$0xff] }
 0x17f   : > { %3818 = vmatpush1.bf16.msra.mxu1 %v3817_v4  ;;  %v1061_v4 = vld [vmem:[%s5483_s18 + $0x4c0] sm:$0xff]  ;;  %v1579_v22 = vld [vmem:[%s5483_s18 + $0x14f0] sm:$0xff]  ;;  %v3841_v27 = vpack.c.bf16 %v1067_v19, %v1065_v18  ;;  %v1600_v18 = vld [vmem:[%s5483_s18 + $0x1598] sm:$0xff] }
 0x180   : > { %4330 = vmatpush1.bf16.msra.mxu0 %v4329_v7  ;;  %3820 = vmatprep.subr.bf16.mxu1 %v3819_v8  ;;  %v4347_v7 = vpack.c.bf16 %v1576_v62, %v1574_v33  ;;  %v1575_v8 = vld [vmem:[%s5483_s18 + $0x14d0] sm:$0xff]  ;;  %v4353_v29 = vpack.c.bf16 %v1579_v22, %v1577_v20  ;;  %v4369_v20 = vpack.c.bf16 %v1595_v12, %v1593_v10  ;;  %v1085_v22 = vld [vmem:[%s5483_s18 + $0x580] sm:$0xff]  ;;  %v798_v12 = vadd.s32 2560, %v5579_v61 }
 0x181   : > { %4332 = vmatprep.subr.bf16.mxu0 %v4331_v13  ;;  %v3837_v13 = vpack.c.bf16 %v1063_v5, %v1061_v4  ;;  %v4349_v16 = vpack.c.bf16 %v1575_v8, %v1573_v6  ;;  %v1587_v50 = vld [vmem:[%s5483_s18 + $0x1530] sm:$0xff]  ;;  %v1596_v4 = vld [vmem:[%s5483_s18 + $0x1578] sm:$0xff]  ;;  %v3853_v5 = vpack.c.bf16 %v1079_v28, %v1077_v59  ;;  %v1081_v8 = vld [vmem:[%s5483_s18 + $0x560] sm:$0xff]  ;;  %v5962_v59 = vsub.s32 7, %v5581_v63 }
 0x182   : > { %v4361_v57 = vpack.c.bf16 %v1587_v50, %v1585_v48  ;;  %v1591_v62 = vld [vmem:[%s5483_s18 + $0x1550] sm:$0xff]  ;;  %v3857_v19 = vpack.c.bf16 %v1083_v9, %v1081_v8  ;;  %v1089_v37 = vld [vmem:[%s5483_s18 + $0x5a0] sm:$0xff]  ;;  %v1610_v28 = vld [vmem:[%s5483_s18 + $0x15e8] sm:$0xff] }
 0x183   : > { %3822 = vmatpush1.bf16.msra.mxu1 %v3821_v23  ;;  %v1070_v23 = vld [vmem:[%s5483_s18 + $0x508] sm:$0xff]  ;;  %v4365_v6 = vpack.c.bf16 %v1591_v62, %v1589_v60  ;;  %v1612_v60 = vld [vmem:[%s5483_s18 + $0x15f8] sm:$0xff]  ;;  %v1099_v9 = vld [vmem:[%s5483_s18 + $0x5f0] sm:$0xff] }
 0x184   : > { %4334 = vmatpush1.bf16.msra.mxu0 %v4333_v24  ;;  %3824 = vmatprep.subr.bf16.mxu1 %v3823_v25  ;;  %v1072_v24 = vld [vmem:[%s5483_s18 + $0x518] sm:$0xff]  ;;  %v1582_v25 = vld [vmem:[%s5483_s18 + $0x1508] sm:$0xff]  ;;  %v1609_v10 = vld [vmem:[%s5483_s18 + $0x15e0] sm:$0xff] }
 0x185   : > { %4336 = vmatprep.subr.bf16.mxu0 %v4335_v31  ;;  %v3843_v31 = vpack.c.bf16 %v1072_v24, %v1070_v23  ;;  %v4355_v36 = vpack.c.bf16 %v1584_v26, %v1582_v25  ;;  %v1087_v23 = vld [vmem:[%s5483_s18 + $0x590] sm:$0xff]  ;;  %v1597_v24 = vld [vmem:[%s5483_s18 + $0x1580] sm:$0xff] }
 0x186   : > { %v1599_v26 = vld [vmem:[%s5483_s18 + $0x1590] sm:$0xff]  ;;  %v3861_v34 = vpack.c.bf16 %v1087_v23, %v1085_v22  ;;  %v519_v23 = vld [vmem:[%s5470_s5 + $0x38] sm:$0xff] }
 0x187   : > { %3826 = vmatpush1.bf16.msra.mxu1 %v3825_v38  ;;  %v1074_v38 = vld [vmem:[%s5483_s18 + $0x528] sm:$0xff]  ;;  %v4373_v35 = vpack.c.bf16 %v1599_v26, %v1597_v24  ;;  %v785_v24 = vadd.s32 896, %v5579_v61 }
 0x188   : > { %4338 = vmatpush1.bf16.msra.mxu0 %v4337_v39  ;;  %3828 = vmatprep.subr.bf16.mxu1 %v3827_v40  ;;  %v1076_v39 = vld [vmem:[%s5483_s18 + $0x538] sm:$0xff]  ;;  %v1586_v40 = vld [vmem:[%s5483_s18 + $0x1528] sm:$0xff] }
 0x189   : > { %4340 = vmatprep.subr.bf16.mxu0 %v4339_v44  ;;  %v3847_v44 = vpack.c.bf16 %v1076_v39, %v1074_v38  ;;  %v4359_v49 = vpack.c.bf16 %v1588_v41, %v1586_v40  ;;  %v1091_v38 = vld [vmem:[%s5483_s18 + $0x5b0] sm:$0xff]  ;;  %v1601_v39 = vld [vmem:[%s5483_s18 + $0x15a0] sm:$0xff] }
 0x18a   : > { %v1603_v41 = vld [vmem:[%s5483_s18 + $0x15b0] sm:$0xff]  ;;  %v3865_v48 = vpack.c.bf16 %v1091_v38, %v1089_v37  ;;  %v831_v38 = vadd.s32 %v5597_v15, %v798_v12  ;;  %v1109_v12 = vld [vmem:[%s5483_s18 + $0x640] sm:$0xff] }
 0x18b   : > { %3830 = vmatpush1.bf16.msra.mxu1 %v3829_v51  ;;  %v1078_v51 = vld [vmem:[%s5483_s18 + $0x548] sm:$0xff]  ;;  %v1103_v37 = vld [vmem:[%s5483_s18 + $0x610] sm:$0xff] }
 0x18c   : > { %4342 = vmatpush1.bf16.msra.mxu0 %v4341_v52  ;;  %3832 = vmatprep.subr.bf16.mxu1 %v3831_v54  ;;  %v1080_v52 = vld [vmem:[%s5483_s18 + $0x558] sm:$0xff]  ;;  %v1590_v54 = vld [vmem:[%s5483_s18 + $0x1548] sm:$0xff]  ;;  %vm863_vm11 = vcmp.lt.s32.totalorder %v831_v38, 17114 }
 0x18d   : > { %4344 = vmatprep.subr.bf16.mxu0 %v4343_v58  ;;  %v3851_v58 = vpack.c.bf16 %v1080_v52, %v1078_v51  ;;  %v4363_v33 = vpack.c.bf16 %v1592_v55, %v1590_v54  ;;  %v1093_v51 = vld [vmem:[%s5483_s18 + $0x5c0] sm:$0xff]  ;;  %v1095_v52 = vld [vmem:[%s5483_s18 + $0x5d0] sm:$0xff] }
 0x18e   : > { %v1605_v54 = vld [vmem:[%s5483_s18 + $0x15c0] sm:$0xff] }
 0x18f   : > { %3834 = vmatpush1.bf16.msra.mxu1 %v3833_v0  ;;  %v1082_v0 = vld [vmem:[%s5483_s18 + $0x568] sm:$0xff] }
 0x190   : > { %4346 = vmatpush1.bf16.msra.mxu0 %v4345_v2  ;;  %3836 = vmatprep.subr.bf16.mxu1 %v3835_v3  ;;  %v1084_v2 = vld [vmem:[%s5483_s18 + $0x578] sm:$0xff]  ;;  %v1594_v3 = vld [vmem:[%s5483_s18 + $0x1568] sm:$0xff] }
 0x191   : > { %4348 = vmatprep.subr.bf16.mxu0 %v4347_v7  ;;  %v3855_v7 = vpack.c.bf16 %v1084_v2, %v1082_v0  ;;  %v4367_v11 = vpack.c.bf16 %v1596_v4, %v1594_v3  ;;  %v3869_v0 = vpack.c.bf16 %v1095_v52, %v1093_v51  ;;  %v1097_v2 = vld [vmem:[%s5483_s18 + $0x5e0] sm:$0xff]  ;;  %v782_v4 = vadd.s32 512, %v5579_v61 }
 0x192   : > { %v516_v3 = vld [vmem:[%s5470_s5 + $0x20] sm:$0xff]  ;;  %v3873_v26 = vpack.c.bf16 %v1099_v9, %v1097_v2  ;;  %v1110_v2 = vld [vmem:[%s5483_s18 + $0x648] sm:$0xff] }
 0x193   : > { %3838 = vmatpush1.bf16.msra.mxu1 %v3837_v13  ;;  %v1086_v13 = vld [vmem:[%s5483_s18 + $0x588] sm:$0xff] }
 0x194   : > { %4350 = vmatpush1.bf16.msra.mxu0 %v4349_v16  ;;  %3840 = vmatprep.subr.bf16.mxu1 %v3839_v17  ;;  %v1088_v16 = vld [vmem:[%s5483_s18 + $0x598] sm:$0xff]  ;;  %v1598_v17 = vld [vmem:[%s5483_s18 + $0x1588] sm:$0xff] }
 0x195   : > { %4352 = vmatprep.subr.bf16.mxu0 %v4351_v21  ;;  %v3859_v21 = vpack.c.bf16 %v1088_v16, %v1086_v13  ;;  %v4371_v25 = vpack.c.bf16 %v1600_v18, %v1598_v17  ;;  %v4383_v13 = vpack.c.bf16 %v1612_v60, %v1610_v28  ;;  %v1611_v16 = vld [vmem:[%s5483_s18 + $0x15f0] sm:$0xff]  ;;  %v1102_v17 = vld [vmem:[%s5483_s18 + $0x608] sm:$0xff]  ;;  %v1104_v18 = vld [vmem:[%s5483_s18 + $0x618] sm:$0xff] }
 0x196   : > { %v1107_v28 = vld [vmem:[%s5483_s18 + $0x630] sm:$0xff]  ;;  %v1617_v60 = vld [vmem:[%s5483_s18 + $0x1620] sm:$0xff] }
 0x197   : > { %3842 = vmatpush1.bf16.msra.mxu1 %v3841_v27  ;;  %v1090_v27 = vld [vmem:[%s5483_s18 + $0x5a8] sm:$0xff] }
 0x198   : > { %4354 = vmatpush1.bf16.msra.mxu0 %v4353_v29  ;;  %3844 = vmatprep.subr.bf16.mxu1 %v3843_v31  ;;  %v1092_v29 = vld [vmem:[%s5483_s18 + $0x5b8] sm:$0xff]  ;;  %v1602_v31 = vld [vmem:[%s5483_s18 + $0x15a8] sm:$0xff] }
 0x199   : > { %4356 = vmatprep.subr.bf16.mxu0 %v4355_v36  ;;  %v3863_v36 = vpack.c.bf16 %v1092_v29, %v1090_v27  ;;  %v4375_v40 = vpack.c.bf16 %v1604_v32, %v1602_v31  ;;  %v815_v27 = vadd.s32 %v5597_v15, %v782_v4  ;;  %v535_v31 = vld [vmem:[%s5470_s5 + $0xb8] sm:$0xff]  ;;  %v801_v32 = vadd.s32 2944, %v5579_v61 }
 0x19b   : > { %3846 = vmatpush1.bf16.msra.mxu1 %v3845_v42  ;;  %v1094_v42 = vld [vmem:[%s5483_s18 + $0x5c8] sm:$0xff]  ;;  %vm847_vm10 = vcmp.lt.s32.totalorder %v815_v27, 17114  ;;  %v1115_v27 = vld [vmem:[%s5483_s18 + $0x670] sm:$0xff] }
 0x19c   : > { %4358 = vmatpush1.bf16.msra.mxu0 %v4357_v43  ;;  %3848 = vmatprep.subr.bf16.mxu1 %v3847_v44  ;;  %v1096_v43 = vld [vmem:[%s5483_s18 + $0x5d8] sm:$0xff]  ;;  %v1606_v44 = vld [vmem:[%s5483_s18 + $0x15c8] sm:$0xff] }
 0x19d   : > { %4360 = vmatprep.subr.bf16.mxu0 %v4359_v49  ;;  %v4377_v49 = vpack.c.bf16 %v1603_v41, %v1601_v39  ;;  %v3867_v50 = vpack.c.bf16 %v1096_v43, %v1094_v42  ;;  %v4379_v55 = vpack.c.bf16 %v1608_v46, %v1606_v44  ;;  %v1613_v39 = vld [vmem:[%s5483_s18 + $0x1600] sm:$0xff]  ;;  %v1615_v41 = vld [vmem:[%s5483_s18 + $0x1610] sm:$0xff]  ;;  %v1106_v42 = vld [vmem:[%s5483_s18 + $0x628] sm:$0xff] }
 0x19e   : > { %v1108_v43 = vld [vmem:[%s5483_s18 + $0x638] sm:$0xff] }
 0x19f   : > { %3850 = vmatpush1.bf16.msra.mxu1 %v3849_v56  ;;  %v1607_v56 = vld [vmem:[%s5483_s18 + $0x15d0] sm:$0xff] }
 0x1a0   : > { %4362 = vmatpush1.bf16.msra.mxu0 %v4361_v57  ;;  %3852 = vmatprep.subr.bf16.mxu1 %v3851_v58  ;;  %v1098_v57 = vld [vmem:[%s5483_s18 + $0x5e8] sm:$0xff]  ;;  %v1100_v58 = vld [vmem:[%s5483_s18 + $0x5f8] sm:$0xff] }
 0x1a1   : > { %4364 = vmatprep.subr.bf16.mxu0 %v4363_v33  ;;  %v5967_v33 = vld [vmem:[%s5477_s21] sm:$0xff]  ;;  %v3871_v8 = vpack.c.bf16 %v1100_v58, %v1098_v57  ;;  %v3879_v57 = vpack.c.bf16 %v1108_v43, %v1106_v42  ;;  %v1119_v42 = vld [vmem:[%s5483_s18 + $0x690] sm:$0xff] }
 0x1a2   : > { %v571_v62 = vrot.slane %v5967_v33, %v5953_v47  ;;  %v1105_v58 = vld [vmem:[%s5483_s18 + $0x620] sm:$0xff] }
 0x1a3   : > { %3854 = vmatpush1.bf16.msra.mxu1 %v3853_v5  ;;  %v5975_v5 = vld [vmem:[%s5477_s21 + $0x10] sm:$0xff]  ;;  %v3881_v9 = vpack.c.bf16 %v1107_v28, %v1105_v58  ;;  %v1629_v43 = vld [vmem:[%s5483_s18 + $0x1680] sm:$0xff] }
 0x1a4   : > { %4366 = vmatpush1.bf16.msra.mxu0 %v4365_v6  ;;  %3856 = vmatprep.subr.bf16.mxu1 %v3855_v7  ;;  %v635_v6 = vrot.slane %v5975_v5, %v5953_v47  ;;  %v4381_v7 = vpack.c.bf16 %v1607_v56, %v1605_v54  ;;  %v716_v22 = vmul.f32 %v571_v62, %v516_v3  ;;  %v1112_v3 = vld [vmem:[%s5483_s18 + $0x658] sm:$0xff]  ;;  %v1633_v58 = vld [vmem:[%s5483_s18 + $0x16a0] sm:$0xff] }
 0x1a5   : > { %4368 = vmatprep.subr.bf16.mxu0 %v4367_v11  ;;  %v532_v11 = vld [vmem:[%s5470_s5 + $0xa0] sm:$0xff]  ;;  %v4389_v56 = vpack.c.bf16 %v1615_v41, %v1613_v39 }
 0x1a6   : > { %v732_v29 = vmul.f32 %v635_v6, %v532_v11  ;;  %v748_v46 = vmax.f32 %v716_v22, 0.0  ;;  %v1622_v6 = vld [vmem:[%s5483_s18 + $0x1648] sm:$0xff]  ;;  %v3883_v11 = vpack.c.bf16 %v1112_v3, %v1110_v2  ;;  %v1628_v22 = vld [vmem:[%s5483_s18 + $0x1678] sm:$0xff]  ;;  %v1117_v41 = vld [vmem:[%s5483_s18 + $0x680] sm:$0xff] }
 0x1a7   : > { %3858 = vmatpush1.bf16.msra.mxu1 %v3857_v19  ;;  %v583_v19 = vrot.slane %v5967_v33, %v5962_v59  ;;  %v1638_v2 = vld [vmem:[%s5483_s18 + $0x16c8] sm:$0xff]  ;;  %v1640_v3 = vld [vmem:[%s5483_s18 + $0x16d8] sm:$0xff] }
 0x1a8   : > { %4370 = vmatpush1.bf16.msra.mxu0 %v4369_v20  ;;  %3860 = vmatprep.subr.bf16.mxu1 %v3859_v21  ;;  %v1614_v20 = vld [vmem:[%s5483_s18 + $0x1608] sm:$0xff]  ;;  %v1616_v21 = vld [vmem:[%s5483_s18 + $0x1618] sm:$0xff]  ;;  %v764_v54 = vmax.f32 %v732_v29, 0.0  ;;  %v1625_v29 = vld [vmem:[%s5483_s18 + $0x1660] sm:$0xff] }
 0x1a9   : > { %4372 = vmatprep.subr.bf16.mxu0 %v4371_v25  ;;  %v647_v25 = vrot.slane %v5975_v5, %v5962_v59  ;;  %v719_v44 = vmul.f32 %v583_v19, %v519_v23  ;;  %v1114_v19 = vld [vmem:[%s5483_s18 + $0x668] sm:$0xff] }
 0x1ab   : > { %3862 = vmatpush1.bf16.msra.mxu1 %v3861_v34  ;;  %v4385_v34 = vpack.c.bf16 %v1611_v16, %v1609_v10  ;;  %v735_v51 = vmul.f32 %v647_v25, %v535_v31  ;;  %v751_v4 = vmax.f32 %v719_v44, 0.0  ;;  %v1621_v16 = vld [vmem:[%s5483_s18 + $0x1640] sm:$0xff] }
 0x1ac   : > { %4374 = vmatpush1.bf16.msra.mxu0 %v4373_v35  ;;  %3864 = vmatprep.subr.bf16.mxu1 %v3863_v36  ;;  %v3875_v35 = vpack.c.bf16 %v1104_v18, %v1102_v17  ;;  %v1101_v36 = vld [vmem:[%s5483_s18 + $0x600] sm:$0xff]  ;;  %v1623_v18 = vld [vmem:[%s5483_s18 + $0x1650] sm:$0xff] }
 0x1ad   : > { %4376 = vmatprep.subr.bf16.mxu0 %v4375_v40  ;;  %v4387_v40 = vpack.c.bf16 %v1616_v21, %v1614_v20  ;;  %v3877_v52 = vpack.c.bf16 %v1103_v37, %v1101_v36  ;;  %v1116_v20 = vld [vmem:[%s5483_s18 + $0x678] sm:$0xff]  ;;  %v1626_v21 = vld [vmem:[%s5483_s18 + $0x1668] sm:$0xff] }
 0x1ae   : > { %v3887_v25 = vpack.c.bf16 %v1116_v20, %v1114_v19  ;;  %v4399_v31 = vpack.c.bf16 %v1628_v22, %v1626_v21  ;;  %v1630_v36 = vld [vmem:[%s5483_s18 + $0x1688] sm:$0xff]  ;;  %v1632_v37 = vld [vmem:[%s5483_s18 + $0x1698] sm:$0xff]  ;;  %v1129_v22 = vld [vmem:[%s5483_s18 + $0x6e0] sm:$0xff] }
 0x1af   : > { %3866 = vmatpush1.bf16.msra.mxu1 %v3865_v48  ;;  %v1618_v48 = vld [vmem:[%s5483_s18 + $0x1628] sm:$0xff]  ;;  %v4403_v44 = vpack.c.bf16 %v1632_v37, %v1630_v36  ;;  %v1133_v37 = vld [vmem:[%s5483_s18 + $0x700] sm:$0xff] }
 0x1b0   : > { %4378 = vmatpush1.bf16.msra.mxu0 %v4377_v49  ;;  %3868 = vmatprep.subr.bf16.mxu1 %v3867_v50  ;;  %v1620_v49 = vld [vmem:[%s5483_s18 + $0x1638] sm:$0xff]  ;;  %v818_v50 = vadd.s32 %v5597_v15, %v785_v24  ;;  %v4397_v24 = vpack.c.bf16 %v1623_v18, %v1621_v16 }
 0x1b1   : > { %4380 = vmatprep.subr.bf16.mxu0 %v4379_v55  ;;  %v834_v55 = vadd.s32 %v5597_v15, %v801_v32  ;;  %v4391_v62 = vpack.c.bf16 %v1620_v49, %v1618_v48  ;;  %v1627_v32 = vld [vmem:[%s5483_s18 + $0x1670] sm:$0xff]  ;;  %v1122_v48 = vld [vmem:[%s5483_s18 + $0x6a8] sm:$0xff]  ;;  %v1124_v49 = vld [vmem:[%s5483_s18 + $0x6b8] sm:$0xff] }
 0x1b2   : > { %vm850_vm12 = vcmp.lt.s32.totalorder %v818_v50, 17114  ;;  %v4401_v39 = vpack.c.bf16 %v1627_v32, %v1625_v29  ;;  %v1634_v50 = vld [vmem:[%s5483_s18 + $0x16a8] sm:$0xff]  ;;  %v1132_v16 = vld [vmem:[%s5483_s18 + $0x6f8] sm:$0xff] }
 0x1b3   : > { %3870 = vmatpush1.bf16.msra.mxu1 %v3869_v0  ;;  %v1619_v0 = vld [vmem:[%s5483_s18 + $0x1630] sm:$0xff]  ;;  %vm866_vm13 = vcmp.lt.s32.totalorder %v834_v55, 17114  ;;  %v3895_v55 = vpack.c.bf16 %v1124_v49, %v1122_v48  ;;  %v1644_v18 = vld [vmem:[%s5483_s18 + $0x16f8] sm:$0xff] }
 0x1b4   : > { %4382 = vmatpush1.bf16.msra.mxu0 %v4381_v7  ;;  %3872 = vmatprep.subr.bf16.mxu1 %v3871_v8  ;;  %v1624_v7 = vld [vmem:[%s5483_s18 + $0x1658] sm:$0xff]  ;;  %v767_v8 = vmax.f32 %v735_v51, 0.0  ;;  %v4393_v10 = vpack.c.bf16 %v1619_v0, %v1617_v60  ;;  %v1635_v60 = vld [vmem:[%s5483_s18 + $0x16b0] sm:$0xff] }
 0x1b5   : > { %4384 = vmatprep.subr.bf16.mxu0 %v4383_v13  ;;  %v1111_v13 = vld [vmem:[%s5483_s18 + $0x650] sm:$0xff]  ;;  %v4395_v17 = vpack.c.bf16 %v1624_v7, %v1622_v6  ;;  %v1636_v51 = vld [vmem:[%s5483_s18 + $0x16b8] sm:$0xff]  ;;  %v4409_v6 = vpack.c.bf16 %v1635_v60, %v1633_v58 }
 0x1b6   : > { %v3885_v23 = vpack.c.bf16 %v1111_v13, %v1109_v12  ;;  %v4407_v28 = vpack.c.bf16 %v1636_v51, %v1634_v50  ;;  %v1128_v0 = vld [vmem:[%s5483_s18 + $0x6d8] sm:$0xff]  ;;  %v1639_v12 = vld [vmem:[%s5483_s18 + $0x16d0] sm:$0xff]  ;;  %v1130_v13 = vld [vmem:[%s5483_s18 + $0x6e8] sm:$0xff] }
 0x1b7   : > { %3874 = vmatpush1.bf16.msra.mxu1 %v3873_v26  ;;  %v1113_v26 = vld [vmem:[%s5483_s18 + $0x660] sm:$0xff]  ;;  %v3903_v21 = vpack.c.bf16 %v1132_v16, %v1130_v13  ;;  %v1136_v29 = vld [vmem:[%s5483_s18 + $0x718] sm:$0xff] }
 0x1b8   : > { %4386 = vmatpush1.bf16.msra.mxu0 %v4385_v34  ;;  %3876 = vmatprep.subr.bf16.mxu1 %v3875_v35  ;;  %v1118_v34 = vld [vmem:[%s5483_s18 + $0x688] sm:$0xff]  ;;  %v1120_v35 = vld [vmem:[%s5483_s18 + $0x698] sm:$0xff]  ;;  %v3889_v38 = vpack.c.bf16 %v1115_v27, %v1113_v26  ;;  %v1643_v26 = vld [vmem:[%s5483_s18 + $0x16f0] sm:$0xff] }
 0x1b9   : > { %4388 = vmatprep.subr.bf16.mxu0 %v4387_v40  ;;  %v3891_v40 = vpack.c.bf16 %v1120_v35, %v1118_v34  ;;  %v1134_v27 = vld [vmem:[%s5483_s18 + $0x708] sm:$0xff]  ;;  %v1648_v32 = vld [vmem:[%s5483_s18 + $0x1718] sm:$0xff]  ;;  %v1137_v51 = vld [vmem:[%s5483_s18 + $0x720] sm:$0xff] }
 0x1ba   : > { %3542 = vmatmul.mubr.msk.f32.vlgmr.msra.gmra.mrb[0].mxu1 %vm847_vm10, %v748_v46  ;;  %v1631_v46 = vld [vmem:[%s5483_s18 + $0x1690] sm:$0xff]  ;;  %v3907_v36 = vpack.c.bf16 %v1136_v29, %v1134_v27  ;;  %v1144_v58 = vld [vmem:[%s5483_s18 + $0x758] sm:$0xff] }
 0x1bb   : > { %3878 = vmatpush1.bf16.msra.mxu1 %v3877_v52  ;;  %3558 = vmatmul.mubr.msk.f32.vlgmr.msra.gmra.mrb[0].mxu0 %vm863_vm11, %v764_v54  ;;  %v3893_v52 = vpack.c.bf16 %v1119_v42, %v1117_v41  ;;  %v4405_v54 = vpack.c.bf16 %v1631_v46, %v1629_v43  ;;  %v1647_v41 = vld [vmem:[%s5483_s18 + $0x1710] sm:$0xff]  ;;  %v1138_v42 = vld [vmem:[%s5483_s18 + $0x728] sm:$0xff]  ;;  %v1140_v43 = vld [vmem:[%s5483_s18 + $0x738] sm:$0xff] }
 0x1bc   : > { %4390 = vmatpush1.bf16.msra.mxu0 %v4389_v56  ;;  %3880 = vmatprep.subr.bf16.mxu1 %v3879_v57  ;;  %v1121_v56 = vld [vmem:[%s5483_s18 + $0x6a0] sm:$0xff]  ;;  %v1123_v57 = vld [vmem:[%s5483_s18 + $0x6b0] sm:$0xff]  ;;  %v1652_v46 = vld [vmem:[%s5483_s18 + $0x1738] sm:$0xff]  ;;  %v3911_v50 = vpack.c.bf16 %v1140_v43, %v1138_v42 }
 0x1bd   : > { %4392 = vmatprep.subr.bf16.mxu0 %v4391_v62  ;;  %3543 = vmatprep.mubr.msk.f32.mxu1 %vm850_vm12, %v751_v4  ;;  %v1126_v62 = vld [vmem:[%s5483_s18 + $0x6c8] sm:$0xff]  ;;  %v3897_v4 = vpack.c.bf16 %v1123_v57, %v1121_v56  ;;  %v1651_v56 = vld [vmem:[%s5483_s18 + $0x1730] sm:$0xff]  ;;  %v1656_v60 = vld [vmem:[%s5483_s18 + $0x1758] sm:$0xff] }
 0x1be   : > { %3559 = vmatprep.mubr.msk.f32.mxu0 %vm866_vm13, %v767_v8  ;;  %v3899_v7 = vpack.c.bf16 %v1128_v0, %v1126_v62  ;;  %v1125_v8 = vld [vmem:[%s5483_s18 + $0x6c0] sm:$0xff]  ;;  %v1142_v57 = vld [vmem:[%s5483_s18 + $0x748] sm:$0xff] }
 0x1bf   : > { %3882 = vmatpush1.bf16.msra.mxu1 %v3881_v9  ;;  %v1127_v9 = vld [vmem:[%s5483_s18 + $0x6d0] sm:$0xff] }
 0x1c0   : > { %4394 = vmatpush1.bf16.msra.mxu0 %v4393_v10  ;;  %3884 = vmatprep.subr.bf16.mxu1 %v3883_v11  ;;  %v1637_v10 = vld [vmem:[%s5483_s18 + $0x16c0] sm:$0xff]  ;;  %v4411_v11 = vpack.c.bf16 %v1640_v3, %v1638_v2  ;;  %v3901_v19 = vpack.c.bf16 %v1127_v9, %v1125_v8  ;;  %v3915_v2 = vpack.c.bf16 %v1144_v58, %v1142_v57  ;;  %v1655_v8 = vld [vmem:[%s5483_s18 + $0x1750] sm:$0xff]  ;;  %v1146_v9 = vld [vmem:[%s5483_s18 + $0x768] sm:$0xff]  ;;  %v6117_v57 = vsub.s32 6, %v5581_v63 }
 0x1c1   : > { %4396 = vmatprep.subr.bf16.mxu0 %v4395_v17  ;;  %v1642_v17 = vld [vmem:[%s5483_s18 + $0x16e8] sm:$0xff]  ;;  %v4413_v20 = vpack.c.bf16 %v1639_v12, %v1637_v10  ;;  %v1141_v3 = vld [vmem:[%s5483_s18 + $0x740] sm:$0xff]  ;;  %v1148_v10 = vld [vmem:[%s5483_s18 + $0x778] sm:$0xff] }
 0x1c2   : > { %v1660_v12 = vld [vmem:[%s5483_s18 + $0x1778] sm:$0xff] }
 0x1c3   : > { %3886 = vmatpush1.bf16.msra.mxu1 %v3885_v23  ;;  %v1131_v23 = vld [vmem:[%s5483_s18 + $0x6f0] sm:$0xff]  ;;  %v1164_v63 = vld [vmem:[%s5483_s18 + $0x7f8] sm:$0xff] }
 0x1c4   : > { %4398 = vmatpush1.bf16.msra.mxu0 %v4397_v24  ;;  %3888 = vmatprep.subr.bf16.mxu1 %v3887_v25  ;;  %v1641_v24 = vld [vmem:[%s5483_s18 + $0x16e0] sm:$0xff]  ;;  %v4415_v25 = vpack.c.bf16 %v1644_v18, %v1642_v17  ;;  %v3905_v34 = vpack.c.bf16 %v1131_v23, %v1129_v22  ;;  %v3919_v17 = vpack.c.bf16 %v1148_v10, %v1146_v9  ;;  %v1659_v22 = vld [vmem:[%s5483_s18 + $0x1770] sm:$0xff]  ;;  %v1150_v23 = vld [vmem:[%s5483_s18 + $0x788] sm:$0xff] }
 0x1c5   : > { %4400 = vmatprep.subr.bf16.mxu0 %v4399_v31  ;;  %v1646_v31 = vld [vmem:[%s5483_s18 + $0x1708] sm:$0xff]  ;;  %v4417_v35 = vpack.c.bf16 %v1643_v26, %v1641_v24  ;;  %v1145_v18 = vld [vmem:[%s5483_s18 + $0x760] sm:$0xff]  ;;  %v1152_v24 = vld [vmem:[%s5483_s18 + $0x798] sm:$0xff]  ;;  %v579_v9 = vrot.slane %v5967_v33, %v6117_v57 }
 0x1c6   : > { %v1664_v26 = vld [vmem:[%s5483_s18 + $0x1798] sm:$0xff]  ;;  %v6130_v10 = vld [vmem:[%s5477_s21 + $0x8] sm:$0xff] }
 0x1c7   : > { %3890 = vmatpush1.bf16.msra.mxu1 %v3889_v38  ;;  %v1135_v38 = vld [vmem:[%s5483_s18 + $0x710] sm:$0xff] }
 0x1c8   : > { %4402 = vmatpush1.bf16.msra.mxu0 %v4401_v39  ;;  %3892 = vmatprep.subr.bf16.mxu1 %v3891_v40  ;;  %v1645_v39 = vld [vmem:[%s5483_s18 + $0x1700] sm:$0xff]  ;;  %v4419_v40 = vpack.c.bf16 %v1648_v32, %v1646_v31  ;;  %v3909_v48 = vpack.c.bf16 %v1135_v38, %v1133_v37  ;;  %v3923_v31 = vpack.c.bf16 %v1152_v24, %v1150_v23  ;;  %v1663_v37 = vld [vmem:[%s5483_s18 + $0x1790] sm:$0xff]  ;;  %v1154_v38 = vld [vmem:[%s5483_s18 + $0x7a8] sm:$0xff]  ;;  %v800_v23 = vadd.s32 2816, %v5579_v61 }
 0x1c9   : > { %4404 = vmatprep.subr.bf16.mxu0 %v4403_v44  ;;  %v1650_v44 = vld [vmem:[%s5483_s18 + $0x1728] sm:$0xff]  ;;  %v4421_v49 = vpack.c.bf16 %v1647_v41, %v1645_v39  ;;  %v1149_v32 = vld [vmem:[%s5483_s18 + $0x780] sm:$0xff]  ;;  %v1156_v39 = vld [vmem:[%s5483_s18 + $0x7b8] sm:$0xff] }
 0x1ca   : > { %v1668_v41 = vld [vmem:[%s5483_s18 + $0x17b8] sm:$0xff] }
 0x1cb   : > { %3894 = vmatpush1.bf16.msra.mxu1 %v3893_v52  ;;  %v1139_v52 = vld [vmem:[%s5483_s18 + $0x730] sm:$0xff] }
 0x1cc   : > { %4406 = vmatpush1.bf16.msra.mxu0 %v4405_v54  ;;  %3896 = vmatprep.subr.bf16.mxu1 %v3895_v55  ;;  %v1649_v54 = vld [vmem:[%s5483_s18 + $0x1720] sm:$0xff]  ;;  %v4423_v55 = vpack.c.bf16 %v1652_v46, %v1650_v44  ;;  %v3913_v62 = vpack.c.bf16 %v1139_v52, %v1137_v51  ;;  %v3927_v44 = vpack.c.bf16 %v1156_v39, %v1154_v38  ;;  %v1667_v51 = vld [vmem:[%s5483_s18 + $0x17b0] sm:$0xff]  ;;  %v1158_v52 = vld [vmem:[%s5483_s18 + $0x7c8] sm:$0xff] }
 0x1cd   : > { %4408 = vmatprep.subr.bf16.mxu0 %v4407_v28  ;;  %v1654_v28 = vld [vmem:[%s5483_s18 + $0x1748] sm:$0xff]  ;;  %v4425_v0 = vpack.c.bf16 %v1651_v56, %v1649_v54  ;;  %v1153_v46 = vld [vmem:[%s5483_s18 + $0x7a0] sm:$0xff]  ;;  %v1160_v54 = vld [vmem:[%s5483_s18 + $0x7d8] sm:$0xff] }
 0x1ce   : > { %v1672_v56 = vld [vmem:[%s5483_s18 + $0x17d8] sm:$0xff] }
 0x1cf   : > { %3898 = vmatpush1.bf16.msra.mxu1 %v3897_v4  ;;  %v1143_v4 = vld [vmem:[%s5483_s18 + $0x750] sm:$0xff] }
 0x1d0   : > { %4410 = vmatpush1.bf16.msra.mxu0 %v4409_v6  ;;  %3900 = vmatprep.subr.bf16.mxu1 %v3899_v7  ;;  %v1653_v6 = vld [vmem:[%s5483_s18 + $0x1740] sm:$0xff]  ;;  %v4427_v7 = vpack.c.bf16 %v1656_v60, %v1654_v28  ;;  %v3917_v13 = vpack.c.bf16 %v1143_v4, %v1141_v3  ;;  %v3931_v60 = vpack.c.bf16 %v1160_v54, %v1158_v52  ;;  %v1671_v4 = vld [vmem:[%s5483_s18 + $0x17d0] sm:$0xff]  ;;  %v1170_v52 = vld [vmem:[%s5483_s18 + $0x828] sm:$0xff] }
 0x1d1   : > { %4412 = vmatprep.subr.bf16.mxu0 %v4411_v11  ;;  %v1658_v11 = vld [vmem:[%s5483_s18 + $0x1768] sm:$0xff]  ;;  %v4429_v16 = vpack.c.bf16 %v1655_v8, %v1653_v6  ;;  %v1676_v8 = vld [vmem:[%s5483_s18 + $0x17f8] sm:$0xff] }
 0x1d2   : > { %v1162_v6 = vld [vmem:[%s5483_s18 + $0x7e8] sm:$0xff]  ;;  %v1172_v54 = vld [vmem:[%s5483_s18 + $0x838] sm:$0xff] }
 0x1d3   : > { %3902 = vmatpush1.bf16.msra.mxu1 %v3901_v19  ;;  %v1147_v19 = vld [vmem:[%s5483_s18 + $0x770] sm:$0xff] }
 0x1d4   : > { %4414 = vmatpush1.bf16.msra.mxu0 %v4413_v20  ;;  %3904 = vmatprep.subr.bf16.mxu1 %v3903_v21  ;;  %v1657_v20 = vld [vmem:[%s5483_s18 + $0x1760] sm:$0xff]  ;;  %v4431_v21 = vpack.c.bf16 %v1660_v12, %v1658_v11  ;;  %v3921_v27 = vpack.c.bf16 %v1147_v19, %v1145_v18  ;;  %v6138_v18 = vld [vmem:[%s5477_s21 + $0x18] sm:$0xff]  ;;  %v3935_v19 = vpack.c.bf16 %v1164_v63, %v1162_v6 }
 0x1d5   : > { %4416 = vmatprep.subr.bf16.mxu0 %v4415_v25  ;;  %v1662_v25 = vld [vmem:[%s5483_s18 + $0x1788] sm:$0xff]  ;;  %v4433_v29 = vpack.c.bf16 %v1659_v22, %v1657_v20  ;;  %v1161_v12 = vld [vmem:[%s5483_s18 + $0x7e0] sm:$0xff]  ;;  %v1163_v20 = vld [vmem:[%s5483_s18 + $0x7f0] sm:$0xff]  ;;  %v3943_v6 = vpack.c.bf16 %v1172_v54, %v1170_v52 }
 0x1d6   : > { %v534_v22 = vld [vmem:[%s5470_s5 + $0xb0] sm:$0xff]  ;;  %v1169_v63 = vld [vmem:[%s5483_s18 + $0x820] sm:$0xff] }
 0x1d7   : > { %3906 = vmatpush1.bf16.msra.mxu1 %v3905_v34  ;;  %v1151_v34 = vld [vmem:[%s5483_s18 + $0x790] sm:$0xff]  ;;  %v1693_v54 = vld [vmem:[%s5483_s18 + $0x1880] sm:$0xff] }
 0x1d8   : > { %4418 = vmatpush1.bf16.msra.mxu0 %v4417_v35  ;;  %3908 = vmatprep.subr.bf16.mxu1 %v3907_v36  ;;  %v1661_v35 = vld [vmem:[%s5483_s18 + $0x1780] sm:$0xff]  ;;  %v4435_v36 = vpack.c.bf16 %v1664_v26, %v1662_v25  ;;  %v3925_v42 = vpack.c.bf16 %v1151_v34, %v1149_v32  ;;  %v1675_v25 = vld [vmem:[%s5483_s18 + $0x17f0] sm:$0xff]  ;;  %v1166_v26 = vld [vmem:[%s5483_s18 + $0x808] sm:$0xff] }
 0x1d9   : > { %4420 = vmatprep.subr.bf16.mxu0 %v4419_v40  ;;  %v1666_v40 = vld [vmem:[%s5483_s18 + $0x17a8] sm:$0xff]  ;;  %v4437_v43 = vpack.c.bf16 %v1663_v37, %v1661_v35  ;;  %v787_v35 = vadd.s32 1152, %v5579_v61  ;;  %v3937_v37 = vpack.c.bf16 %v1163_v20, %v1161_v12  ;;  %v1183_v52 = vld [vmem:[%s5483_s18 + $0x890] sm:$0xff] }
 0x1da   : > { %v521_v34 = vld [vmem:[%s5470_s5 + $0x48] sm:$0xff] }
 0x1db   : > { %3910 = vmatpush1.bf16.msra.mxu1 %v3909_v48  ;;  %v1155_v48 = vld [vmem:[%s5483_s18 + $0x7b0] sm:$0xff]  ;;  %v1174_v12 = vld [vmem:[%s5483_s18 + $0x848] sm:$0xff] }
 0x1dc   : > { %4422 = vmatpush1.bf16.msra.mxu0 %v4421_v49  ;;  %3912 = vmatprep.subr.bf16.mxu1 %v3911_v50  ;;  %v1665_v49 = vld [vmem:[%s5483_s18 + $0x17a0] sm:$0xff]  ;;  %v4439_v50 = vpack.c.bf16 %v1668_v41, %v1666_v40  ;;  %v3929_v58 = vpack.c.bf16 %v1155_v48, %v1153_v46  ;;  %v537_v40 = vld [vmem:[%s5470_s5 + $0xc8] sm:$0xff]  ;;  %v803_v41 = vadd.s32 3200, %v5579_v61  ;;  %v1167_v46 = vld [vmem:[%s5483_s18 + $0x810] sm:$0xff]  ;;  %v833_v48 = vadd.s32 %v5597_v15, %v800_v23 }
 0x1dd   : > { %4424 = vmatprep.subr.bf16.mxu0 %v4423_v55  ;;  %v1670_v55 = vld [vmem:[%s5483_s18 + $0x17c8] sm:$0xff]  ;;  %v4441_v28 = vpack.c.bf16 %v1667_v51, %v1665_v49  ;;  %v1677_v49 = vld [vmem:[%s5483_s18 + $0x1800] sm:$0xff]  ;;  %v1679_v51 = vld [vmem:[%s5483_s18 + $0x1810] sm:$0xff] }
 0x1de   : > { %v4443_v3 = vpack.c.bf16 %v1672_v56, %v1670_v55  ;;  %vm865_vm15 = vcmp.lt.s32.totalorder %v833_v48, 17114  ;;  %v1173_v23 = vld [vmem:[%s5483_s18 + $0x840] sm:$0xff] }
 0x1df   : > { %3914 = vmatpush1.bf16.msra.mxu1 %v3913_v62  ;;  %v1157_v62 = vld [vmem:[%s5483_s18 + $0x7c0] sm:$0xff] }
 0x1e0   : > { %4426 = vmatpush1.bf16.msra.mxu0 %v4425_v0  ;;  %3916 = vmatprep.subr.bf16.mxu1 %v3915_v2  ;;  %v1159_v0 = vld [vmem:[%s5483_s18 + $0x7d0] sm:$0xff]  ;;  %v1669_v2 = vld [vmem:[%s5483_s18 + $0x17c0] sm:$0xff] }
 0x1e1   : > { %4428 = vmatprep.subr.bf16.mxu0 %v4427_v7  ;;  %v1674_v7 = vld [vmem:[%s5483_s18 + $0x17e8] sm:$0xff]  ;;  %v3933_v11 = vpack.c.bf16 %v1159_v0, %v1157_v62  ;;  %v4445_v33 = vpack.c.bf16 %v1671_v4, %v1669_v2  ;;  %v4453_v4 = vpack.c.bf16 %v1679_v51, %v1677_v49  ;;  %v1181_v51 = vld [vmem:[%s5483_s18 + $0x880] sm:$0xff] }
 0x1e2   : > { %v4447_v24 = vpack.c.bf16 %v1676_v8, %v1674_v7  ;;  %v1171_v7 = vld [vmem:[%s5483_s18 + $0x830] sm:$0xff]  ;;  %v1681_v8 = vld [vmem:[%s5483_s18 + $0x1820] sm:$0xff] }
 0x1e3   : > { %3918 = vmatpush1.bf16.msra.mxu1 %v3917_v13  ;;  %v518_v13 = vld [vmem:[%s5470_s5 + $0x30] sm:$0xff]  ;;  %v3945_v20 = vpack.c.bf16 %v1171_v7, %v1169_v63  ;;  %v1697_v63 = vld [vmem:[%s5483_s18 + $0x18a0] sm:$0xff] }
 0x1e4   : > { %4430 = vmatpush1.bf16.msra.mxu0 %v4429_v16  ;;  %3920 = vmatprep.subr.bf16.mxu1 %v3919_v17  ;;  %v784_v16 = vadd.s32 768, %v5579_v61  ;;  %v643_v17 = vrot.slane %v5975_v5, %v6117_v57  ;;  %v1168_v5 = vld [vmem:[%s5483_s18 + $0x818] sm:$0xff]  ;;  %v718_v32 = vmul.f32 %v579_v9, %v518_v13 }
 0x1e5   : > { %4432 = vmatprep.subr.bf16.mxu0 %v4431_v21  ;;  %v1673_v21 = vld [vmem:[%s5483_s18 + $0x17e0] sm:$0xff]  ;;  %v1176_v13 = vld [vmem:[%s5483_s18 + $0x858] sm:$0xff] }
 0x1e6   : > { %v817_v38 = vadd.s32 %v5597_v15, %v784_v16  ;;  %v734_v39 = vmul.f32 %v643_v17, %v534_v22  ;;  %v750_v56 = vmax.f32 %v718_v32, 0.0  ;;  %v1686_v17 = vld [vmem:[%s5483_s18 + $0x1848] sm:$0xff]  ;;  %v3947_v22 = vpack.c.bf16 %v1176_v13, %v1174_v12  ;;  %v1692_v32 = vld [vmem:[%s5483_s18 + $0x1878] sm:$0xff] }
 0x1e7   : > { %3922 = vmatpush1.bf16.msra.mxu1 %v3921_v27  ;;  %v591_v27 = vrot.slane %v6130_v10, %v5595_v14  ;;  %v1702_v12 = vld [vmem:[%s5483_s18 + $0x18c8] sm:$0xff]  ;;  %v1704_v13 = vld [vmem:[%s5483_s18 + $0x18d8] sm:$0xff] }
 0x1e8   : > { %4434 = vmatpush1.bf16.msra.mxu0 %v4433_v29  ;;  %3924 = vmatprep.subr.bf16.mxu1 %v3923_v31  ;;  %v1678_v29 = vld [vmem:[%s5483_s18 + $0x1808] sm:$0xff]  ;;  %v1680_v31 = vld [vmem:[%s5483_s18 + $0x1818] sm:$0xff]  ;;  %vm849_vm14 = vcmp.lt.s32.totalorder %v817_v38, 17114  ;;  %v766_v2 = vmax.f32 %v734_v39, 0.0  ;;  %v1179_v38 = vld [vmem:[%s5483_s18 + $0x870] sm:$0xff] }
 0x1e9   : > { %4436 = vmatprep.subr.bf16.mxu0 %v4435_v36  ;;  %v655_v36 = vrot.slane %v6138_v18, %v5595_v14  ;;  %v721_v55 = vmul.f32 %v591_v27, %v521_v34  ;;  %v1178_v27 = vld [vmem:[%s5483_s18 + $0x868] sm:$0xff]  ;;  %v1689_v39 = vld [vmem:[%s5483_s18 + $0x1860] sm:$0xff] }
 0x1eb   : > { %3926 = vmatpush1.bf16.msra.mxu1 %v3925_v42  ;;  %v4449_v42 = vpack.c.bf16 %v1675_v25, %v1673_v21  ;;  %v737_v62 = vmul.f32 %v655_v36, %v537_v40  ;;  %v753_v16 = vmax.f32 %v721_v55, 0.0  ;;  %v1685_v25 = vld [vmem:[%s5483_s18 + $0x1840] sm:$0xff] }
 0x1ec   : > { %4438 = vmatpush1.bf16.msra.mxu0 %v4437_v43  ;;  %3928 = vmatprep.subr.bf16.mxu1 %v3927_v44  ;;  %v3939_v43 = vpack.c.bf16 %v1168_v5, %v1166_v26  ;;  %v1165_v44 = vld [vmem:[%s5483_s18 + $0x800] sm:$0xff]  ;;  %v1687_v5 = vld [vmem:[%s5483_s18 + $0x1850] sm:$0xff] }
 0x1ed   : > { %4440 = vmatprep.subr.bf16.mxu0 %v4439_v50  ;;  %v4451_v50 = vpack.c.bf16 %v1680_v31, %v1678_v29  ;;  %v3941_v0 = vpack.c.bf16 %v1167_v46, %v1165_v44  ;;  %v1180_v29 = vld [vmem:[%s5483_s18 + $0x878] sm:$0xff]  ;;  %v1690_v31 = vld [vmem:[%s5483_s18 + $0x1868] sm:$0xff] }
 0x1ee   : > { %v3951_v36 = vpack.c.bf16 %v1180_v29, %v1178_v27  ;;  %v4463_v40 = vpack.c.bf16 %v1692_v32, %v1690_v31  ;;  %v1694_v44 = vld [vmem:[%s5483_s18 + $0x1888] sm:$0xff]  ;;  %v1696_v46 = vld [vmem:[%s5483_s18 + $0x1898] sm:$0xff]  ;;  %v1193_v32 = vld [vmem:[%s5483_s18 + $0x8e0] sm:$0xff] }
 0x1ef   : > { %3930 = vmatpush1.bf16.msra.mxu1 %v3929_v58  ;;  %v1682_v58 = vld [vmem:[%s5483_s18 + $0x1828] sm:$0xff]  ;;  %v4467_v55 = vpack.c.bf16 %v1696_v46, %v1694_v44  ;;  %v1197_v46 = vld [vmem:[%s5483_s18 + $0x900] sm:$0xff] }
 0x1f0   : > { %4442 = vmatpush1.bf16.msra.mxu0 %v4441_v28  ;;  %3932 = vmatprep.subr.bf16.mxu1 %v3931_v60  ;;  %v1684_v28 = vld [vmem:[%s5483_s18 + $0x1838] sm:$0xff]  ;;  %v820_v60 = vadd.s32 %v5597_v15, %v787_v35  ;;  %v4461_v35 = vpack.c.bf16 %v1687_v5, %v1685_v25 }
 0x1f1   : > { %4444 = vmatprep.subr.bf16.mxu0 %v4443_v3  ;;  %v836_v3 = vadd.s32 %v5597_v15, %v803_v41  ;;  %v4455_v9 = vpack.c.bf16 %v1684_v28, %v1682_v58  ;;  %v1691_v41 = vld [vmem:[%s5483_s18 + $0x1870] sm:$0xff]  ;;  %v1186_v58 = vld [vmem:[%s5483_s18 + $0x8a8] sm:$0xff]  ;;  %v1188_v28 = vld [vmem:[%s5483_s18 + $0x8b8] sm:$0xff] }
 0x1f2   : > { %vm852_vm0 = vcmp.lt.s32.totalorder %v820_v60, 17114  ;;  %v4465_v49 = vpack.c.bf16 %v1691_v41, %v1689_v39  ;;  %v1698_v60 = vld [vmem:[%s5483_s18 + $0x18a8] sm:$0xff]  ;;  %v1196_v25 = vld [vmem:[%s5483_s18 + $0x8f8] sm:$0xff] }
 0x1f3   : > { %3934 = vmatpush1.bf16.msra.mxu1 %v3933_v11  ;;  %v1683_v11 = vld [vmem:[%s5483_s18 + $0x1830] sm:$0xff]  ;;  %vm868_vm1 = vcmp.lt.s32.totalorder %v836_v3, 17114  ;;  %v3959_v3 = vpack.c.bf16 %v1188_v28, %v1186_v58  ;;  %v1708_v5 = vld [vmem:[%s5483_s18 + $0x18f8] sm:$0xff] }
 0x1f4   : > { %4446 = vmatpush1.bf16.msra.mxu0 %v4445_v33  ;;  %3936 = vmatprep.subr.bf16.mxu1 %v3935_v19  ;;  %v1688_v33 = vld [vmem:[%s5483_s18 + $0x1858] sm:$0xff]  ;;  %v769_v19 = vmax.f32 %v737_v62, 0.0  ;;  %v4457_v21 = vpack.c.bf16 %v1683_v11, %v1681_v8  ;;  %v1699_v8 = vld [vmem:[%s5483_s18 + $0x18b0] sm:$0xff] }
 0x1f5   : > { %4448 = vmatprep.subr.bf16.mxu0 %v4447_v24  ;;  %v1175_v24 = vld [vmem:[%s5483_s18 + $0x850] sm:$0xff]  ;;  %v4459_v26 = vpack.c.bf16 %v1688_v33, %v1686_v17  ;;  %v1700_v62 = vld [vmem:[%s5483_s18 + $0x18b8] sm:$0xff]  ;;  %v4473_v17 = vpack.c.bf16 %v1699_v8, %v1697_v63 }
 0x1f6   : > { %v3949_v34 = vpack.c.bf16 %v1175_v24, %v1173_v23  ;;  %v4471_v7 = vpack.c.bf16 %v1700_v62, %v1698_v60  ;;  %v1192_v11 = vld [vmem:[%s5483_s18 + $0x8d8] sm:$0xff]  ;;  %v1703_v23 = vld [vmem:[%s5483_s18 + $0x18d0] sm:$0xff]  ;;  %v1194_v24 = vld [vmem:[%s5483_s18 + $0x8e8] sm:$0xff] }
 0x1f7   : > { %3938 = vmatpush1.bf16.msra.mxu1 %v3937_v37  ;;  %v1177_v37 = vld [vmem:[%s5483_s18 + $0x860] sm:$0xff]  ;;  %v3967_v31 = vpack.c.bf16 %v1196_v25, %v1194_v24  ;;  %v1200_v39 = vld [vmem:[%s5483_s18 + $0x918] sm:$0xff] }
 0x1f8   : > { %4450 = vmatpush1.bf16.msra.mxu0 %v4449_v42  ;;  %3940 = vmatprep.subr.bf16.mxu1 %v3939_v43  ;;  %v1182_v42 = vld [vmem:[%s5483_s18 + $0x888] sm:$0xff]  ;;  %v1184_v43 = vld [vmem:[%s5483_s18 + $0x898] sm:$0xff]  ;;  %v3953_v48 = vpack.c.bf16 %v1179_v38, %v1177_v37  ;;  %v1707_v37 = vld [vmem:[%s5483_s18 + $0x18f0] sm:$0xff] }
 0x1f9   : > { %4452 = vmatprep.subr.bf16.mxu0 %v4451_v50  ;;  %v3955_v50 = vpack.c.bf16 %v1184_v43, %v1182_v42  ;;  %v1198_v38 = vld [vmem:[%s5483_s18 + $0x908] sm:$0xff]  ;;  %v1712_v41 = vld [vmem:[%s5483_s18 + $0x1918] sm:$0xff]  ;;  %v1201_v62 = vld [vmem:[%s5483_s18 + $0x920] sm:$0xff] }
 0x1fa   : > { %3544 = vmatmul.mubr.msk.f32.vlgmr.msra.gmra.mrb[0].mxu1 %vm849_vm14, %v750_v56  ;;  %v1695_v56 = vld [vmem:[%s5483_s18 + $0x1890] sm:$0xff]  ;;  %v3971_v44 = vpack.c.bf16 %v1200_v39, %v1198_v38  ;;  %v1208_v63 = vld [vmem:[%s5483_s18 + $0x958] sm:$0xff] }
 0x1fb   : > { %3942 = vmatpush1.bf16.msra.mxu1 %v3941_v0  ;;  %3560 = vmatmul.mubr.msk.f32.vlgmr.msra.gmra.mrb[0].mxu0 %vm865_vm15, %v766_v2  ;;  %v3957_v0 = vpack.c.bf16 %v1183_v52, %v1181_v51  ;;  %v4469_v2 = vpack.c.bf16 %v1695_v56, %v1693_v54  ;;  %v1711_v51 = vld [vmem:[%s5483_s18 + $0x1910] sm:$0xff]  ;;  %v1202_v52 = vld [vmem:[%s5483_s18 + $0x928] sm:$0xff]  ;;  %v1204_v54 = vld [vmem:[%s5483_s18 + $0x938] sm:$0xff] }
 0x1fc   : > { %4454 = vmatpush1.bf16.msra.mxu0 %v4453_v4  ;;  %3944 = vmatprep.subr.bf16.mxu1 %v3943_v6  ;;  %v1185_v4 = vld [vmem:[%s5483_s18 + $0x8a0] sm:$0xff]  ;;  %v1187_v6 = vld [vmem:[%s5483_s18 + $0x8b0] sm:$0xff]  ;;  %v1716_v56 = vld [vmem:[%s5483_s18 + $0x1938] sm:$0xff]  ;;  %v3975_v60 = vpack.c.bf16 %v1204_v54, %v1202_v52 }
 0x1fd   : > { %4456 = vmatprep.subr.bf16.mxu0 %v4455_v9  ;;  %3545 = vmatprep.mubr.msk.f32.mxu1 %vm852_vm0, %v753_v16  ;;  %v1190_v9 = vld [vmem:[%s5483_s18 + $0x8c8] sm:$0xff]  ;;  %v3961_v16 = vpack.c.bf16 %v1187_v6, %v1185_v4  ;;  %v1715_v4 = vld [vmem:[%s5483_s18 + $0x1930] sm:$0xff]  ;;  %v1720_v8 = vld [vmem:[%s5483_s18 + $0x1958] sm:$0xff]  ;;  %vm5148_vm0 = vmmov (!%p3569_p9), 0  }
 0x1fe   : > { %3561 = vmatprep.mubr.msk.f32.mxu0 %vm868_vm1, %v769_v19  ;;  %v3963_v33 = vpack.c.bf16 %v1192_v11, %v1190_v9  ;;  %v1189_v19 = vld [vmem:[%s5483_s18 + $0x8c0] sm:$0xff]  ;;  %v1206_v6 = vld [vmem:[%s5483_s18 + $0x948] sm:$0xff]  ;;  %vm3310_vm1 = vcmask (!%p3569_p9), 261120  }
 0x1ff   : > { %3946 = vmatpush1.bf16.msra.mxu1 %v3945_v20  ;;  %v1191_v20 = vld [vmem:[%s5483_s18 + $0x8d0] sm:$0xff] }
 0x200   : > { %4458 = vmatpush1.bf16.msra.mxu0 %v4457_v21  ;;  %3948 = vmatprep.subr.bf16.mxu1 %v3947_v22  ;;  %v1701_v21 = vld [vmem:[%s5483_s18 + $0x18c0] sm:$0xff]  ;;  %v4475_v22 = vpack.c.bf16 %v1704_v13, %v1702_v12  ;;  %v3965_v27 = vpack.c.bf16 %v1191_v20, %v1189_v19  ;;  %v3979_v12 = vpack.c.bf16 %v1208_v63, %v1206_v6  ;;  %v1719_v19 = vld [vmem:[%s5483_s18 + $0x1950] sm:$0xff]  ;;  %v1210_v20 = vld [vmem:[%s5483_s18 + $0x968] sm:$0xff] }
 0x201   : > { %4460 = vmatprep.subr.bf16.mxu0 %v4459_v26  ;;  %v1706_v26 = vld [vmem:[%s5483_s18 + $0x18e8] sm:$0xff]  ;;  %v4477_v29 = vpack.c.bf16 %v1703_v23, %v1701_v21  ;;  %v1205_v13 = vld [vmem:[%s5483_s18 + $0x940] sm:$0xff]  ;;  %v1212_v21 = vld [vmem:[%s5483_s18 + $0x978] sm:$0xff] }
 0x202   : > { %v1724_v23 = vld [vmem:[%s5483_s18 + $0x1978] sm:$0xff] }
 0x203   : > { %3950 = vmatpush1.bf16.msra.mxu1 %v3949_v34  ;;  %v1195_v34 = vld [vmem:[%s5483_s18 + $0x8f0] sm:$0xff] }
 0x204   : > { %4462 = vmatpush1.bf16.msra.mxu0 %v4461_v35  ;;  %3952 = vmatprep.subr.bf16.mxu1 %v3951_v36  ;;  %v1705_v35 = vld [vmem:[%s5483_s18 + $0x18e0] sm:$0xff]  ;;  %v4479_v36 = vpack.c.bf16 %v1708_v5, %v1706_v26  ;;  %v3969_v42 = vpack.c.bf16 %v1195_v34, %v1193_v32  ;;  %v3983_v26 = vpack.c.bf16 %v1212_v21, %v1210_v20  ;;  %v1723_v32 = vld [vmem:[%s5483_s18 + $0x1970] sm:$0xff]  ;;  %v1214_v34 = vld [vmem:[%s5483_s18 + $0x988] sm:$0xff] }
 0x205   : > { %4464 = vmatprep.subr.bf16.mxu0 %v4463_v40  ;;  %v1710_v40 = vld [vmem:[%s5483_s18 + $0x1908] sm:$0xff]  ;;  %v4481_v43 = vpack.c.bf16 %v1707_v37, %v1705_v35  ;;  %v1209_v5 = vld [vmem:[%s5483_s18 + $0x960] sm:$0xff]  ;;  %v1216_v35 = vld [vmem:[%s5483_s18 + $0x998] sm:$0xff]  ;;  %v587_v20 = vrot.slane %v6130_v10, %v5640_v1 }
 0x206   : > { %v1728_v37 = vld [vmem:[%s5483_s18 + $0x1998] sm:$0xff] }
 0x207   : > { %3954 = vmatpush1.bf16.msra.mxu1 %v3953_v48  ;;  %v1199_v48 = vld [vmem:[%s5483_s18 + $0x910] sm:$0xff] }
 0x208   : > { %4466 = vmatpush1.bf16.msra.mxu0 %v4465_v49  ;;  %3956 = vmatprep.subr.bf16.mxu1 %v3955_v50  ;;  %v1709_v49 = vld [vmem:[%s5483_s18 + $0x1900] sm:$0xff]  ;;  %v4483_v50 = vpack.c.bf16 %v1712_v41, %v1710_v40  ;;  %v3973_v58 = vpack.c.bf16 %v1199_v48, %v1197_v46  ;;  %v3987_v40 = vpack.c.bf16 %v1216_v35, %v1214_v34  ;;  %v1727_v46 = vld [vmem:[%s5483_s18 + $0x1990] sm:$0xff]  ;;  %v1218_v48 = vld [vmem:[%s5483_s18 + $0x9a8] sm:$0xff] }
 0x209   : > { %4468 = vmatprep.subr.bf16.mxu0 %v4467_v55  ;;  %v1714_v55 = vld [vmem:[%s5483_s18 + $0x1928] sm:$0xff]  ;;  %v4485_v28 = vpack.c.bf16 %v1711_v51, %v1709_v49  ;;  %v1213_v41 = vld [vmem:[%s5483_s18 + $0x980] sm:$0xff]  ;;  %v1220_v49 = vld [vmem:[%s5483_s18 + $0x9b8] sm:$0xff] }
 0x20a   : > { %v1732_v51 = vld [vmem:[%s5483_s18 + $0x19b8] sm:$0xff]  ;;  %v1739_v35 = vld [vmem:[%s5483_s18 + $0x19f0] sm:$0xff] }
 0x20b   : > { %3958 = vmatpush1.bf16.msra.mxu1 %v3957_v0  ;;  %v1203_v0 = vld [vmem:[%s5483_s18 + $0x930] sm:$0xff] }
 0x20c   : > { %4470 = vmatpush1.bf16.msra.mxu0 %v4469_v2  ;;  %3960 = vmatprep.subr.bf16.mxu1 %v3959_v3  ;;  %v1713_v2 = vld [vmem:[%s5483_s18 + $0x1920] sm:$0xff]  ;;  %v4487_v3 = vpack.c.bf16 %v1716_v56, %v1714_v55  ;;  %v3977_v9 = vpack.c.bf16 %v1203_v0, %v1201_v62  ;;  %v3991_v55 = vpack.c.bf16 %v1220_v49, %v1218_v48  ;;  %v1731_v62 = vld [vmem:[%s5483_s18 + $0x19b0] sm:$0xff]  ;;  %v1222_v0 = vld [vmem:[%s5483_s18 + $0x9c8] sm:$0xff] }
 0x20d   : > { %4472 = vmatprep.subr.bf16.mxu0 %v4471_v7  ;;  %v1718_v7 = vld [vmem:[%s5483_s18 + $0x1948] sm:$0xff]  ;;  %v4489_v11 = vpack.c.bf16 %v1715_v4, %v1713_v2  ;;  %v1217_v56 = vld [vmem:[%s5483_s18 + $0x9a0] sm:$0xff]  ;;  %v1224_v2 = vld [vmem:[%s5483_s18 + $0x9d8] sm:$0xff] }
 0x20e   : > { %v1736_v4 = vld [vmem:[%s5483_s18 + $0x19d8] sm:$0xff] }
 0x20f   : > { %3962 = vmatpush1.bf16.msra.mxu1 %v3961_v16  ;;  %v1207_v16 = vld [vmem:[%s5483_s18 + $0x950] sm:$0xff]  ;;  %v539_v49 = vld [vmem:[%s5470_s5 + $0xd8] sm:$0xff] }
 0x210   : > { %4474 = vmatpush1.bf16.msra.mxu0 %v4473_v17  ;;  %3964 = vmatprep.subr.bf16.mxu1 %v3963_v33  ;;  %v1717_v17 = vld [vmem:[%s5483_s18 + $0x1940] sm:$0xff]  ;;  %v4491_v33 = vpack.c.bf16 %v1720_v8, %v1718_v7  ;;  %v3981_v24 = vpack.c.bf16 %v1207_v16, %v1205_v13  ;;  %v3995_v7 = vpack.c.bf16 %v1224_v2, %v1222_v0  ;;  %v1735_v13 = vld [vmem:[%s5483_s18 + $0x19d0] sm:$0xff]  ;;  %v1226_v16 = vld [vmem:[%s5483_s18 + $0x9e8] sm:$0xff] }
 0x211   : > { %4476 = vmatprep.subr.bf16.mxu0 %v4475_v22  ;;  %v1722_v22 = vld [vmem:[%s5483_s18 + $0x1968] sm:$0xff]  ;;  %v4493_v25 = vpack.c.bf16 %v1719_v19, %v1717_v17  ;;  %v1221_v8 = vld [vmem:[%s5483_s18 + $0x9c0] sm:$0xff]  ;;  %v1228_v17 = vld [vmem:[%s5483_s18 + $0x9f8] sm:$0xff] }
 0x212   : > { %v1740_v19 = vld [vmem:[%s5483_s18 + $0x19f8] sm:$0xff]  ;;  %v1746_v2 = vld [vmem:[%s5483_s18 + $0x1a28] sm:$0xff] }
 0x213   : > { %3966 = vmatpush1.bf16.msra.mxu1 %v3965_v27  ;;  %v1211_v27 = vld [vmem:[%s5483_s18 + $0x970] sm:$0xff] }
 0x214   : > { %4478 = vmatpush1.bf16.msra.mxu0 %v4477_v29  ;;  %3968 = vmatprep.subr.bf16.mxu1 %v3967_v31  ;;  %v1721_v29 = vld [vmem:[%s5483_s18 + $0x1960] sm:$0xff]  ;;  %v4495_v31 = vpack.c.bf16 %v1724_v23, %v1722_v22  ;;  %v3985_v38 = vpack.c.bf16 %v1211_v27, %v1209_v5  ;;  %v3999_v5 = vpack.c.bf16 %v1228_v17, %v1226_v16  ;;  %v1227_v27 = vld [vmem:[%s5483_s18 + $0x9f0] sm:$0xff] }
 0x215   : > { %4480 = vmatprep.subr.bf16.mxu0 %v4479_v36  ;;  %v1726_v36 = vld [vmem:[%s5483_s18 + $0x1988] sm:$0xff]  ;;  %v4497_v39 = vpack.c.bf16 %v1723_v32, %v1721_v29  ;;  %v1225_v22 = vld [vmem:[%s5483_s18 + $0x9e0] sm:$0xff]  ;;  %v802_v32 = vadd.s32 3072, %v5579_v61 }
 0x216   : > { %v520_v23 = vld [vmem:[%s5470_s5 + $0x40] sm:$0xff] }
 0x217   : > { %3970 = vmatpush1.bf16.msra.mxu1 %v3969_v42  ;;  %v1215_v42 = vld [vmem:[%s5483_s18 + $0x990] sm:$0xff]  ;;  %v1737_v29 = vld [vmem:[%s5483_s18 + $0x19e0] sm:$0xff] }
 0x218   : > { %4482 = vmatpush1.bf16.msra.mxu0 %v4481_v43  ;;  %3972 = vmatprep.subr.bf16.mxu1 %v3971_v44  ;;  %v1725_v43 = vld [vmem:[%s5483_s18 + $0x1980] sm:$0xff]  ;;  %v4499_v44 = vpack.c.bf16 %v1728_v37, %v1726_v36  ;;  %v3989_v52 = vpack.c.bf16 %v1215_v42, %v1213_v41  ;;  %v1230_v36 = vld [vmem:[%s5483_s18 + $0xa08] sm:$0xff]  ;;  %v1232_v37 = vld [vmem:[%s5483_s18 + $0xa18] sm:$0xff]  ;;  %v720_v41 = vmul.f32 %v587_v20, %v520_v23 }
 0x219   : > { %4484 = vmatprep.subr.bf16.mxu0 %v4483_v50  ;;  %v1730_v50 = vld [vmem:[%s5483_s18 + $0x19a8] sm:$0xff]  ;;  %v4501_v54 = vpack.c.bf16 %v1727_v46, %v1725_v43  ;;  %v523_v42 = vld [vmem:[%s5470_s5 + $0x58] sm:$0xff]  ;;  %v789_v43 = vadd.s32 1408, %v5579_v61  ;;  %v4001_v46 = vpack.c.bf16 %v1227_v27, %v1225_v22  ;;  %v1745_v16 = vld [vmem:[%s5483_s18 + $0x1a20] sm:$0xff] }
 0x21a   : > { %v752_v0 = vmax.f32 %v720_v41, 0.0  ;;  %v1240_v20 = vld [vmem:[%s5483_s18 + $0xa58] sm:$0xff]  ;;  %v1750_v22 = vld [vmem:[%s5483_s18 + $0x1a48] sm:$0xff]  ;;  %v1237_v27 = vld [vmem:[%s5483_s18 + $0xa40] sm:$0xff] }
 0x21b   : > { %3974 = vmatpush1.bf16.msra.mxu1 %v3973_v58  ;;  %v1219_v58 = vld [vmem:[%s5483_s18 + $0x9b0] sm:$0xff]  ;;  %v1752_v23 = vld [vmem:[%s5483_s18 + $0x1a58] sm:$0xff] }
 0x21c   : > { %4486 = vmatpush1.bf16.msra.mxu0 %v4485_v28  ;;  %3976 = vmatprep.subr.bf16.mxu1 %v3975_v60  ;;  %v1729_v28 = vld [vmem:[%s5483_s18 + $0x19a0] sm:$0xff]  ;;  %v4503_v60 = vpack.c.bf16 %v1732_v51, %v1730_v50  ;;  %v3993_v6 = vpack.c.bf16 %v1219_v58, %v1217_v56  ;;  %v805_v50 = vadd.s32 3456, %v5579_v61  ;;  %v4513_v51 = vpack.c.bf16 %v1739_v35, %v1737_v29  ;;  %v1743_v58 = vld [vmem:[%s5483_s18 + $0x1a10] sm:$0xff]  ;;  %v1242_v35 = vld [vmem:[%s5483_s18 + $0xa68] sm:$0xff] }
 0x21d   : > { %4488 = vmatprep.subr.bf16.mxu0 %v4487_v3  ;;  %v1734_v3 = vld [vmem:[%s5483_s18 + $0x19c8] sm:$0xff]  ;;  %v4505_v63 = vpack.c.bf16 %v1731_v62, %v1729_v28  ;;  %v1239_v29 = vld [vmem:[%s5483_s18 + $0xa50] sm:$0xff] }
 0x21e   : > { %v1234_v28 = vld [vmem:[%s5483_s18 + $0xa28] sm:$0xff] }
 0x21f   : > { %3978 = vmatpush1.bf16.msra.mxu1 %v3977_v9  ;;  %v1223_v9 = vld [vmem:[%s5483_s18 + $0x9d0] sm:$0xff] }
 0x220   : > { %4490 = vmatpush1.bf16.msra.mxu0 %v4489_v11  ;;  %3980 = vmatprep.subr.bf16.mxu1 %v3979_v12  ;;  %v1733_v11 = vld [vmem:[%s5483_s18 + $0x19c0] sm:$0xff]  ;;  %v4507_v12 = vpack.c.bf16 %v1736_v4, %v1734_v3  ;;  %v3997_v21 = vpack.c.bf16 %v1223_v9, %v1221_v8  ;;  %v1748_v3 = vld [vmem:[%s5483_s18 + $0x1a38] sm:$0xff]  ;;  %v822_v4 = vadd.s32 %v5597_v15, %v789_v43  ;;  %v1243_v43 = vld [vmem:[%s5483_s18 + $0xa70] sm:$0xff] }
 0x221   : > { %4492 = vmatprep.subr.bf16.mxu0 %v4491_v33  ;;  %v1738_v33 = vld [vmem:[%s5483_s18 + $0x19e8] sm:$0xff]  ;;  %v838_v8 = vadd.s32 %v5597_v15, %v805_v50  ;;  %v4519_v17 = vpack.c.bf16 %v1748_v3, %v1746_v2  ;;  %v1764_v2 = vld [vmem:[%s5483_s18 + $0x1ab8] sm:$0xff] }
 0x222   : > { %v4511_v34 = vpack.c.bf16 %v1740_v19, %v1738_v33  ;;  %v1747_v33 = vld [vmem:[%s5483_s18 + $0x1a30] sm:$0xff]  ;;  %v1238_v19 = vld [vmem:[%s5483_s18 + $0xa48] sm:$0xff]  ;;  %vm854_vm4 = vcmp.lt.s32.totalorder %v822_v4, 17114 }
 0x223   : > { %3982 = vmatpush1.bf16.msra.mxu1 %v3981_v24  ;;  %v786_v24 = vadd.s32 1024, %v5579_v61  ;;  %vm870_vm5 = vcmp.lt.s32.totalorder %v838_v8, 17114  ;;  %v1758_v50 = vld [vmem:[%s5483_s18 + $0x1a88] sm:$0xff]  ;;  %v1761_v8 = vld [vmem:[%s5483_s18 + $0x1aa0] sm:$0xff] }
 0x224   : > { %4494 = vmatpush1.bf16.msra.mxu0 %v4493_v25  ;;  %3984 = vmatprep.subr.bf16.mxu1 %v3983_v26  ;;  %v651_v25 = vrot.slane %v6138_v18, %v5640_v1  ;;  %v4509_v26 = vpack.c.bf16 %v1735_v13, %v1733_v11  ;;  %v1235_v13 = vld [vmem:[%s5483_s18 + $0xa30] sm:$0xff] }
 0x225   : > { %4496 = vmatprep.subr.bf16.mxu0 %v4495_v31  ;;  %v536_v31 = vld [vmem:[%s5470_s5 + $0xc0] sm:$0xff]  ;;  %v819_v48 = vadd.s32 %v5597_v15, %v786_v24 }
 0x227   : > { %3986 = vmatpush1.bf16.msra.mxu1 %v3985_v38  ;;  %v599_v38 = vrot.slane %v6130_v10, %v5710_v45  ;;  %v736_v10 = vmul.f32 %v651_v25, %v536_v31  ;;  %vm851_vm2 = vcmp.lt.s32.totalorder %v819_v48, 17114  ;;  %v1749_v31 = vld [vmem:[%s5483_s18 + $0x1a40] sm:$0xff]  ;;  %v1755_v48 = vld [vmem:[%s5483_s18 + $0x1a70] sm:$0xff] }
 0x228   : > { %4498 = vmatpush1.bf16.msra.mxu0 %v4497_v39  ;;  %3988 = vmatprep.subr.bf16.mxu1 %v3987_v40  ;;  %v1742_v39 = vld [vmem:[%s5483_s18 + $0x1a08] sm:$0xff]  ;;  %v1744_v40 = vld [vmem:[%s5483_s18 + $0x1a18] sm:$0xff] }
 0x229   : > { %4500 = vmatprep.subr.bf16.mxu0 %v4499_v44  ;;  %v663_v44 = vrot.slane %v6138_v18, %v5710_v45  ;;  %v835_v45 = vadd.s32 %v5597_v15, %v802_v32  ;;  %v1741_v18 = vld [vmem:[%s5483_s18 + $0x1a00] sm:$0xff]  ;;  %v4515_v56 = vpack.c.bf16 %v1744_v40, %v1742_v39  ;;  %v723_v62 = vmul.f32 %v599_v38, %v523_v42  ;;  %v1756_v38 = vld [vmem:[%s5483_s18 + $0x1a78] sm:$0xff] }
 0x22a   : > { %v4517_v9 = vpack.c.bf16 %v1743_v58, %v1741_v18  ;;  %v4523_v32 = vpack.c.bf16 %v1752_v23, %v1750_v22  ;;  %v4013_v39 = vpack.c.bf16 %v1239_v29, %v1237_v27  ;;  %v1241_v42 = vld [vmem:[%s5483_s18 + $0xa60] sm:$0xff]  ;;  %v1247_v18 = vld [vmem:[%s5483_s18 + $0xa90] sm:$0xff]  ;;  %v1770_v27 = vld [vmem:[%s5483_s18 + $0x1ae8] sm:$0xff] }
 0x22b   : > { %3990 = vmatpush1.bf16.msra.mxu1 %v3989_v52  ;;  %v4003_v52 = vpack.c.bf16 %v1232_v37, %v1230_v36  ;;  %vm867_vm3 = vcmp.lt.s32.totalorder %v835_v45, 17114  ;;  %v1244_v36 = vld [vmem:[%s5483_s18 + $0xa78] sm:$0xff]  ;;  %v1754_v37 = vld [vmem:[%s5483_s18 + $0x1a68] sm:$0xff]  ;;  %v1245_v45 = vld [vmem:[%s5483_s18 + $0xa80] sm:$0xff] }
 0x22c   : > { %4502 = vmatpush1.bf16.msra.mxu0 %v4501_v54  ;;  %3992 = vmatprep.subr.bf16.mxu1 %v3991_v55  ;;  %v1229_v54 = vld [vmem:[%s5483_s18 + $0xa00] sm:$0xff]  ;;  %v1231_v55 = vld [vmem:[%s5483_s18 + $0xa10] sm:$0xff]  ;;  %v4015_v41 = vpack.c.bf16 %v1244_v36, %v1242_v35  ;;  %v4021_v3 = vpack.c.bf16 %v1247_v18, %v1245_v45  ;;  %v1772_v29 = vld [vmem:[%s5483_s18 + $0x1af8] sm:$0xff] }
 0x22d   : > { %4504 = vmatprep.subr.bf16.mxu0 %v4503_v60  ;;  %v1236_v60 = vld [vmem:[%s5483_s18 + $0xa38] sm:$0xff]  ;;  %v1255_v22 = vld [vmem:[%s5483_s18 + $0xad0] sm:$0xff]  ;;  %v1765_v23 = vld [vmem:[%s5483_s18 + $0x1ac0] sm:$0xff] }
 0x22e   : > { %v4007_v11 = vpack.c.bf16 %v1236_v60, %v1234_v28  ;;  %v1759_v28 = vld [vmem:[%s5483_s18 + $0x1a90] sm:$0xff]  ;;  %v1250_v60 = vld [vmem:[%s5483_s18 + $0xaa8] sm:$0xff]  ;;  %v1257_v35 = vld [vmem:[%s5483_s18 + $0xae0] sm:$0xff] }
 0x22f   : > { %3994 = vmatpush1.bf16.msra.mxu1 %v3993_v6  ;;  %v739_v6 = vmul.f32 %v663_v44, %v539_v49  ;;  %v1753_v44 = vld [vmem:[%s5483_s18 + $0x1a60] sm:$0xff]  ;;  %v1248_v49 = vld [vmem:[%s5483_s18 + $0xa98] sm:$0xff]  ;;  %v1259_v36 = vld [vmem:[%s5483_s18 + $0xaf0] sm:$0xff] }
 0x230   : > { %4506 = vmatpush1.bf16.msra.mxu0 %v4505_v63  ;;  %3996 = vmatprep.subr.bf16.mxu1 %v3995_v7  ;;  %v4005_v63 = vpack.c.bf16 %v1231_v55, %v1229_v54  ;;  %v768_v7 = vmax.f32 %v736_v10, 0.0  ;;  %v1246_v10 = vld [vmem:[%s5483_s18 + $0xa88] sm:$0xff]  ;;  %v4529_v54 = vpack.c.bf16 %v1755_v48, %v1753_v44  ;;  %v4033_v44 = vpack.c.bf16 %v1259_v36, %v1257_v35  ;;  %v1780_v18 = vld [vmem:[%s5483_s18 + $0x1b38] sm:$0xff] }
 0x231   : > { %4508 = vmatprep.subr.bf16.mxu0 %v4507_v12  ;;  %v1233_v12 = vld [vmem:[%s5483_s18 + $0xa20] sm:$0xff]  ;;  %v771_v24 = vmax.f32 %v739_v6, 0.0  ;;  %v4019_v55 = vpack.c.bf16 %v1248_v49, %v1246_v10  ;;  %v1263_v49 = vld [vmem:[%s5483_s18 + $0xb10] sm:$0xff]  ;;  %v1778_v45 = vld [vmem:[%s5483_s18 + $0x1b28] sm:$0xff] }
 0x232   : > { %v4009_v25 = vpack.c.bf16 %v1235_v13, %v1233_v12  ;;  %v1254_v12 = vld [vmem:[%s5483_s18 + $0xac8] sm:$0xff]  ;;  %v1256_v13 = vld [vmem:[%s5483_s18 + $0xad8] sm:$0xff]  ;;  %v1261_v10 = vld [vmem:[%s5483_s18 + $0xb00] sm:$0xff] }
 0x233   : > { %3998 = vmatpush1.bf16.msra.mxu1 %v3997_v21  ;;  %v755_v21 = vmax.f32 %v723_v62, 0.0  ;;  %v1252_v62 = vld [vmem:[%s5483_s18 + $0xab8] sm:$0xff]  ;;  %v1790_v35 = vld [vmem:[%s5483_s18 + $0x1b88] sm:$0xff] }
 0x234   : > { %4510 = vmatpush1.bf16.msra.mxu0 %v4509_v26  ;;  %4000 = vmatprep.subr.bf16.mxu1 %v3999_v5  ;;  %v4521_v26 = vpack.c.bf16 %v1747_v33, %v1745_v16  ;;  %v4011_v5 = vpack.c.bf16 %v1240_v20, %v1238_v19  ;;  %v4023_v6 = vpack.c.bf16 %v1252_v62, %v1250_v60  ;;  %v1766_v16 = vld [vmem:[%s5483_s18 + $0x1ac8] sm:$0xff]  ;;  %v1265_v60 = vld [vmem:[%s5483_s18 + $0xb20] sm:$0xff]  ;;  %v1267_v62 = vld [vmem:[%s5483_s18 + $0xb30] sm:$0xff] }
 0x235   : > { %4512 = vmatprep.subr.bf16.mxu0 %v4511_v34  ;;  %v1751_v34 = vld [vmem:[%s5483_s18 + $0x1a50] sm:$0xff]  ;;  %v4027_v20 = vpack.c.bf16 %v1256_v13, %v1254_v12  ;;  %v1269_v12 = vld [vmem:[%s5483_s18 + $0xb40] sm:$0xff]  ;;  %v1792_v36 = vld [vmem:[%s5483_s18 + $0x1b98] sm:$0xff] }
 0x236   : > { %v4525_v40 = vpack.c.bf16 %v1751_v34, %v1749_v31  ;;  %v1271_v13 = vld [vmem:[%s5483_s18 + $0xb50] sm:$0xff] }
 0x237   : > { %4002 = vmatpush1.bf16.msra.mxu1 %v4001_v46  ;;  %v4527_v46 = vpack.c.bf16 %v1756_v38, %v1754_v37  ;;  %v1769_v37 = vld [vmem:[%s5483_s18 + $0x1ae0] sm:$0xff]  ;;  %v4543_v38 = vpack.c.bf16 %v1772_v29, %v1770_v27 }
 0x238   : > { %4514 = vmatpush1.bf16.msra.mxu0 %v4513_v51  ;;  %4004 = vmatprep.subr.bf16.mxu1 %v4003_v52  ;;  %v1760_v51 = vld [vmem:[%s5483_s18 + $0x1a98] sm:$0xff]  ;;  %v4017_v52 = vpack.c.bf16 %v1243_v43, %v1241_v42  ;;  %v1774_v42 = vld [vmem:[%s5483_s18 + $0x1b08] sm:$0xff]  ;;  %v1785_v27 = vld [vmem:[%s5483_s18 + $0x1b60] sm:$0xff] }
 0x239   : > { %4516 = vmatprep.subr.bf16.mxu0 %v4515_v56  ;;  %v1757_v56 = vld [vmem:[%s5483_s18 + $0x1a80] sm:$0xff]  ;;  %v4531_v58 = vpack.c.bf16 %v1760_v51, %v1758_v50  ;;  %v1776_v43 = vld [vmem:[%s5483_s18 + $0x1b18] sm:$0xff] }
 0x23a   : > { %3546 = vmatmul.mubr.msk.f32.vlgmr.msra.gmra.mrb[0].mxu1 %vm851_vm2, %v752_v0  ;;  %v1762_v0 = vld [vmem:[%s5483_s18 + $0x1aa8] sm:$0xff]  ;;  %v4533_v4 = vpack.c.bf16 %v1759_v28, %v1757_v56  ;;  %v1773_v50 = vld [vmem:[%s5483_s18 + $0x1b00] sm:$0xff]  ;;  %v4547_v51 = vpack.c.bf16 %v1776_v43, %v1774_v42  ;;  %v4037_v56 = vpack.c.bf16 %v1263_v49, %v1261_v10  ;;  %v4563_v43 = vpack.c.bf16 %v1792_v36, %v1790_v35  ;;  %v1796_v49 = vld [vmem:[%s5483_s18 + $0x1bb8] sm:$0xff] }
 0x23b   : > { %4006 = vmatpush1.bf16.msra.mxu1 %v4005_v63  ;;  %3562 = vmatmul.mubr.msk.f32.vlgmr.msra.gmra.mrb[0].mxu0 %vm867_vm3, %v768_v7  ;;  %v1249_v63 = vld [vmem:[%s5483_s18 + $0xaa0] sm:$0xff]  ;;  %v1251_v7 = vld [vmem:[%s5483_s18 + $0xab0] sm:$0xff]  ;;  %v1794_v10 = vld [vmem:[%s5483_s18 + $0x1ba8] sm:$0xff]  ;;  %vm3384_vm2 = vcmask (!%p3569_p9), 7168  }
 0x23c   : > { %4518 = vmatpush1.bf16.msra.mxu0 %v4517_v9  ;;  %4008 = vmatprep.subr.bf16.mxu1 %v4007_v11  ;;  %v4535_v9 = vpack.c.bf16 %v1764_v2, %v1762_v0  ;;  %v1763_v11 = vld [vmem:[%s5483_s18 + $0x1ab0] sm:$0xff]  ;;  %v4025_v33 = vpack.c.bf16 %v1251_v7, %v1249_v63  ;;  %v1777_v0 = vld [vmem:[%s5483_s18 + $0x1b20] sm:$0xff]  ;;  %v4551_v2 = vpack.c.bf16 %v1780_v18, %v1778_v45  ;;  %v1782_v63 = vld [vmem:[%s5483_s18 + $0x1b48] sm:$0xff] }
 0x23d   : > { %4520 = vmatprep.subr.bf16.mxu0 %v4519_v17  ;;  %3547 = vmatprep.mubr.msk.f32.mxu1 %vm854_vm4, %v755_v21  ;;  %v1768_v17 = vld [vmem:[%s5483_s18 + $0x1ad8] sm:$0xff]  ;;  %v4537_v19 = vpack.c.bf16 %v1763_v11, %v1761_v8  ;;  %v1253_v21 = vld [vmem:[%s5483_s18 + $0xac0] sm:$0xff]  ;;  %v4041_v8 = vpack.c.bf16 %v1267_v62, %v1265_v60  ;;  %v4567_v18 = vpack.c.bf16 %v1796_v49, %v1794_v10  ;;  %v1798_v60 = vld [vmem:[%s5483_s18 + $0x1bc8] sm:$0xff] }
 0x23e   : > { %3563 = vmatprep.mubr.msk.f32.mxu0 %vm870_vm5, %v771_v24  ;;  %v4539_v24 = vpack.c.bf16 %v1768_v17, %v1766_v16  ;;  %v4029_v31 = vpack.c.bf16 %v1255_v22, %v1253_v21  ;;  %v1784_v7 = vld [vmem:[%s5483_s18 + $0x1b58] sm:$0xff]  ;;  %v1781_v16 = vld [vmem:[%s5483_s18 + $0x1b40] sm:$0xff]  ;;  %v1786_v21 = vld [vmem:[%s5483_s18 + $0x1b68] sm:$0xff] }
 0x23f   : > { %4010 = vmatpush1.bf16.msra.mxu1 %v4009_v25  ;;  %v1767_v25 = vld [vmem:[%s5483_s18 + $0x1ad0] sm:$0xff]  ;;  %v4555_v17 = vpack.c.bf16 %v1784_v7, %v1782_v63  ;;  %v1788_v22 = vld [vmem:[%s5483_s18 + $0x1b78] sm:$0xff]  ;;  %v1789_v42 = vld [vmem:[%s5483_s18 + $0x1b80] sm:$0xff] }
 0x240   : > { %4522 = vmatpush1.bf16.msra.mxu0 %v4521_v26  ;;  %4012 = vmatprep.subr.bf16.mxu1 %v4011_v5  ;;  %v1258_v26 = vld [vmem:[%s5483_s18 + $0xae8] sm:$0xff]  ;;  %v1260_v5 = vld [vmem:[%s5483_s18 + $0xaf8] sm:$0xff]  ;;  %v4559_v29 = vpack.c.bf16 %v1788_v22, %v1786_v21  ;;  %v1793_v45 = vld [vmem:[%s5483_s18 + $0x1ba0] sm:$0xff]  ;;  %v788_v21 = vadd.s32 1280, %v5579_v61 }
 0x241   : > { %4524 = vmatprep.subr.bf16.mxu0 %v4523_v32  ;;  %v4541_v32 = vpack.c.bf16 %v1767_v25, %v1765_v23  ;;  %v4031_v34 = vpack.c.bf16 %v1260_v5, %v1258_v26  ;;  %v4045_v23 = vpack.c.bf16 %v1271_v13, %v1269_v12  ;;  %v1273_v26 = vld [vmem:[%s5483_s18 + $0xb60] sm:$0xff]  ;;  %v1275_v5 = vld [vmem:[%s5483_s18 + $0xb70] sm:$0xff]  ;;  %v1800_v62 = vld [vmem:[%s5483_s18 + $0x1bd8] sm:$0xff] }
 0x242   : > { %v1797_v63 = vld [vmem:[%s5483_s18 + $0x1bc0] sm:$0xff]  ;;  %v4571_v7 = vpack.c.bf16 %v1800_v62, %v1798_v60  ;;  %v1802_v12 = vld [vmem:[%s5483_s18 + $0x1be8] sm:$0xff]  ;;  %v1804_v13 = vld [vmem:[%s5483_s18 + $0x1bf8] sm:$0xff] }
 0x243   : > { %4014 = vmatpush1.bf16.msra.mxu1 %v4013_v39  ;;  %v1771_v39 = vld [vmem:[%s5483_s18 + $0x1af0] sm:$0xff]  ;;  %v6446_v22 = vld [vmem:[%s5477_s21 + $0x18] sm:$0xff]  ;;  %v1806_v36 = vld [vmem:[%s5483_s18 + $0x1c08] sm:$0xff] }
 0x244   : > { %4526 = vmatpush1.bf16.msra.mxu0 %v4525_v40  ;;  %4016 = vmatprep.subr.bf16.mxu1 %v4015_v41  ;;  %v1262_v40 = vld [vmem:[%s5483_s18 + $0xb08] sm:$0xff]  ;;  %v1264_v41 = vld [vmem:[%s5483_s18 + $0xb18] sm:$0xff] }
 0x245   : > { %4528 = vmatprep.subr.bf16.mxu0 %v4527_v46  ;;  %v4545_v46 = vpack.c.bf16 %v1771_v39, %v1769_v37  ;;  %v4035_v48 = vpack.c.bf16 %v1264_v41, %v1262_v40  ;;  %v4049_v37 = vpack.c.bf16 %v1275_v5, %v1273_v26  ;;  %v1277_v40 = vld [vmem:[%s5483_s18 + $0xb80] sm:$0xff]  ;;  %v1279_v41 = vld [vmem:[%s5483_s18 + $0xb90] sm:$0xff]  ;;  %v1296_v35 = vld [vmem:[%s5483_s18 + $0xc18] sm:$0xff] }
 0x246   : > { %v1291_v26 = vld [vmem:[%s5483_s18 + $0xbf0] sm:$0xff]  ;;  %v1801_v5 = vld [vmem:[%s5483_s18 + $0x1be0] sm:$0xff]  ;;  %v1812_v60 = vld [vmem:[%s5483_s18 + $0x1c38] sm:$0xff] }
 0x247   : > { %4018 = vmatpush1.bf16.msra.mxu1 %v4017_v52  ;;  %v1775_v52 = vld [vmem:[%s5483_s18 + $0x1b10] sm:$0xff] }
 0x248   : > { %4530 = vmatpush1.bf16.msra.mxu0 %v4529_v54  ;;  %4020 = vmatprep.subr.bf16.mxu1 %v4019_v55  ;;  %v1266_v54 = vld [vmem:[%s5483_s18 + $0xb28] sm:$0xff]  ;;  %v1268_v55 = vld [vmem:[%s5483_s18 + $0xb38] sm:$0xff] }
 0x249   : > { %4532 = vmatprep.subr.bf16.mxu0 %v4531_v58  ;;  %v4549_v58 = vpack.c.bf16 %v1775_v52, %v1773_v50  ;;  %v4039_v28 = vpack.c.bf16 %v1268_v55, %v1266_v54  ;;  %v4053_v50 = vpack.c.bf16 %v1279_v41, %v1277_v40  ;;  %v1281_v54 = vld [vmem:[%s5483_s18 + $0xba0] sm:$0xff]  ;;  %v1283_v55 = vld [vmem:[%s5483_s18 + $0xbb0] sm:$0xff]  ;;  %v791_v40 = vadd.s32 1664, %v5579_v61 }
 0x24a   : > { %v671_v41 = vrot.slane %v6446_v22, %v5824_v30 }
 0x24b   : > { %4022 = vmatpush1.bf16.msra.mxu1 %v4021_v3  ;;  %v1779_v3 = vld [vmem:[%s5483_s18 + $0x1b30] sm:$0xff]  ;;  %v824_v62 = vadd.s32 %v5597_v15, %v791_v40 }
 0x24c   : > { %4534 = vmatpush1.bf16.msra.mxu0 %v4533_v4  ;;  %4024 = vmatprep.subr.bf16.mxu1 %v4023_v6  ;;  %v1270_v4 = vld [vmem:[%s5483_s18 + $0xb48] sm:$0xff]  ;;  %v1272_v6 = vld [vmem:[%s5483_s18 + $0xb58] sm:$0xff]  ;;  %v1307_v40 = vld [vmem:[%s5483_s18 + $0xc70] sm:$0xff] }
 0x24d   : > { %4536 = vmatprep.subr.bf16.mxu0 %v4535_v9  ;;  %v4553_v9 = vpack.c.bf16 %v1779_v3, %v1777_v0  ;;  %v4043_v11 = vpack.c.bf16 %v1272_v6, %v1270_v4  ;;  %v4057_v0 = vpack.c.bf16 %v1283_v55, %v1281_v54  ;;  %v1285_v4 = vld [vmem:[%s5483_s18 + $0xbc0] sm:$0xff]  ;;  %v1287_v6 = vld [vmem:[%s5483_s18 + $0xbd0] sm:$0xff]  ;;  %vm856_vm8 = vcmp.lt.s32.totalorder %v824_v62, 17114 }
 0x24e   : > { %v1807_v55 = vld [vmem:[%s5483_s18 + $0x1c10] sm:$0xff] }
 0x24f   : > { %4026 = vmatpush1.bf16.msra.mxu1 %v4025_v33  ;;  %v1783_v33 = vld [vmem:[%s5483_s18 + $0x1b50] sm:$0xff] }
 0x250   : > { %4538 = vmatpush1.bf16.msra.mxu0 %v4537_v19  ;;  %4028 = vmatprep.subr.bf16.mxu1 %v4027_v20  ;;  %v1274_v19 = vld [vmem:[%s5483_s18 + $0xb68] sm:$0xff]  ;;  %v1276_v20 = vld [vmem:[%s5483_s18 + $0xb78] sm:$0xff] }
 0x251   : > { %4540 = vmatprep.subr.bf16.mxu0 %v4539_v24  ;;  %v4557_v24 = vpack.c.bf16 %v1783_v33, %v1781_v16  ;;  %v4047_v25 = vpack.c.bf16 %v1276_v20, %v1274_v19  ;;  %v6438_v16 = vld [vmem:[%s5477_s21 + $0x8] sm:$0xff]  ;;  %v4061_v33 = vpack.c.bf16 %v1287_v6, %v1285_v4  ;;  %v1289_v19 = vld [vmem:[%s5483_s18 + $0xbe0] sm:$0xff]  ;;  %v522_v20 = vld [vmem:[%s5470_s5 + $0x50] sm:$0xff] }
 0x253   : > { %4030 = vmatpush1.bf16.msra.mxu1 %v4029_v31  ;;  %v1787_v31 = vld [vmem:[%s5483_s18 + $0x1b70] sm:$0xff] }
 0x254   : > { %4542 = vmatpush1.bf16.msra.mxu0 %v4541_v32  ;;  %4032 = vmatprep.subr.bf16.mxu1 %v4031_v34  ;;  %v1278_v32 = vld [vmem:[%s5483_s18 + $0xb88] sm:$0xff]  ;;  %v1280_v34 = vld [vmem:[%s5483_s18 + $0xb98] sm:$0xff] }
 0x255   : > { %4544 = vmatprep.subr.bf16.mxu0 %v4543_v38  ;;  %v4561_v38 = vpack.c.bf16 %v1787_v31, %v1785_v27  ;;  %v4051_v39 = vpack.c.bf16 %v1280_v34, %v1278_v32  ;;  %v538_v27 = vld [vmem:[%s5470_s5 + $0xd0] sm:$0xff]  ;;  %v4575_v31 = vpack.c.bf16 %v1804_v13, %v1802_v12  ;;  %v1294_v34 = vld [vmem:[%s5483_s18 + $0xc08] sm:$0xff] }
 0x256   : > { %v1803_v32 = vld [vmem:[%s5483_s18 + $0x1bf0] sm:$0xff]  ;;  %v4067_v49 = vpack.c.bf16 %v1296_v35, %v1294_v34  ;;  %v1302_v13 = vld [vmem:[%s5483_s18 + $0xc48] sm:$0xff]  ;;  %v1308_v34 = vld [vmem:[%s5483_s18 + $0xc78] sm:$0xff] }
 0x257   : > { %4034 = vmatpush1.bf16.msra.mxu1 %v4033_v44  ;;  %v1791_v44 = vld [vmem:[%s5483_s18 + $0x1b90] sm:$0xff]  ;;  %v4577_v10 = vpack.c.bf16 %v1803_v32, %v1801_v5  ;;  %v1306_v32 = vld [vmem:[%s5483_s18 + $0xc68] sm:$0xff] }
 0x258   : > { %4546 = vmatpush1.bf16.msra.mxu0 %v4545_v46  ;;  %4036 = vmatprep.subr.bf16.mxu1 %v4035_v48  ;;  %v1282_v46 = vld [vmem:[%s5483_s18 + $0xba8] sm:$0xff]  ;;  %v1284_v48 = vld [vmem:[%s5483_s18 + $0xbb8] sm:$0xff]  ;;  %v1811_v12 = vld [vmem:[%s5483_s18 + $0x1c30] sm:$0xff] }
 0x259   : > { %4548 = vmatprep.subr.bf16.mxu0 %v4547_v51  ;;  %v4565_v51 = vpack.c.bf16 %v1791_v44, %v1789_v42  ;;  %v4055_v52 = vpack.c.bf16 %v1284_v48, %v1282_v46  ;;  %v4065_v42 = vpack.c.bf16 %v1291_v26, %v1289_v19  ;;  %v541_v46 = vld [vmem:[%s5470_s5 + $0xe8] sm:$0xff]  ;;  %v807_v48 = vadd.s32 3712, %v5579_v61  ;;  %v1301_v26 = vld [vmem:[%s5483_s18 + $0xc40] sm:$0xff]  ;;  %v1303_v5 = vld [vmem:[%s5483_s18 + $0xc50] sm:$0xff] }
 0x25a   : > { %v1814_v19 = vld [vmem:[%s5483_s18 + $0x1c48] sm:$0xff] }
 0x25b   : > { %4038 = vmatpush1.bf16.msra.mxu1 %v4037_v56  ;;  %v1795_v56 = vld [vmem:[%s5483_s18 + $0x1bb0] sm:$0xff]  ;;  %v840_v4 = vadd.s32 %v5597_v15, %v807_v48  ;;  %v1818_v35 = vld [vmem:[%s5483_s18 + $0x1c68] sm:$0xff] }
 0x25c   : > { %4550 = vmatpush1.bf16.msra.mxu0 %v4549_v58  ;;  %4040 = vmatprep.subr.bf16.mxu1 %v4039_v28  ;;  %v1286_v58 = vld [vmem:[%s5483_s18 + $0xbc8] sm:$0xff]  ;;  %v1288_v28 = vld [vmem:[%s5483_s18 + $0xbd8] sm:$0xff] }
 0x25d   : > { %4552 = vmatprep.subr.bf16.mxu0 %v4551_v2  ;;  %v4569_v2 = vpack.c.bf16 %v1795_v56, %v1793_v45  ;;  %v4059_v3 = vpack.c.bf16 %v1288_v28, %v1286_v58  ;;  %v1298_v45 = vld [vmem:[%s5483_s18 + $0xc28] sm:$0xff]  ;;  %vm872_vm9 = vcmp.lt.s32.totalorder %v840_v4, 17114  ;;  %v1825_v4 = vld [vmem:[%s5483_s18 + $0x1ca0] sm:$0xff] }
 0x25e   : > { %v1810_v28 = vld [vmem:[%s5483_s18 + $0x1c28] sm:$0xff] }
 0x25f   : > { %4042 = vmatpush1.bf16.msra.mxu1 %v4041_v8  ;;  %v1799_v8 = vld [vmem:[%s5483_s18 + $0x1bd0] sm:$0xff]  ;;  %v1822_v48 = vld [vmem:[%s5483_s18 + $0x1c88] sm:$0xff] }
 0x260   : > { %4554 = vmatpush1.bf16.msra.mxu0 %v4553_v9  ;;  %4044 = vmatprep.subr.bf16.mxu1 %v4043_v11  ;;  %v1290_v9 = vld [vmem:[%s5483_s18 + $0xbe8] sm:$0xff]  ;;  %v1292_v11 = vld [vmem:[%s5483_s18 + $0xbf8] sm:$0xff] }
 0x261   : > { %4556 = vmatprep.subr.bf16.mxu0 %v4555_v17  ;;  %v595_v17 = vrot.slane %v6438_v16, %v5796_v53 }
 0x263   : > { %4046 = vmatpush1.bf16.msra.mxu1 %v4045_v23  ;;  %v659_v23 = vrot.slane %v6446_v22, %v5796_v53  ;;  %v607_v53 = vrot.slane %v6438_v16, %v5824_v30 }
 0x264   : > { %4558 = vmatpush1.bf16.msra.mxu0 %v4557_v24  ;;  %4048 = vmatprep.subr.bf16.mxu1 %v4047_v25  ;;  %v4573_v24 = vpack.c.bf16 %v1799_v8, %v1797_v63  ;;  %v4063_v25 = vpack.c.bf16 %v1292_v11, %v1290_v9  ;;  %v1299_v8 = vld [vmem:[%s5483_s18 + $0xc30] sm:$0xff]  ;;  %v1809_v9 = vld [vmem:[%s5483_s18 + $0x1c20] sm:$0xff]  ;;  %v4583_v11 = vpack.c.bf16 %v1812_v60, %v1810_v28  ;;  %v1828_v28 = vld [vmem:[%s5483_s18 + $0x1cb8] sm:$0xff] }
 0x265   : > { %4560 = vmatprep.subr.bf16.mxu0 %v4559_v29  ;;  %v804_v29 = vadd.s32 3328, %v5579_v61  ;;  %v738_v44 = vmul.f32 %v659_v23, %v538_v27  ;;  %v1813_v27 = vld [vmem:[%s5483_s18 + $0x1c40] sm:$0xff] }
 0x267   : > { %4050 = vmatpush1.bf16.msra.mxu1 %v4049_v37  ;;  %v1808_v37 = vld [vmem:[%s5483_s18 + $0x1c18] sm:$0xff]  ;;  %v837_v30 = vadd.s32 %v5597_v15, %v804_v29 }
 0x268   : > { %4562 = vmatpush1.bf16.msra.mxu0 %v4561_v38  ;;  %4052 = vmatprep.subr.bf16.mxu1 %v4051_v39  ;;  %v722_v38 = vmul.f32 %v595_v17, %v522_v20  ;;  %v525_v39 = vld [vmem:[%s5470_s5 + $0x68] sm:$0xff]  ;;  %v4579_v54 = vpack.c.bf16 %v1808_v37, %v1806_v36  ;;  %v1304_v17 = vld [vmem:[%s5483_s18 + $0xc58] sm:$0xff]  ;;  %v4077_v36 = vpack.c.bf16 %v1303_v5, %v1301_v26 }
 0x269   : > { %4564 = vmatprep.subr.bf16.mxu0 %v4563_v43  ;;  %v821_v43 = vadd.s32 %v5597_v15, %v788_v21  ;;  %v725_v56 = vmul.f32 %v607_v53, %v525_v39  ;;  %vm869_vm7 = vcmp.lt.s32.totalorder %v837_v30, 17114  ;;  %v1816_v20 = vld [vmem:[%s5483_s18 + $0x1c58] sm:$0xff]  ;;  %v1305_v39 = vld [vmem:[%s5483_s18 + $0xc60] sm:$0xff]  ;;  %v1834_v26 = vld [vmem:[%s5483_s18 + $0x1ce8] sm:$0xff] }
 0x26a   : > { %v754_v58 = vmax.f32 %v722_v38, 0.0  ;;  %v4587_v29 = vpack.c.bf16 %v1816_v20, %v1814_v19  ;;  %v1820_v53 = vld [vmem:[%s5483_s18 + $0x1c78] sm:$0xff]  ;;  %v4079_v38 = vpack.c.bf16 %v1308_v34, %v1306_v32  ;;  %v1309_v30 = vld [vmem:[%s5483_s18 + $0xc80] sm:$0xff]  ;;  %v1319_v19 = vld [vmem:[%s5483_s18 + $0xcd0] sm:$0xff] }
 0x26b   : > { %4054 = vmatpush1.bf16.msra.mxu1 %v4053_v50  ;;  %v1293_v50 = vld [vmem:[%s5483_s18 + $0xc00] sm:$0xff]  ;;  %vm853_vm6 = vcmp.lt.s32.totalorder %v821_v43, 17114  ;;  %v1819_v43 = vld [vmem:[%s5483_s18 + $0x1c70] sm:$0xff]  ;;  %v1836_v5 = vld [vmem:[%s5483_s18 + $0x1cf8] sm:$0xff] }
 0x26c   : > { %4566 = vmatpush1.bf16.msra.mxu0 %v4565_v51  ;;  %4056 = vmatprep.subr.bf16.mxu1 %v4055_v52  ;;  %v1295_v51 = vld [vmem:[%s5483_s18 + $0xc10] sm:$0xff]  ;;  %v1805_v52 = vld [vmem:[%s5483_s18 + $0x1c00] sm:$0xff] }
 0x26d   : > { %4568 = vmatprep.subr.bf16.mxu0 %v4567_v18  ;;  %v1300_v18 = vld [vmem:[%s5483_s18 + $0xc38] sm:$0xff]  ;;  %v4581_v6 = vpack.c.bf16 %v1807_v55, %v1805_v52  ;;  %v1311_v52 = vld [vmem:[%s5483_s18 + $0xc90] sm:$0xff]  ;;  %v1829_v20 = vld [vmem:[%s5483_s18 + $0x1cc0] sm:$0xff] }
 0x26e   : > { %v4071_v63 = vpack.c.bf16 %v1300_v18, %v1298_v45  ;;  %v1823_v45 = vld [vmem:[%s5483_s18 + $0x1c90] sm:$0xff]  ;;  %v1314_v18 = vld [vmem:[%s5483_s18 + $0xca8] sm:$0xff]  ;;  %v4085_v60 = vpack.c.bf16 %v1311_v52, %v1309_v30  ;;  %v1321_v32 = vld [vmem:[%s5483_s18 + $0xce0] sm:$0xff] }
 0x26f   : > { %4058 = vmatpush1.bf16.msra.mxu1 %v4057_v0  ;;  %v741_v0 = vmul.f32 %v671_v41, %v541_v46  ;;  %v1817_v41 = vld [vmem:[%s5483_s18 + $0x1c60] sm:$0xff]  ;;  %v1312_v46 = vld [vmem:[%s5483_s18 + $0xc98] sm:$0xff]  ;;  %v1323_v34 = vld [vmem:[%s5483_s18 + $0xcf0] sm:$0xff] }
 0x270   : > { %4570 = vmatpush1.bf16.msra.mxu0 %v4569_v2  ;;  %4060 = vmatprep.subr.bf16.mxu1 %v4059_v3  ;;  %v4069_v2 = vpack.c.bf16 %v1295_v51, %v1293_v50  ;;  %v770_v3 = vmax.f32 %v738_v44, 0.0  ;;  %v1310_v44 = vld [vmem:[%s5483_s18 + $0xc88] sm:$0xff]  ;;  %v4593_v50 = vpack.c.bf16 %v1819_v43, %v1817_v41  ;;  %v4097_v41 = vpack.c.bf16 %v1323_v34, %v1321_v32  ;;  %v1844_v52 = vld [vmem:[%s5483_s18 + $0x1d38] sm:$0xff] }
 0x271   : > { %4572 = vmatprep.subr.bf16.mxu0 %v4571_v7  ;;  %v1297_v7 = vld [vmem:[%s5483_s18 + $0xc20] sm:$0xff]  ;;  %v773_v21 = vmax.f32 %v741_v0, 0.0  ;;  %v4083_v51 = vpack.c.bf16 %v1312_v46, %v1310_v44  ;;  %v1327_v46 = vld [vmem:[%s5483_s18 + $0xd10] sm:$0xff]  ;;  %v1842_v30 = vld [vmem:[%s5483_s18 + $0x1d28] sm:$0xff] }
 0x272   : > { %v4073_v23 = vpack.c.bf16 %v1299_v8, %v1297_v7  ;;  %v1318_v7 = vld [vmem:[%s5483_s18 + $0xcc8] sm:$0xff]  ;;  %v1320_v8 = vld [vmem:[%s5483_s18 + $0xcd8] sm:$0xff]  ;;  %v1325_v44 = vld [vmem:[%s5483_s18 + $0xd00] sm:$0xff] }
 0x273   : > { %4062 = vmatpush1.bf16.msra.mxu1 %v4061_v33  ;;  %v757_v33 = vmax.f32 %v725_v56, 0.0  ;;  %v1316_v56 = vld [vmem:[%s5483_s18 + $0xcb8] sm:$0xff]  ;;  %v1854_v32 = vld [vmem:[%s5483_s18 + $0x1d88] sm:$0xff] }
 0x274   : > { %4574 = vmatpush1.bf16.msra.mxu0 %v4573_v24  ;;  %4064 = vmatprep.subr.bf16.mxu1 %v4063_v25  ;;  %v4585_v24 = vpack.c.bf16 %v1811_v12, %v1809_v9  ;;  %v4075_v25 = vpack.c.bf16 %v1304_v17, %v1302_v13  ;;  %v4087_v0 = vpack.c.bf16 %v1316_v56, %v1314_v18  ;;  %v1830_v9 = vld [vmem:[%s5483_s18 + $0x1cc8] sm:$0xff]  ;;  %v1329_v18 = vld [vmem:[%s5483_s18 + $0xd20] sm:$0xff]  ;;  %v1331_v56 = vld [vmem:[%s5483_s18 + $0xd30] sm:$0xff] }
 0x275   : > { %4576 = vmatprep.subr.bf16.mxu0 %v4575_v31  ;;  %v1815_v31 = vld [vmem:[%s5483_s18 + $0x1c50] sm:$0xff]  ;;  %v4091_v17 = vpack.c.bf16 %v1320_v8, %v1318_v7  ;;  %v1333_v7 = vld [vmem:[%s5483_s18 + $0xd40] sm:$0xff]  ;;  %v1856_v34 = vld [vmem:[%s5483_s18 + $0x1d98] sm:$0xff] }
 0x276   : > { %v4589_v37 = vpack.c.bf16 %v1815_v31, %v1813_v27  ;;  %v1335_v8 = vld [vmem:[%s5483_s18 + $0xd50] sm:$0xff] }
 0x277   : > { %4066 = vmatpush1.bf16.msra.mxu1 %v4065_v42  ;;  %v4591_v42 = vpack.c.bf16 %v1820_v53, %v1818_v35  ;;  %v1833_v35 = vld [vmem:[%s5483_s18 + $0x1ce0] sm:$0xff]  ;;  %v4607_v53 = vpack.c.bf16 %v1836_v5, %v1834_v26 }
 0x278   : > { %4578 = vmatpush1.bf16.msra.mxu0 %v4577_v10  ;;  %4068 = vmatprep.subr.bf16.mxu1 %v4067_v49  ;;  %v1824_v10 = vld [vmem:[%s5483_s18 + $0x1c98] sm:$0xff]  ;;  %v4081_v49 = vpack.c.bf16 %v1307_v40, %v1305_v39  ;;  %v1838_v39 = vld [vmem:[%s5483_s18 + $0x1d08] sm:$0xff]  ;;  %v1849_v26 = vld [vmem:[%s5483_s18 + $0x1d60] sm:$0xff] }
 0x279   : > { %4580 = vmatprep.subr.bf16.mxu0 %v4579_v54  ;;  %v1821_v54 = vld [vmem:[%s5483_s18 + $0x1c80] sm:$0xff]  ;;  %v4595_v55 = vpack.c.bf16 %v1824_v10, %v1822_v48  ;;  %v1840_v40 = vld [vmem:[%s5483_s18 + $0x1d18] sm:$0xff] }
 0x27a   : > { %3548 = vmatmul.mubr.msk.f32.vlgmr.msra.gmra.mrb[0].mxu1 %vm853_vm6, %v754_v58  ;;  %v1826_v58 = vld [vmem:[%s5483_s18 + $0x1ca8] sm:$0xff]  ;;  %v4597_v62 = vpack.c.bf16 %v1823_v45, %v1821_v54  ;;  %v1837_v48 = vld [vmem:[%s5483_s18 + $0x1d00] sm:$0xff]  ;;  %v4611_v10 = vpack.c.bf16 %v1840_v40, %v1838_v39  ;;  %v4101_v54 = vpack.c.bf16 %v1327_v46, %v1325_v44  ;;  %v4627_v40 = vpack.c.bf16 %v1856_v34, %v1854_v32  ;;  %v1860_v46 = vld [vmem:[%s5483_s18 + $0x1db8] sm:$0xff] }
 0x27b   : > { %4070 = vmatpush1.bf16.msra.mxu1 %v4069_v2  ;;  %3564 = vmatmul.mubr.msk.f32.vlgmr.msra.gmra.mrb[0].mxu0 %vm869_vm7, %v770_v3  ;;  %v1313_v2 = vld [vmem:[%s5483_s18 + $0xca0] sm:$0xff]  ;;  %v1315_v3 = vld [vmem:[%s5483_s18 + $0xcb0] sm:$0xff]  ;;  %v1858_v44 = vld [vmem:[%s5483_s18 + $0x1da8] sm:$0xff] }
 0x27c   : > { %4582 = vmatpush1.bf16.msra.mxu0 %v4581_v6  ;;  %4072 = vmatprep.subr.bf16.mxu1 %v4071_v63  ;;  %v4599_v6 = vpack.c.bf16 %v1828_v28, %v1826_v58  ;;  %v1827_v63 = vld [vmem:[%s5483_s18 + $0x1cb0] sm:$0xff]  ;;  %v4089_v12 = vpack.c.bf16 %v1315_v3, %v1313_v2  ;;  %v1841_v58 = vld [vmem:[%s5483_s18 + $0x1d20] sm:$0xff]  ;;  %v4615_v28 = vpack.c.bf16 %v1844_v52, %v1842_v30  ;;  %v1846_v2 = vld [vmem:[%s5483_s18 + $0x1d48] sm:$0xff] }
 0x27d   : > { %4584 = vmatprep.subr.bf16.mxu0 %v4583_v11  ;;  %3549 = vmatprep.mubr.msk.f32.mxu1 %vm856_vm8, %v757_v33  ;;  %v1832_v11 = vld [vmem:[%s5483_s18 + $0x1cd8] sm:$0xff]  ;;  %v4601_v13 = vpack.c.bf16 %v1827_v63, %v1825_v4  ;;  %v1317_v33 = vld [vmem:[%s5483_s18 + $0xcc0] sm:$0xff]  ;;  %v4105_v4 = vpack.c.bf16 %v1331_v56, %v1329_v18  ;;  %v4631_v52 = vpack.c.bf16 %v1860_v46, %v1858_v44  ;;  %v1862_v18 = vld [vmem:[%s5483_s18 + $0x1dc8] sm:$0xff] }
 0x27e   : > { %3565 = vmatprep.mubr.msk.f32.mxu0 %vm872_vm9, %v773_v21  ;;  %v4603_v21 = vpack.c.bf16 %v1832_v11, %v1830_v9  ;;  %v4093_v27 = vpack.c.bf16 %v1319_v19, %v1317_v33  ;;  %v1848_v3 = vld [vmem:[%s5483_s18 + $0x1d58] sm:$0xff]  ;;  %v1845_v9 = vld [vmem:[%s5483_s18 + $0x1d40] sm:$0xff]  ;;  %v1850_v33 = vld [vmem:[%s5483_s18 + $0x1d68] sm:$0xff] }
 0x27f   : > { %4074 = vmatpush1.bf16.msra.mxu1 %v4073_v23  ;;  %v1831_v23 = vld [vmem:[%s5483_s18 + $0x1cd0] sm:$0xff]  ;;  %v4619_v11 = vpack.c.bf16 %v1848_v3, %v1846_v2  ;;  %v1852_v19 = vld [vmem:[%s5483_s18 + $0x1d78] sm:$0xff]  ;;  %v1853_v39 = vld [vmem:[%s5483_s18 + $0x1d80] sm:$0xff] }
 0x280   : > { %4586 = vmatpush1.bf16.msra.mxu0 %v4585_v24  ;;  %4076 = vmatprep.subr.bf16.mxu1 %v4075_v25  ;;  %v1322_v24 = vld [vmem:[%s5483_s18 + $0xce8] sm:$0xff]  ;;  %v1324_v25 = vld [vmem:[%s5483_s18 + $0xcf8] sm:$0xff]  ;;  %v4623_v5 = vpack.c.bf16 %v1852_v19, %v1850_v33  ;;  %v1857_v30 = vld [vmem:[%s5483_s18 + $0x1da0] sm:$0xff]  ;;  %v667_v33 = vrot.slane %v6446_v22, %v5953_v47 }
 0x281   : > { %4588 = vmatprep.subr.bf16.mxu0 %v4587_v29  ;;  %v4605_v29 = vpack.c.bf16 %v1831_v23, %v1829_v20  ;;  %v4095_v31 = vpack.c.bf16 %v1324_v25, %v1322_v24  ;;  %v4109_v20 = vpack.c.bf16 %v1335_v8, %v1333_v7  ;;  %v1337_v24 = vld [vmem:[%s5483_s18 + $0xd60] sm:$0xff]  ;;  %v1339_v25 = vld [vmem:[%s5483_s18 + $0xd70] sm:$0xff]  ;;  %v1864_v56 = vld [vmem:[%s5483_s18 + $0x1dd8] sm:$0xff] }
 0x282   : > { %v1861_v2 = vld [vmem:[%s5483_s18 + $0x1dc0] sm:$0xff]  ;;  %v4635_v3 = vpack.c.bf16 %v1864_v56, %v1862_v18  ;;  %v1866_v7 = vld [vmem:[%s5483_s18 + $0x1de8] sm:$0xff]  ;;  %v1868_v8 = vld [vmem:[%s5483_s18 + $0x1df8] sm:$0xff] }
 0x283   : > { %4078 = vmatpush1.bf16.msra.mxu1 %v4077_v36  ;;  %v1835_v36 = vld [vmem:[%s5483_s18 + $0x1cf0] sm:$0xff]  ;;  %v1872_v32 = vld [vmem:[%s5483_s18 + $0x1e18] sm:$0xff] }
 0x284   : > { %4590 = vmatpush1.bf16.msra.mxu0 %v4589_v37  ;;  %4080 = vmatprep.subr.bf16.mxu1 %v4079_v38  ;;  %v1326_v37 = vld [vmem:[%s5483_s18 + $0xd08] sm:$0xff]  ;;  %v1328_v38 = vld [vmem:[%s5483_s18 + $0xd18] sm:$0xff]  ;;  %v1359_v44 = vld [vmem:[%s5483_s18 + $0xe10] sm:$0xff] }
 0x285   : > { %4592 = vmatprep.subr.bf16.mxu0 %v4591_v42  ;;  %v4609_v42 = vpack.c.bf16 %v1835_v36, %v1833_v35  ;;  %v4099_v43 = vpack.c.bf16 %v1328_v38, %v1326_v37  ;;  %v4113_v35 = vpack.c.bf16 %v1339_v25, %v1337_v24  ;;  %v1341_v37 = vld [vmem:[%s5483_s18 + $0xd80] sm:$0xff]  ;;  %v1343_v38 = vld [vmem:[%s5483_s18 + $0xd90] sm:$0xff]  ;;  %v806_v25 = vadd.s32 3584, %v5579_v61 }
 0x286   : > { %v540_v24 = vld [vmem:[%s5470_s5 + $0xe0] sm:$0xff] }
 0x287   : > { %4082 = vmatpush1.bf16.msra.mxu1 %v4081_v49  ;;  %v1839_v49 = vld [vmem:[%s5483_s18 + $0x1d10] sm:$0xff] }
 0x288   : > { %4594 = vmatpush1.bf16.msra.mxu0 %v4593_v50  ;;  %4084 = vmatprep.subr.bf16.mxu1 %v4083_v51  ;;  %v1330_v50 = vld [vmem:[%s5483_s18 + $0xd28] sm:$0xff]  ;;  %v1332_v51 = vld [vmem:[%s5483_s18 + $0xd38] sm:$0xff] }
 0x289   : > { %4596 = vmatprep.subr.bf16.mxu0 %v4595_v55  ;;  %v4613_v55 = vpack.c.bf16 %v1839_v49, %v1837_v48  ;;  %v4103_v45 = vpack.c.bf16 %v1332_v51, %v1330_v50  ;;  %v4117_v48 = vpack.c.bf16 %v1343_v38, %v1341_v37  ;;  %v1345_v50 = vld [vmem:[%s5483_s18 + $0xda0] sm:$0xff]  ;;  %v1347_v51 = vld [vmem:[%s5483_s18 + $0xdb0] sm:$0xff] }
 0x28b   : > { %4086 = vmatpush1.bf16.msra.mxu1 %v4085_v60  ;;  %v1843_v60 = vld [vmem:[%s5483_s18 + $0x1d30] sm:$0xff] }
 0x28c   : > { %4598 = vmatpush1.bf16.msra.mxu0 %v4597_v62  ;;  %4088 = vmatprep.subr.bf16.mxu1 %v4087_v0  ;;  %v1334_v62 = vld [vmem:[%s5483_s18 + $0xd48] sm:$0xff]  ;;  %v1336_v0 = vld [vmem:[%s5483_s18 + $0xd58] sm:$0xff] }
 0x28d   : > { %4600 = vmatprep.subr.bf16.mxu0 %v4599_v6  ;;  %v4617_v6 = vpack.c.bf16 %v1843_v60, %v1841_v58  ;;  %v4107_v63 = vpack.c.bf16 %v1336_v0, %v1334_v62  ;;  %v4121_v58 = vpack.c.bf16 %v1347_v51, %v1345_v50  ;;  %v1349_v62 = vld [vmem:[%s5483_s18 + $0xdc0] sm:$0xff]  ;;  %v1351_v0 = vld [vmem:[%s5483_s18 + $0xdd0] sm:$0xff] }
 0x28f   : > { %4090 = vmatpush1.bf16.msra.mxu1 %v4089_v12  ;;  %v1847_v12 = vld [vmem:[%s5483_s18 + $0x1d50] sm:$0xff] }
 0x290   : > { %4602 = vmatpush1.bf16.msra.mxu0 %v4601_v13  ;;  %4092 = vmatprep.subr.bf16.mxu1 %v4091_v17  ;;  %v1338_v13 = vld [vmem:[%s5483_s18 + $0xd68] sm:$0xff]  ;;  %v1340_v17 = vld [vmem:[%s5483_s18 + $0xd78] sm:$0xff] }
 0x291   : > { %4604 = vmatprep.subr.bf16.mxu0 %v4603_v21  ;;  %v4621_v21 = vpack.c.bf16 %v1847_v12, %v1845_v9  ;;  %v4111_v23 = vpack.c.bf16 %v1340_v17, %v1338_v13  ;;  %v603_v9 = vrot.slane %v6438_v16, %v5953_v47  ;;  %v1353_v12 = vld [vmem:[%s5483_s18 + $0xde0] sm:$0xff]  ;;  %v790_v17 = vadd.s32 1536, %v5579_v61 }
 0x292   : > { %v524_v13 = vld [vmem:[%s5470_s5 + $0x60] sm:$0xff]  ;;  %v615_v47 = vrot.slane %v6438_v16, %v5962_v59  ;;  %v740_v16 = vmul.f32 %v667_v33, %v540_v24  ;;  %v1367_v33 = vld [vmem:[%s5483_s18 + $0xe50] sm:$0xff]  ;;  %v1372_v24 = vld [vmem:[%s5483_s18 + $0xe78] sm:$0xff] }
 0x293   : > { %4094 = vmatpush1.bf16.msra.mxu1 %v4093_v27  ;;  %v1851_v27 = vld [vmem:[%s5483_s18 + $0x1d70] sm:$0xff]  ;;  %v724_v34 = vmul.f32 %v603_v9, %v524_v13  ;;  %v823_v38 = vadd.s32 %v5597_v15, %v790_v17  ;;  %v1365_v17 = vld [vmem:[%s5483_s18 + $0xe40] sm:$0xff] }
 0x294   : > { %4606 = vmatpush1.bf16.msra.mxu0 %v4605_v29  ;;  %4096 = vmatprep.subr.bf16.mxu1 %v4095_v31  ;;  %v1342_v29 = vld [vmem:[%s5483_s18 + $0xd88] sm:$0xff]  ;;  %v1344_v31 = vld [vmem:[%s5483_s18 + $0xd98] sm:$0xff]  ;;  %v772_v18 = vmax.f32 %v740_v16, 0.0 }
 0x295   : > { %4608 = vmatprep.subr.bf16.mxu0 %v4607_v53  ;;  %v4625_v53 = vpack.c.bf16 %v1851_v27, %v1849_v26  ;;  %v4115_v36 = vpack.c.bf16 %v1344_v31, %v1342_v29  ;;  %v4639_v26 = vpack.c.bf16 %v1868_v8, %v1866_v7  ;;  %v1358_v27 = vld [vmem:[%s5483_s18 + $0xe08] sm:$0xff]  ;;  %v1360_v29 = vld [vmem:[%s5483_s18 + $0xe18] sm:$0xff]  ;;  %v756_v51 = vmax.f32 %v724_v34, 0.0 }
 0x296   : > { %v1870_v31 = vld [vmem:[%s5483_s18 + $0x1e08] sm:$0xff]  ;;  %vm855_vm10 = vcmp.lt.s32.totalorder %v823_v38, 17114  ;;  %v1880_v8 = vld [vmem:[%s5483_s18 + $0x1e58] sm:$0xff] }
 0x297   : > { %4098 = vmatpush1.bf16.msra.mxu1 %v4097_v41  ;;  %v1855_v41 = vld [vmem:[%s5483_s18 + $0x1d90] sm:$0xff]  ;;  %v4643_v46 = vpack.c.bf16 %v1872_v32, %v1870_v31  ;;  %v1878_v7 = vld [vmem:[%s5483_s18 + $0x1e48] sm:$0xff]  ;;  %v1881_v32 = vld [vmem:[%s5483_s18 + $0x1e60] sm:$0xff] }
 0x298   : > { %4610 = vmatpush1.bf16.msra.mxu0 %v4609_v42  ;;  %4100 = vmatprep.subr.bf16.mxu1 %v4099_v43  ;;  %v1346_v42 = vld [vmem:[%s5483_s18 + $0xda8] sm:$0xff]  ;;  %v1348_v43 = vld [vmem:[%s5483_s18 + $0xdb8] sm:$0xff]  ;;  %v1371_v31 = vld [vmem:[%s5483_s18 + $0xe70] sm:$0xff] }
 0x299   : > { %4612 = vmatprep.subr.bf16.mxu0 %v4611_v10  ;;  %v4629_v10 = vpack.c.bf16 %v1855_v41, %v1853_v39  ;;  %v4119_v49 = vpack.c.bf16 %v1348_v43, %v1346_v42  ;;  %v543_v39 = vld [vmem:[%s5470_s5 + $0xf8] sm:$0xff]  ;;  %v4131_v42 = vpack.c.bf16 %v1360_v29, %v1358_v27  ;;  %v1357_v43 = vld [vmem:[%s5483_s18 + $0xe00] sm:$0xff] }
 0x29a   : > { %v1888_v38 = vld [vmem:[%s5483_s18 + $0x1e98] sm:$0xff] }
 0x29b   : > { %4102 = vmatpush1.bf16.msra.mxu1 %v4101_v54  ;;  %v1859_v54 = vld [vmem:[%s5483_s18 + $0x1db0] sm:$0xff] }
 0x29c   : > { %4614 = vmatpush1.bf16.msra.mxu0 %v4613_v55  ;;  %4104 = vmatprep.subr.bf16.mxu1 %v4103_v45  ;;  %v1350_v55 = vld [vmem:[%s5483_s18 + $0xdc8] sm:$0xff]  ;;  %v1352_v45 = vld [vmem:[%s5483_s18 + $0xdd8] sm:$0xff] }
 0x29d   : > { %4616 = vmatprep.subr.bf16.mxu0 %v4615_v28  ;;  %v4633_v28 = vpack.c.bf16 %v1859_v54, %v1857_v30  ;;  %v4123_v60 = vpack.c.bf16 %v1352_v45, %v1350_v55  ;;  %v1874_v30 = vld [vmem:[%s5483_s18 + $0x1e28] sm:$0xff]  ;;  %v4133_v45 = vpack.c.bf16 %v1359_v44, %v1357_v43  ;;  %v1885_v43 = vld [vmem:[%s5483_s18 + $0x1e80] sm:$0xff] }
 0x29f   : > { %4106 = vmatpush1.bf16.msra.mxu1 %v4105_v4  ;;  %v1863_v4 = vld [vmem:[%s5483_s18 + $0x1dd0] sm:$0xff] }
 0x2a0   : > { %4618 = vmatpush1.bf16.msra.mxu0 %v4617_v6  ;;  %4108 = vmatprep.subr.bf16.mxu1 %v4107_v63  ;;  %v1354_v6 = vld [vmem:[%s5483_s18 + $0xde8] sm:$0xff]  ;;  %v1356_v63 = vld [vmem:[%s5483_s18 + $0xdf8] sm:$0xff]  ;;  %v4637_v19 = vpack.c.bf16 %v1863_v4, %v1861_v2 }
 0x2a1   : > { %4620 = vmatprep.subr.bf16.mxu0 %v4619_v11  ;;  %v4125_v11 = vpack.c.bf16 %v1351_v0, %v1349_v62  ;;  %v1363_v62 = vld [vmem:[%s5483_s18 + $0xe30] sm:$0xff]  ;;  %v1873_v0 = vld [vmem:[%s5483_s18 + $0x1e20] sm:$0xff]  ;;  %v1366_v4 = vld [vmem:[%s5483_s18 + $0xe48] sm:$0xff] }
 0x2a3   : > { %4110 = vmatpush1.bf16.msra.mxu1 %v4109_v20  ;;  %v4127_v20 = vpack.c.bf16 %v1356_v63, %v1354_v6  ;;  %v1368_v6 = vld [vmem:[%s5483_s18 + $0xe58] sm:$0xff] }
 0x2a4   : > { %4622 = vmatpush1.bf16.msra.mxu0 %v4621_v21  ;;  %4112 = vmatprep.subr.bf16.mxu1 %v4111_v23  ;;  %v1355_v21 = vld [vmem:[%s5483_s18 + $0xdf0] sm:$0xff]  ;;  %v1865_v23 = vld [vmem:[%s5483_s18 + $0x1de0] sm:$0xff]  ;;  %v4139_v13 = vpack.c.bf16 %v1368_v6, %v1366_v4 }
 0x2a5   : > { %4624 = vmatprep.subr.bf16.mxu0 %v4623_v5  ;;  %v1867_v5 = vld [vmem:[%s5483_s18 + $0x1df0] sm:$0xff]  ;;  %v4129_v37 = vpack.c.bf16 %v1355_v21, %v1353_v12  ;;  %v1893_v4 = vld [vmem:[%s5483_s18 + $0x1ec0] sm:$0xff] }
 0x2a6   : > { %v4641_v41 = vpack.c.bf16 %v1867_v5, %v1865_v23  ;;  %v1879_v21 = vld [vmem:[%s5483_s18 + $0x1e50] sm:$0xff]  ;;  %v1370_v23 = vld [vmem:[%s5483_s18 + $0xe68] sm:$0xff]  ;;  %v4141_v5 = vpack.c.bf16 %v1367_v33, %v1365_v17  ;;  %v1385_v33 = vld [vmem:[%s5483_s18 + $0xee0] sm:$0xff] }
 0x2a7   : > { %4114 = vmatpush1.bf16.msra.mxu1 %v4113_v35  ;;  %v527_v35 = vld [vmem:[%s5470_s5 + $0x78] sm:$0xff]  ;;  %v4143_v29 = vpack.c.bf16 %v1372_v24, %v1370_v23  ;;  %v1899_v23 = vld [vmem:[%s5483_s18 + $0x1ef0] sm:$0xff]  ;;  %v1390_v24 = vld [vmem:[%s5483_s18 + $0xf08] sm:$0xff] }
 0x2a8   : > { %4626 = vmatpush1.bf16.msra.mxu0 %v4625_v53  ;;  %4116 = vmatprep.subr.bf16.mxu1 %v4115_v36  ;;  %v793_v53 = vadd.s32 1920, %v5579_v61  ;;  %v679_v36 = vrot.slane %v6446_v22, %v5962_v59  ;;  %v839_v59 = vadd.s32 %v5597_v15, %v806_v25  ;;  %v1869_v22 = vld [vmem:[%s5483_s18 + $0x1e00] sm:$0xff]  ;;  %v727_v50 = vmul.f32 %v615_v47, %v527_v35  ;;  %v1882_v25 = vld [vmem:[%s5483_s18 + $0x1e68] sm:$0xff]  ;;  %v1883_v35 = vld [vmem:[%s5483_s18 + $0x1e70] sm:$0xff] }
 0x2a9   : > { %4628 = vmatprep.subr.bf16.mxu0 %v4627_v40  ;;  %v809_v40 = vadd.s32 3968, %v5579_v61  ;;  %v1369_v47 = vld [vmem:[%s5483_s18 + $0xe60] sm:$0xff] }
 0x2aa   : > { %v826_v54 = vadd.s32 %v5597_v15, %v793_v53  ;;  %v743_v55 = vmul.f32 %v679_v36, %v543_v39  ;;  %vm871_vm11 = vcmp.lt.s32.totalorder %v839_v59, 17114  ;;  %v759_v63 = vmax.f32 %v727_v50, 0.0  ;;  %v1374_v53 = vld [vmem:[%s5483_s18 + $0xe88] sm:$0xff]  ;;  %v1376_v36 = vld [vmem:[%s5483_s18 + $0xe98] sm:$0xff]  ;;  %v1887_v59 = vld [vmem:[%s5483_s18 + $0x1e90] sm:$0xff] }
 0x2ab   : > { %4118 = vmatpush1.bf16.msra.mxu1 %v4117_v48  ;;  %v1871_v48 = vld [vmem:[%s5483_s18 + $0x1e10] sm:$0xff]  ;;  %v842_v56 = vadd.s32 %v5597_v15, %v809_v40  ;;  %v4145_v16 = vpack.c.bf16 %v1371_v31, %v1369_v47  ;;  %v4657_v39 = vpack.c.bf16 %v1883_v35, %v1881_v32  ;;  %v4147_v40 = vpack.c.bf16 %v1376_v36, %v1374_v53  ;;  %v1389_v31 = vld [vmem:[%s5483_s18 + $0xf00] sm:$0xff]  ;;  %v1394_v36 = vld [vmem:[%s5483_s18 + $0xf28] sm:$0xff] }
 0x2ac   : > { %4630 = vmatpush1.bf16.msra.mxu0 %v4629_v10  ;;  %4120 = vmatprep.subr.bf16.mxu1 %v4119_v49  ;;  %v1362_v10 = vld [vmem:[%s5483_s18 + $0xe28] sm:$0xff]  ;;  %v1364_v49 = vld [vmem:[%s5483_s18 + $0xe38] sm:$0xff]  ;;  %vm858_vm12 = vcmp.lt.s32.totalorder %v826_v54, 17114  ;;  %v775_v9 = vmax.f32 %v743_v55, 0.0  ;;  %v4661_v50 = vpack.c.bf16 %v1887_v59, %v1885_v43  ;;  %v1889_v54 = vld [vmem:[%s5483_s18 + $0x1ea0] sm:$0xff] }
 0x2ad   : > { %4632 = vmatprep.subr.bf16.mxu0 %v4631_v52  ;;  %v1876_v52 = vld [vmem:[%s5483_s18 + $0x1e38] sm:$0xff]  ;;  %vm874_vm13 = vcmp.lt.s32.totalorder %v842_v56, 17114  ;;  %v1391_v32 = vld [vmem:[%s5483_s18 + $0xf10] sm:$0xff] }
 0x2ae   : > { %v4647_v2 = vpack.c.bf16 %v1876_v52, %v1874_v30  ;;  %v1377_v30 = vld [vmem:[%s5483_s18 + $0xea0] sm:$0xff]  ;;  %v1379_v52 = vld [vmem:[%s5483_s18 + $0xeb0] sm:$0xff]  ;;  %v1384_v56 = vld [vmem:[%s5483_s18 + $0xed8] sm:$0xff] }
 0x2af   : > { %4122 = vmatpush1.bf16.msra.mxu1 %v4121_v58  ;;  %v4645_v58 = vpack.c.bf16 %v1871_v48, %v1869_v22  ;;  %v1378_v22 = vld [vmem:[%s5483_s18 + $0xea8] sm:$0xff]  ;;  %v1903_v53 = vld [vmem:[%s5483_s18 + $0x1f10] sm:$0xff] }
 0x2b0   : > { %4634 = vmatpush1.bf16.msra.mxu0 %v4633_v28  ;;  %4124 = vmatprep.subr.bf16.mxu1 %v4123_v60  ;;  %v4135_v28 = vpack.c.bf16 %v1364_v49, %v1362_v10  ;;  %v1361_v60 = vld [vmem:[%s5483_s18 + $0xe20] sm:$0xff]  ;;  %v1890_v48 = vld [vmem:[%s5483_s18 + $0x1ea8] sm:$0xff]  ;;  %v1892_v10 = vld [vmem:[%s5483_s18 + $0x1eb8] sm:$0xff] }
 0x2b1   : > { %4636 = vmatprep.subr.bf16.mxu0 %v4635_v3  ;;  %v1875_v3 = vld [vmem:[%s5483_s18 + $0x1e30] sm:$0xff]  ;;  %v4663_v55 = vpack.c.bf16 %v1892_v10, %v1890_v48  ;;  %v1400_v48 = vld [vmem:[%s5483_s18 + $0xf58] sm:$0xff]  ;;  %v1910_v10 = vld [vmem:[%s5483_s18 + $0x1f48] sm:$0xff] }
 0x2b2   : > { %v4649_v12 = vpack.c.bf16 %v1875_v3, %v1873_v0  ;;  %v1383_v3 = vld [vmem:[%s5483_s18 + $0xed0] sm:$0xff] }
 0x2b3   : > { %4126 = vmatpush1.bf16.msra.mxu1 %v4125_v11  ;;  %v4137_v11 = vpack.c.bf16 %v1363_v62, %v1361_v60  ;;  %v4153_v60 = vpack.c.bf16 %v1379_v52, %v1377_v30  ;;  %v1395_v43 = vld [vmem:[%s5483_s18 + $0xf30] sm:$0xff]  ;;  %v1397_v52 = vld [vmem:[%s5483_s18 + $0xf40] sm:$0xff] }
 0x2b4   : > { %4638 = vmatpush1.bf16.msra.mxu0 %v4637_v19  ;;  %4128 = vmatprep.subr.bf16.mxu1 %v4127_v20  ;;  %v1877_v19 = vld [vmem:[%s5483_s18 + $0x1e40] sm:$0xff]  ;;  %v4651_v20 = vpack.c.bf16 %v1880_v8, %v1878_v7  ;;  %v1386_v7 = vld [vmem:[%s5483_s18 + $0xee8] sm:$0xff]  ;;  %v1388_v8 = vld [vmem:[%s5483_s18 + $0xef8] sm:$0xff] }
 0x2b5   : > { %4640 = vmatprep.subr.bf16.mxu0 %v4639_v26  ;;  %v1884_v26 = vld [vmem:[%s5483_s18 + $0x1e78] sm:$0xff]  ;;  %v4653_v27 = vpack.c.bf16 %v1879_v21, %v1877_v19  ;;  %v4159_v17 = vpack.c.bf16 %v1388_v8, %v1386_v7  ;;  %v1387_v19 = vld [vmem:[%s5483_s18 + $0xef0] sm:$0xff]  ;;  %v1406_v8 = vld [vmem:[%s5483_s18 + $0xf88] sm:$0xff] }
 0x2b6   : > { %v4655_v34 = vpack.c.bf16 %v1884_v26, %v1882_v25  ;;  %v1392_v25 = vld [vmem:[%s5483_s18 + $0xf18] sm:$0xff]  ;;  %v1902_v26 = vld [vmem:[%s5483_s18 + $0x1f08] sm:$0xff]  ;;  %v1915_v7 = vld [vmem:[%s5483_s18 + $0x1f70] sm:$0xff] }
 0x2b7   : > { %4130 = vmatpush1.bf16.msra.mxu1 %v4129_v37  ;;  %v1886_v37 = vld [vmem:[%s5483_s18 + $0x1e88] sm:$0xff]  ;;  %v4163_v47 = vpack.c.bf16 %v1392_v25, %v1390_v24  ;;  %v1919_v24 = vld [vmem:[%s5483_s18 + $0x1f90] sm:$0xff] }
 0x2b8   : > { %4642 = vmatpush1.bf16.msra.mxu0 %v4641_v41  ;;  %4132 = vmatprep.subr.bf16.mxu1 %v4131_v42  ;;  %v1373_v41 = vld [vmem:[%s5483_s18 + $0xe80] sm:$0xff]  ;;  %v1375_v42 = vld [vmem:[%s5483_s18 + $0xe90] sm:$0xff]  ;;  %v4659_v44 = vpack.c.bf16 %v1888_v38, %v1886_v37  ;;  %v1396_v37 = vld [vmem:[%s5483_s18 + $0xf38] sm:$0xff] }
 0x2b9   : > { %4644 = vmatprep.subr.bf16.mxu0 %v4643_v46  ;;  %v1380_v46 = vld [vmem:[%s5483_s18 + $0xeb8] sm:$0xff]  ;;  %v4149_v49 = vpack.c.bf16 %v1375_v42, %v1373_v41  ;;  %v1906_v38 = vld [vmem:[%s5483_s18 + $0x1f28] sm:$0xff]  ;;  %v4167_v41 = vpack.c.bf16 %v1396_v37, %v1394_v36  ;;  %v1393_v42 = vld [vmem:[%s5483_s18 + $0xf20] sm:$0xff] }
 0x2ba   : > { %3550 = vmatmul.mubr.msk.f32.vlgmr.msra.gmra.mrb[0].mxu1 %vm855_vm10, %v756_v51  ;;  %v4151_v51 = vpack.c.bf16 %v1380_v46, %v1378_v22  ;;  %v1907_v22 = vld [vmem:[%s5483_s18 + $0x1f30] sm:$0xff]  ;;  %v1398_v46 = vld [vmem:[%s5483_s18 + $0xf48] sm:$0xff] }
 0x2bb   : > { %4134 = vmatpush1.bf16.msra.mxu1 %v4133_v45  ;;  %3566 = vmatmul.mubr.msk.f32.vlgmr.msra.gmra.mrb[0].mxu0 %vm871_vm11, %v772_v18  ;;  %v1891_v45 = vld [vmem:[%s5483_s18 + $0x1eb0] sm:$0xff]  ;;  %v1382_v18 = vld [vmem:[%s5483_s18 + $0xec8] sm:$0xff]  ;;  %v4171_v30 = vpack.c.bf16 %v1400_v48, %v1398_v46 }
 0x2bc   : > { %4646 = vmatpush1.bf16.msra.mxu0 %v4645_v58  ;;  %4136 = vmatprep.subr.bf16.mxu1 %v4135_v28  ;;  %v1894_v58 = vld [vmem:[%s5483_s18 + $0x1ec8] sm:$0xff]  ;;  %v1896_v28 = vld [vmem:[%s5483_s18 + $0x1ed8] sm:$0xff]  ;;  %v4665_v62 = vpack.c.bf16 %v1891_v45, %v1889_v54  ;;  %v4155_v0 = vpack.c.bf16 %v1384_v56, %v1382_v18  ;;  %v1399_v54 = vld [vmem:[%s5483_s18 + $0xf50] sm:$0xff] }
 0x2bd   : > { %4648 = vmatprep.subr.bf16.mxu0 %v4647_v2  ;;  %3551 = vmatprep.mubr.msk.f32.mxu1 %vm858_vm12, %v759_v63  ;;  %v1381_v2 = vld [vmem:[%s5483_s18 + $0xec0] sm:$0xff]  ;;  %v4667_v6 = vpack.c.bf16 %v1896_v28, %v1894_v58  ;;  %v1895_v63 = vld [vmem:[%s5483_s18 + $0x1ed0] sm:$0xff]  ;;  %v1402_v56 = vld [vmem:[%s5483_s18 + $0xf68] sm:$0xff] }
 0x2be   : > { %3567 = vmatprep.mubr.msk.f32.mxu0 %vm874_vm13, %v775_v9  ;;  %v1898_v9 = vld [vmem:[%s5483_s18 + $0x1ee8] sm:$0xff]  ;;  %v1911_v18 = vld [vmem:[%s5483_s18 + $0x1f50] sm:$0xff]  ;;  %v1404_v58 = vld [vmem:[%s5483_s18 + $0xf78] sm:$0xff] }
 0x2bf   : > { %4138 = vmatpush1.bf16.msra.mxu1 %v4137_v11  ;;  %v1900_v11 = vld [vmem:[%s5483_s18 + $0x1ef8] sm:$0xff]  ;;  %v1914_v28 = vld [vmem:[%s5483_s18 + $0x1f68] sm:$0xff]  ;;  %v1923_v36 = vld [vmem:[%s5483_s18 + $0x1fb0] sm:$0xff] }
 0x2c0   : > { %4650 = vmatpush1.bf16.msra.mxu0 %v4649_v12  ;;  %4140 = vmatprep.subr.bf16.mxu1 %v4139_v13  ;;  %v4157_v12 = vpack.c.bf16 %v1383_v3, %v1381_v2  ;;  %v4669_v13 = vpack.c.bf16 %v1895_v63, %v1893_v4  ;;  %v4671_v21 = vpack.c.bf16 %v1900_v11, %v1898_v9  ;;  %v1401_v3 = vld [vmem:[%s5483_s18 + $0xf60] sm:$0xff]  ;;  %v1403_v4 = vld [vmem:[%s5483_s18 + $0xf70] sm:$0xff]  ;;  %v1408_v9 = vld [vmem:[%s5483_s18 + $0xf98] sm:$0xff] }
 0x2c1   : > { %4652 = vmatprep.subr.bf16.mxu0 %v4651_v20  ;;  %v1897_v20 = vld [vmem:[%s5483_s18 + $0x1ee0] sm:$0xff]  ;;  %v4175_v2 = vpack.c.bf16 %v1404_v58, %v1402_v56  ;;  %v1918_v11 = vld [vmem:[%s5483_s18 + $0x1f88] sm:$0xff]  ;;  %v1927_v46 = vld [vmem:[%s5483_s18 + $0x1fd0] sm:$0xff] }
 0x2c2   : > { %v1410_v25 = vld [vmem:[%s5483_s18 + $0xfa8] sm:$0xff] }
 0x2c3   : > { %4142 = vmatpush1.bf16.msra.mxu1 %v4141_v5  ;;  %v1904_v5 = vld [vmem:[%s5483_s18 + $0x1f18] sm:$0xff]  ;;  %v1414_v37 = vld [vmem:[%s5483_s18 + $0xfc8] sm:$0xff] }
 0x2c4   : > { %4654 = vmatpush1.bf16.msra.mxu0 %v4653_v27  ;;  %4144 = vmatprep.subr.bf16.mxu1 %v4143_v29  ;;  %v4161_v27 = vpack.c.bf16 %v1387_v19, %v1385_v33  ;;  %v4673_v29 = vpack.c.bf16 %v1899_v23, %v1897_v20  ;;  %v4675_v35 = vpack.c.bf16 %v1904_v5, %v1902_v26  ;;  %v1405_v19 = vld [vmem:[%s5483_s18 + $0xf80] sm:$0xff]  ;;  %v1407_v20 = vld [vmem:[%s5483_s18 + $0xf90] sm:$0xff]  ;;  %v1412_v26 = vld [vmem:[%s5483_s18 + $0xfb8] sm:$0xff] }
 0x2c5   : > { %4656 = vmatprep.subr.bf16.mxu0 %v4655_v34  ;;  %v1901_v34 = vld [vmem:[%s5483_s18 + $0x1f00] sm:$0xff]  ;;  %v4179_v33 = vpack.c.bf16 %v1408_v9, %v1406_v8  ;;  %v1922_v5 = vld [vmem:[%s5483_s18 + $0x1fa8] sm:$0xff] }
 0x2c6   : > { %v1418_v48 = vld [vmem:[%s5483_s18 + $0xfe8] sm:$0xff] }
 0x2c7   : > { %4146 = vmatpush1.bf16.msra.mxu1 %v4145_v16  ;;  %v1908_v16 = vld [vmem:[%s5483_s18 + $0x1f38] sm:$0xff] }
 0x2c8   : > { %4658 = vmatpush1.bf16.msra.mxu0 %v4657_v39  ;;  %4148 = vmatprep.subr.bf16.mxu1 %v4147_v40  ;;  %v4165_v39 = vpack.c.bf16 %v1391_v32, %v1389_v31  ;;  %v4677_v40 = vpack.c.bf16 %v1903_v53, %v1901_v34  ;;  %v4679_v59 = vpack.c.bf16 %v1908_v16, %v1906_v38  ;;  %v1409_v32 = vld [vmem:[%s5483_s18 + $0xfa0] sm:$0xff]  ;;  %v1411_v34 = vld [vmem:[%s5483_s18 + $0xfb0] sm:$0xff]  ;;  %v1416_v38 = vld [vmem:[%s5483_s18 + $0xfd8] sm:$0xff] }
 0x2c9   : > { %4660 = vmatprep.subr.bf16.mxu0 %v4659_v44  ;;  %v1905_v44 = vld [vmem:[%s5483_s18 + $0x1f20] sm:$0xff]  ;;  %v4183_v31 = vpack.c.bf16 %v1412_v26, %v1410_v25  ;;  %v1926_v16 = vld [vmem:[%s5483_s18 + $0x1fc8] sm:$0xff] }
 0x2ca   : > { %v3112_v26 = vld [vmem:[#allocation11 + $0x88] sm:$0xff] (!%p3569_p9) }
 0x2cb   : > { %4150 = vmatpush1.bf16.msra.mxu1 %v4149_v49  ;;  %v1912_v49 = vld [vmem:[%s5483_s18 + $0x1f58] sm:$0xff] }
 0x2cc   : > { %4662 = vmatpush1.bf16.msra.mxu0 %v4661_v50  ;;  %4152 = vmatprep.subr.bf16.mxu1 %v4151_v51  ;;  %v4169_v50 = vpack.c.bf16 %v1395_v43, %v1393_v42  ;;  %v4681_v51 = vpack.c.bf16 %v1907_v22, %v1905_v44  ;;  %v4683_v45 = vpack.c.bf16 %v1912_v49, %v1910_v10  ;;  %v1413_v43 = vld [vmem:[%s5483_s18 + $0xfc0] sm:$0xff]  ;;  %v1415_v44 = vld [vmem:[%s5483_s18 + $0xfd0] sm:$0xff]  ;;  %v1420_v10 = vld [vmem:[%s5483_s18 + $0xff8] sm:$0xff] }
 0x2cd   : > { %4664 = vmatprep.subr.bf16.mxu0 %v4663_v55  ;;  %v1909_v55 = vld [vmem:[%s5483_s18 + $0x1f40] sm:$0xff]  ;;  %v4187_v42 = vpack.c.bf16 %v1416_v38, %v1414_v37  ;;  %v1930_v49 = vld [vmem:[%s5483_s18 + $0x1fe8] sm:$0xff]  ;;  %v4191_v58 = vpack.c.bf16 %v1420_v10, %v1418_v48 }
 0x2ce   : > { %v3115_v37 = vld [vmem:[#allocation11 + $0xa0] sm:$0xff] (!%p3569_p9)  ;;  %v3116_v38 = vld [vmem:[#allocation11 + $0xa8] sm:$0xff] (!%p3569_p9) }
 0x2cf   : > { %4154 = vmatpush1.bf16.msra.mxu1 %v4153_v60  ;;  %v1916_v60 = vld [vmem:[%s5483_s18 + $0x1f78] sm:$0xff]  ;;  %v3119_v48 = vld [vmem:[#allocation11 + $0xc0] sm:$0xff] (!%p3569_p9)  ;;  %v3120_v10 = vld [vmem:[#allocation11 + $0xc8] sm:$0xff] (!%p3569_p9) }
 0x2d0   : > { %4666 = vmatpush1.bf16.msra.mxu0 %v4665_v62  ;;  %4156 = vmatprep.subr.bf16.mxu1 %v4155_v0  ;;  %v4173_v62 = vpack.c.bf16 %v1399_v54, %v1397_v52  ;;  %v4685_v0 = vpack.c.bf16 %v1911_v18, %v1909_v55  ;;  %v4687_v63 = vpack.c.bf16 %v1916_v60, %v1914_v28  ;;  %v526_v54 = vld [vmem:[%s5470_s5 + $0x70] sm:$0xff]  ;;  %v792_v55 = vadd.s32 1792, %v5579_v61  ;;  %v1417_v28 = vld [vmem:[%s5483_s18 + $0xfe0] sm:$0xff] }
 0x2d1   : > { %4668 = vmatprep.subr.bf16.mxu0 %v4667_v6  ;;  %v1913_v6 = vld [vmem:[%s5483_s18 + $0x1f60] sm:$0xff]  ;;  %v4189_v52 = vpack.c.bf16 %v1415_v44, %v1413_v43  ;;  %v1419_v60 = vld [vmem:[%s5483_s18 + $0xff0] sm:$0xff] }
 0x2d2   : > { %v3118_v43 = vld [vmem:[#allocation11 + $0xb8] sm:$0xff] (!%p3569_p9) }
 0x2d3   : > { %4158 = vmatpush1.bf16.msra.mxu1 %v4157_v12  ;;  %v1920_v12 = vld [vmem:[%s5483_s18 + $0x1f98] sm:$0xff] }
 0x2d4   : > { %4670 = vmatpush1.bf16.msra.mxu0 %v4669_v13  ;;  %4160 = vmatprep.subr.bf16.mxu1 %v4159_v17  ;;  %v4177_v13 = vpack.c.bf16 %v1403_v4, %v1401_v3  ;;  %v4689_v17 = vpack.c.bf16 %v1915_v7, %v1913_v6  ;;  %v4691_v23 = vpack.c.bf16 %v1920_v12, %v1918_v11  ;;  %v1929_v3 = vld [vmem:[%s5483_s18 + $0x1fe0] sm:$0xff]  ;;  %v1931_v4 = vld [vmem:[%s5483_s18 + $0x1ff0] sm:$0xff] }
 0x2d5   : > { %4672 = vmatprep.subr.bf16.mxu0 %v4671_v21  ;;  %v1917_v21 = vld [vmem:[%s5483_s18 + $0x1f80] sm:$0xff]  ;;  %v825_v7 = vadd.s32 %v5597_v15, %v792_v55 }
 0x2d6   : > { %v3207_v55 = vld [vmem:[%s6856_s6 + $0x10] sm:$0xff] (!%p3569_p9) }
 0x2d7   : > { %4162 = vmatpush1.bf16.msra.mxu1 %v4161_v27  ;;  %v1924_v27 = vld [vmem:[%s5483_s18 + $0x1fb8] sm:$0xff]  ;;  %vm857_vm14 = vcmp.lt.s32.totalorder %v825_v7, 17114 }
 0x2d8   : > { %4674 = vmatpush1.bf16.msra.mxu0 %v4673_v29  ;;  %4164 = vmatprep.subr.bf16.mxu1 %v4163_v47  ;;  %v4181_v29 = vpack.c.bf16 %v1407_v20, %v1405_v19  ;;  %v4693_v47 = vpack.c.bf16 %v1919_v24, %v1917_v21  ;;  %v4695_v53 = vpack.c.bf16 %v1924_v27, %v1922_v5  ;;  %v908_v20 = vld [vmem:[#allocation2 + $0x8] sm:$0xff]  ;;  %v3095_v5 = vld [vmem:[#allocation11] sm:$0xff] (!%p3569_p9) }
 0x2d9   : > { %4676 = vmatprep.subr.bf16.mxu0 %v4675_v35  ;;  %v1921_v35 = vld [vmem:[%s5483_s18 + $0x1fa0] sm:$0xff]  ;;  %v3105_v7 = vld [vmem:[#allocation11 + $0x50] sm:$0xff] (!%p3569_p9) }
 0x2db   : > { %4166 = vmatpush1.bf16.msra.mxu1 %v4165_v39  ;;  %v1928_v39 = vld [vmem:[%s5483_s18 + $0x1fd8] sm:$0xff] }
 0x2dc   : > { %4678 = vmatpush1.bf16.msra.mxu0 %v4677_v40  ;;  %4168 = vmatprep.subr.bf16.mxu1 %v4167_v41  ;;  %v4185_v40 = vpack.c.bf16 %v1411_v34, %v1409_v32  ;;  %v4697_v41 = vpack.c.bf16 %v1923_v36, %v1921_v35  ;;  %v4699_v22 = vpack.c.bf16 %v1928_v39, %v1926_v16  ;;  %v5147_v32 = vmov (!%p3569_p9), 0.0|0.0   ;;  %v3098_v36 = vld [vmem:[#allocation11 + $0x18] sm:$0xff] (!%p3569_p9) }
 0x2dd   : > { %4680 = vmatprep.subr.bf16.mxu0 %v4679_v59  ;;  %v1925_v59 = vld [vmem:[%s5483_s18 + $0x1fc0] sm:$0xff]  ;;  %v4715_v39 = vpack.c.bf16 (!%p3569_p9), %v3116_v38, %v3115_v37  ;;  %v3217_v38 = vld [vmem:[%s6856_s6 + $0x60] sm:$0xff] (!%p3569_p9) }
 0x2de   : > { %v4701_v56 = vpack.c.bf16 %v1927_v46, %v1925_v59  ;;  %v3102_v46 = vld [vmem:[#allocation11 + $0x38] sm:$0xff] (!%p3569_p9) }
 0x2df   : > { %4170 = vmatpush1.bf16.msra.mxu1 %v4169_v50  ;;  %v1932_v50 = vld [vmem:[%s5483_s18 + $0x1ff8] sm:$0xff] }
 0x2e0   : > { %4682 = vmatpush1.bf16.msra.mxu0 %v4681_v51  ;;  %4172 = vmatprep.subr.bf16.mxu1 %v4171_v30  ;;  %v4889_v51 = vld [vmem:[%s5477_s21 + $0x8] sm:$0xff] }
 0x2e1   : > { %4684 = vmatprep.subr.bf16.mxu0 %v4683_v45  ;;  %v611_v30 = vrot.slane %v4889_v51, %v6117_v57  ;;  %v4890_v45 = vld [vmem:[%s5477_s21 + $0x18] sm:$0xff]  ;;  %v3205_v51 = vld [vmem:[%s6856_s6] sm:$0xff] (!%p3569_p9) }
 0x2e2   : > { %v675_v18 = vrot.slane %v4890_v45, %v6117_v57  ;;  %v4705_v57 = vpack.c.bf16 %v1931_v4, %v1929_v3  ;;  %v3208_v45 = vld [vmem:[%s6856_s6 + $0x18] sm:$0xff] (!%p3569_p9)  ;;  %v3209_v4 = vld [vmem:[%s6856_s6 + $0x20] sm:$0xff] (!%p3569_p9) }
 0x2e3   : > { %4174 = vmatpush1.bf16.msra.mxu1 %v4173_v62  ;;  %v542_v62 = vld [vmem:[%s5470_s5 + $0xf0] sm:$0xff]  ;;  %v726_v6 = vmul.f32 %v611_v30, %v526_v54 }
 0x2e4   : > { %4686 = vmatpush1.bf16.msra.mxu0 %v4685_v0  ;;  %4176 = vmatprep.subr.bf16.mxu1 %v4175_v2  ;;  %v808_v0 = vadd.s32 3840, %v5579_v61  ;;  %v4703_v2 = vpack.c.bf16 %v1932_v50, %v1930_v49  ;;  %v742_v8 = vmul.f32 %v675_v18, %v542_v62  ;;  %v3079_v50 = vld [vmem:[#allocation9] sm:$0x3] (!%p3569_p9)  ;;  %v3206_v54 = vld [vmem:[%s6856_s6 + $0x8] sm:$0xff] (!%p3569_p9)  ;;  %v4723_v18 = vpack.c.bf16 (!%p3569_p9), %v3120_v10, %v3119_v48  ;;  %v3570_v48 = vld [vmem:[#allocation12] ss:$0 sm:$0xff] (!%p3569_p9) }
 0x2e5   : > { %4688 = vmatprep.subr.bf16.mxu0 %v4687_v63  ;;  %v4193_v63 = vpack.c.bf16 %v1419_v60, %v1417_v28  ;;  %v758_v11 = vmax.f32 %v726_v6, 0.0  ;;  %v4740_v28 = vpack.c.bf16 (!%p3569_p9), %v3206_v54, %v3205_v51  ;;  %v3121_v60 = vld [vmem:[#allocation11 + $0xd0] sm:$0xff] (!%p3569_p9)  ;;  %v3122_v62 = vld [vmem:[#allocation11 + $0xd8] sm:$0xff] (!%p3569_p9) }
 0x2e6   : > { %v841_v9 = vadd.s32 %v5597_v15, %v808_v0  ;;  %v774_v61 = vmax.f32 %v742_v8, 0.0  ;;  %v3111_v15 = vld [vmem:[#allocation11 + $0x80] sm:$0xff] (!%p3569_p9)  ;;  %v4743_v0 = vpack.c.bf16 (!%p3569_p9), %v3208_v45, %v3207_v55  ;;  %v3210_v6 = vld [vmem:[%s6856_s6 + $0x28] sm:$0xff] (!%p3569_p9) }
 0x2e7   : > { %4178 = vmatpush1.bf16.msra.mxu1 %v4177_v13  ;;  %v907_v13 = vld [vmem:[#allocation2] sm:$0xff]  ;;  %v4707_v27 = vpack.c.bf16 (!%p3569_p9), %v3112_v26, %v3111_v15  ;;  %v3106_v8 = vld [vmem:[#allocation11 + $0x58] sm:$0xff] (!%p3569_p9)  ;;  %v3571_v55 = vld [vmem:[#allocation14] ss:$0 sm:$0xff] (!%p3569_p9) }
 0x2e8   : > { %4690 = vmatpush1.bf16.msra.mxu0 %v4689_v17  ;;  %4180 = vmatprep.subr.bf16.mxu1 %v4179_v33  ;;  %vm873_vm15 = vcmp.lt.s32.totalorder %v841_v9, 17114  ;;  %v3124_v9 = vld [vmem:[#allocation11 + $0xe8] sm:$0xff] (!%p3569_p9) }
 0x2e9   : > { %4692 = vmatprep.subr.bf16.mxu0 %v4691_v23  ;;  %v3213_v26 = vld [vmem:[%s6856_s6 + $0x40] sm:$0xff] (!%p3569_p9) }
 0x2eb   : > { %4182 = vmatpush1.bf16.msra.mxu1 %v4181_v29  ;;  %v3096_v29 = vld [vmem:[#allocation11 + $0x8] sm:$0xff] (!%p3569_p9) }
 0x2ec   : > { %4694 = vmatpush1.bf16.msra.mxu0 %v4693_v47  ;;  %4184 = vmatprep.subr.bf16.mxu1 %v4183_v31  ;;  %v3113_v47 = vld [vmem:[#allocation11 + $0x90] sm:$0xff] (!%p3569_p9)  ;;  %v3114_v31 = vld [vmem:[#allocation11 + $0x98] sm:$0xff] (!%p3569_p9)  ;;  %v4709_v34 = vpack.c.bf16 (!%p3569_p9), %v3096_v29, %v3095_v5 }
 0x2ed   : > { %4696 = vmatprep.subr.bf16.mxu0 %v4695_v53  ;;  %v4711_v35 = vpack.c.bf16 (!%p3569_p9), %v3114_v31, %v3113_v47  ;;  %v3097_v53 = vld [vmem:[#allocation11 + $0x10] sm:$0xff] (!%p3569_p9)  ;;  %v3110_v47 = vld [vmem:[#allocation11 + $0x78] sm:$0xff] (!%p3569_p9) }
 0x2ee   : > { %v4713_v16 = vpack.c.bf16 (!%p3569_p9), %v3098_v36, %v3097_v53  ;;  %v3214_v5 = vld [vmem:[%s6856_s6 + $0x48] sm:$0xff] (!%p3569_p9)  ;;  %v3216_v53 = vld [vmem:[%s6856_s6 + $0x58] sm:$0xff] (!%p3569_p9) }
 0x2ef   : > { %4186 = vmatpush1.bf16.msra.mxu1 %v4185_v40  ;;  %v3099_v40 = vld [vmem:[#allocation11 + $0x20] sm:$0xff] (!%p3569_p9)  ;;  %v3109_v29 = vld [vmem:[#allocation11 + $0x70] sm:$0xff] (!%p3569_p9)  ;;  %v4752_v31 = vpack.c.bf16 (!%p3569_p9), %v3214_v5, %v3213_v26 }
 0x2f0   : > { %4698 = vmatpush1.bf16.msra.mxu0 %v4697_v41  ;;  %4188 = vmatprep.subr.bf16.mxu1 %v4187_v42  ;;  %v3100_v41 = vld [vmem:[#allocation11 + $0x28] sm:$0xff] (!%p3569_p9)  ;;  %v3117_v42 = vld [vmem:[#allocation11 + $0xb0] sm:$0xff] (!%p3569_p9) }
 0x2f1   : > { %4700 = vmatprep.subr.bf16.mxu0 %v4699_v22  ;;  %v4717_v44 = vpack.c.bf16 (!%p3569_p9), %v3100_v41, %v3099_v40  ;;  %v4719_v59 = vpack.c.bf16 (!%p3569_p9), %v3118_v43, %v3117_v42  ;;  %v3101_v22 = vld [vmem:[#allocation11 + $0x30] sm:$0xff] (!%p3569_p9)  ;;  %v3219_v40 = vld [vmem:[%s6856_s6 + $0x70] sm:$0xff] (!%p3569_p9)  ;;  %v3220_v41 = vld [vmem:[%s6856_s6 + $0x78] sm:$0xff] (!%p3569_p9)  ;;  %v5149_v43 = vmov (!%p3569_p9), 0.0  }
 0x2f2   : > { %v4721_v30 = vpack.c.bf16 (!%p3569_p9), %v3102_v46, %v3101_v22  ;;  %v4761_v42 = vpack.c.bf16 (!%p3569_p9), %v3220_v41, %v3219_v40 }
 0x2f3   : > { %4190 = vmatpush1.bf16.msra.mxu1 %v4189_v52  ;;  %v3088_v52 = vrot.slane (!%p3569_p9), %v3079_v50, %v5595_v14 }
 0x2f4   : > { %4702 = vmatpush1.bf16.msra.mxu0 %v4701_v56  ;;  %4192 = vmatprep.subr.bf16.mxu1 %v4191_v58  ;;  %v3103_v56 = vld [vmem:[#allocation11 + $0x40] sm:$0xff] (!%p3569_p9)  ;;  %v3104_v58 = vld [vmem:[#allocation11 + $0x48] sm:$0xff] (!%p3569_p9) }
 0x2f5   : > { %4704 = vmatprep.subr.bf16.mxu0 %v4703_v2  ;;  %v4725_v2 = vpack.c.bf16 (!%p3569_p9), %v3104_v58, %v3103_v56  ;;  %v3572_v58 = vld [vmem:[#allocation3] ss:$0 sm:$0xff] (!%p3569_p9) }
 0x2f7   : > { %4194 = vmatpush1.bf16.msra.mxu1 %v4193_v63  ;;  %v4727_v63 = vpack.c.bf16 (!%p3569_p9), %v3122_v62, %v3121_v60 }
 0x2f8   : > { %4706 = vmatpush1.bf16.msra.mxu0 %v4705_v57  ;;  %4739 = vmatprep.subr.bf16.mxu1 (!%p3569_p9), %v5147_v32  ;;  %v3123_v57 = vld [vmem:[#allocation11 + $0xe0] sm:$0xff] (!%p3569_p9) }
 0x2f9   : > { %4708 = vmatprep.subr.bf16.mxu0 (!%p3569_p9), %v4707_v27 }
 0x2fa   : > { %3552 = vmatmul.mubr.msk.f32.vlgmr.msra.gmra.mrb[0].mxu1 %vm857_vm14, %v758_v11  ;;  %v4746_v11 = vpack.c.bf16 (!%p3569_p9), %v3210_v6, %v3209_v4 }
 0x2fb   : > { %3568 = vmatmul.mubr.msk.f32.vlgmr.msra.gmra.mrb[0].mxu0 %vm873_vm15, %v774_v61  ;;  %4741 = vmatpush3.bf16.msra.mxu1 (!%p3569_p9), %v4740_v28  ;;  %v4729_v61 = vpack.c.bf16 (!%p3569_p9), %v3106_v8, %v3105_v7 }
 0x2fc   : > { %4710 = vmatpush3.bf16.msra.mxu0 (!%p3569_p9), %v4709_v34  ;;  %4742 = vmatprep.subr.bf16.mxu1 (!%p3569_p9), %v5147_v32  ;;  %v4737_v34 = vpack.c.bf16 (!%p3569_p9), %v3110_v47, %v3109_v29 }
 0x2fd   : > { %4712 = vmatprep.subr.bf16.mxu0 (!%p3569_p9), %v4711_v35  ;;  %v3215_v35 = vld [vmem:[%s6856_s6 + $0x50] sm:$0xff] (!%p3569_p9)  ;;  %3669 = vmatprep.mubr.msk.f32.mxu1 (!%p3569_p9), %vm5148_vm0, %v5149_v43 }
 0x2fe   : > { %v4755_v37 = vpack.c.bf16 (!%p3569_p9), %v3216_v53, %v3215_v35 }
 0x2ff   : > { %4744 = vmatpush3.bf16.msra.mxu1 (!%p3569_p9), %v4743_v0 }
 0x300   : > { %4714 = vmatpush3.bf16.msra.mxu0 (!%p3569_p9), %v4713_v16  ;;  %4745 = vmatprep.subr.bf16.mxu1 (!%p3569_p9), %v5147_v32  ;;  %v3218_v16 = vld [vmem:[%s6856_s6 + $0x68] sm:$0xff] (!%p3569_p9) }
 0x301   : > { %4716 = vmatprep.subr.bf16.mxu0 (!%p3569_p9), %v4715_v39  ;;  %v4758_v39 = vpack.c.bf16 (!%p3569_p9), %v3218_v16, %v3217_v38 }
 0x303   : > { %4747 = vmatpush3.bf16.msra.mxu1 (!%p3569_p9), %v4746_v11 }
 0x304   : > { %4718 = vmatpush3.bf16.msra.mxu0 (!%p3569_p9), %v4717_v44  ;;  %4748 = vmatprep.subr.bf16.mxu1 (!%p3569_p9), %v5147_v32  ;;  %v3299_v44 = vld [vmem:[%s6858_s8] sm:$0xff] (!%p3569_p9) }
 0x305   : > { %4720 = vmatprep.subr.bf16.mxu0 (!%p3569_p9), %v4719_v59  ;;  %v3300_v59 = vld [vmem:[%s6858_s8 + $0x8] sm:$0xff] (!%p3569_p9) }
 0x306   : > { %v4764_v22 = vpack.c.bf16 (!%p3569_p9), %v3300_v59, %v3299_v44 }
 0x308   : > { %4722 = vmatpush3.bf16.msra.mxu0 (!%p3569_p9), %v4721_v30  ;;  %v3301_v30 = vld [vmem:[%s6858_s8 + $0x10] sm:$0xff] (!%p3569_p9) }
 0x309   : > { %4724 = vmatprep.subr.bf16.mxu0 (!%p3569_p9), %v4723_v18 }
 0x30c   : > { %4726 = vmatpush3.bf16.msra.mxu0 (!%p3569_p9), %v4725_v2 }
 0x30d   : > { %4728 = vmatprep.subr.bf16.mxu0 (!%p3569_p9), %v4727_v63 }
 0x310   : > { %4730 = vmatpush3.bf16.msra.mxu0 (!%p3569_p9), %v4729_v61 }
 0x3cd   : > { %v2496_v12 = vpop.f32.mrb[0].mxu1 }
 0x3ce   : > { %v3064_v17 = vpop.f32.mrb[0].mxu0  ;;  %v2498_v33 = vpop.f32.mrb[1].mxu1  ;;  %3076 = sbr.rel (%p3569_p9) target bundleno = 1643 (0x66b), region = 96 }
 0x3cf   : > { %v4769_v19 = vadd.f32 %v3064_v17, %v2496_v12  ;;  %v3066_v21 = vpop.f32.mrb[1].mxu0  ;;  %v3211_v12 = vld [vmem:[%s6856_s6 + $0x30] sm:$0xff] (!%p3569_p9)  ;;  %v4731_v17 = vpack.c.bf16 (!%p3569_p9), %v3124_v9, %v3123_v57 }
 0x3d0   : > { %v4770_v23 = vadd.f32 %v3066_v21, %v2498_v33  ;;  %v3107_v33 = vld [vmem:[#allocation11 + $0x60] sm:$0xff] (!%p3569_p9)  ;;  %v3126_v21 = vld [vmem:[#allocation11 + $0xf8] sm:$0xff] (!%p3569_p9) }
 0x3d1   : > { %v3069_v24 = vadd.f32 %v4769_v19, %v907_v13  ;;  %v3212_v13 = vld [vmem:[%s6856_s6 + $0x38] sm:$0xff] (!%p3569_p9)  ;;  %4732 = vmatprep.subr.bf16.mxu0 (!%p3569_p9), %v4731_v17 }
 0x3d2   : > { %v3070_v25 = vadd.f32 %v4770_v23, %v908_v20  ;;  %v3108_v19 = vld [vmem:[#allocation11 + $0x68] sm:$0xff] (!%p3569_p9)  ;;  %v3125_v20 = vld [vmem:[#allocation11 + $0xf0] sm:$0xff] (!%p3569_p9)  ;;  %v3084_v23 = vrot.slane (!%p3569_p9), %v3079_v50, %v5640_v1 }
 0x3d3   : > { %3071 = vst [vmem:[#allocation2] sm:$0xff] %v3069_v24  ;;  %v4749_v24 = vpack.c.bf16 (!%p3569_p9), %v3212_v13, %v3211_v12  ;;  %v4735_v27 = vpack.c.bf16 (!%p3569_p9), %v3126_v21, %v3125_v20 }
 0x3d4   : > { %3072 = vst [vmem:[#allocation2 + $0x8] sm:$0xff] %v3070_v25  ;;  %v4733_v25 = vpack.c.bf16 (!%p3569_p9), %v3108_v19, %v3107_v33 }
 0x3d5   : > { %4750 = vmatpush3.bf16.msra.mxu1 %v4749_v24 }
 0x3d6   : > { %4734 = vmatpush3.bf16.msra.mxu0 %v4733_v25  ;;  %4751 = vmatprep.subr.bf16.mxu1 %v5147_v32 }
 0x3d7   : > { %4736 = vmatprep.subr.bf16.mxu0 %v4735_v27 }
 0x3d9   : > { %4753 = vmatpush3.bf16.msra.mxu1 %v4752_v31 }
 0x3da   : > { %v3077_v15 = vld [vmem:[#allocation2] sm:$0xff]  ;;  %4738 = vmatpush3.bf16.msra.mxu0 %v4737_v34  ;;  %4754 = vmatprep.subr.bf16.mxu1 %v5147_v32 }
 0x3db   : > { %v3078_v49 = vld [vmem:[#allocation2 + $0x8] sm:$0xff]  ;;  %v3091_v1 = vadd.f32 %v3084_v23, %v3077_v15  ;;  %4763 = vmatprep.subr.bf16.mxu0 %v5147_v32 }
 0x3dc   : > { %v3092_v14 = vadd.f32 %v3088_v52, %v3078_v49  ;;  %v3302_v52 = vld [vmem:[%s6858_s8 + $0x18] sm:$0xff] }
 0x3dd   : > { %v3093_v36 = vmax.f32 %v3091_v1, 0.0  ;;  %4756 = vmatpush3.bf16.msra.mxu1 %v4755_v37  ;;  %v4767_v54 = vpack.c.bf16 %v3302_v52, %v3301_v30 }
 0x3de   : > { %v3094_v3 = vmax.f32 %v3092_v14, 0.0  ;;  %4757 = vmatprep.subr.bf16.mxu1 %v5147_v32 }
 0x3e0   : > { %3198 = vmatprep.mubr.f32.mxu0 %v3094_v3 }
 0x3e1   : > { %3199 = vmatmul.mubr.f32.vlgmr.msra.gmra.mrb[0].mxu0 %v3093_v36  ;;  %4759 = vmatpush3.bf16.msra.mxu1 %v4758_v39 }
 0x3e2   : > { %4760 = vmatprep.subr.bf16.mxu1 %v5147_v32  ;;  %3680 = vmatprep.mubr.msk.f32.mxu0 %vm5148_vm0, %v5149_v43 }
 0x3e3   : > { %4765 = vmatpush3.bf16.msra.mxu0 %v4764_v22 }
 0x3e4   : > { %4766 = vmatprep.subr.bf16.mxu0 %v5147_v32 }
 0x3e5   : > { %4762 = vmatpush3.bf16.msra.mxu1 %v4761_v42 }
 0x3e7   : > { %4768 = vmatpush3.bf16.msra.mxu0 %v4767_v54 }
 0x4b4   : > { %v3612_v46 = vpop.f32.mrb[0].mxu0 }
 0x4b5   : > { %v3613_v10 = vpop.f32.mrb[1].mxu0 }
 0x4b6   : > { %v3614_v49 = vadd.f32 %v3613_v10, %v3612_v46 }
 0x4b8   : > { %v3201_v50 = vadd.f32 %v3614_v49, %v3570_v48 }
 0x4ba   : > { %v3204_v51 = vmax.f32 %v3201_v50, 0.0 }
 0x4bc   : > { %3670 = vmatmul.mubr.f32.vlgmr.msra.gmra.mrb[0].mxu1 %v3204_v51 }
 0x58f   : > { %v3294_v45 = vpop.f32.mrb[0].mxu1 }
 0x590   : > { %v3295_v32 = vadd.f32 %v3571_v55, %v3294_v45  ;;  %v3671_v18 = vpop.f32.mrb[1].mxu1 }
 0x592   : > { %v3298_v56 = vmax.f32 %v3295_v32, 0.0 }
 0x594   : > { %3681 = vmatmul.mubr.msk.f32.vlgmr.msra.gmra.mrb[2].mxu0 %vm3310_vm1, %v3298_v56 }
 0x667   : > { %v3380_v28 = vpop.f32.mrb[2].mxu0 }
 0x668   : > { %v3381_v60 = vadd.f32 %v3572_v58, %v3380_v28  ;;  %v3682_v62 = vpop.f32.mrb[3].mxu0 }
 0x66a   : > { %3385 = vst.msk [vmem:[%s6860_s10] sm:$0xff] %vm3384_vm2, %v3381_v60 }
 0x66b PF: > { %s6887_s18 = sld [smem:[#allocation19_spill]]  ;;  %s6888_s9 = sld [smem:[#allocation20_spill]] }
 0x66c   : > { %s6889_s15 = smov %s5125_s16  ;;  %s6890_s16 = smov %s5129_s17 }
 0x671   : > { %p27_p12 = scmp.ge.s32.totalorder %s6887_s18, 7   ;;  %s6891_s17 = smov %s6888_s9 }
 0x673   :  { %29 = sbr.rel (!%p27_p12) target bundleno = 10 (0xa), region = 144 }
 0x67a   :  { %3397 = vsyncpa [#allocation5], 1 }
 0x67b   :  { %3399 = vsyncpa [#allocation5 + $0x1], 1 }
 0x67c   :  { %3400 = vsyncpa [#allocation7], 1 }
 0x67d   :  { %3402 = vsyncpa [#allocation7 + $0x1], 1 }
 0x67e   :  { %3403 = vsyncpa [#allocation10], 1 }
 0x67f   :  { %3404 = vsyncpa [#allocation13], 1 }

</bundles_post_ra>
